<compile_context>
chip_gen: v7x
topology: tpu7x:2x2x1
jax: 0.10.0
libtpu: 0.0.40
codegen_flags: <defaults>
</compile_context>

<pallas_src>
import jax
import jax.numpy as jnp
from jax.experimental import pallas as pl
from jax.experimental.pallas import tpu as pltpu

STATE_DIM = 15
ACTION_DIM = 3
IN_DIM = STATE_DIM + ACTION_DIM   # 18
H1 = 700
H2 = 500
MIN_TILE = 256   # multiple of 256 (v6e/v7x MXU) and 128 (v5e MXU / lanes)
MAX_TILE = 1024


def _critic_kernel(xu_ref, w1_ref, b1_ref, w2_ref, b2_ref, w3_ref, b3_ref,
                   out_ref):
    # Stage 1: single fused (TB,18)@(18,700), bf16 MXU inputs, f32 acc.
    h1 = jnp.dot(xu_ref[...], w1_ref[...], preferred_element_type=jnp.float32)
    h1 = jnp.maximum(h1 + b1_ref[...], 0.0)

    # Stage 2: (TB,700)@(700,500), bf16 MXU inputs, f32 acc.
    h2 = jnp.dot(h1.astype(jnp.bfloat16), w2_ref[...],
                 preferred_element_type=jnp.float32)
    h2 = jnp.maximum(h2 + b2_ref[...], 0.0)

    # Stage 3: N=1 projection on VPU (multiply) + XLU (lane reduce).
    out_ref[...] = (jnp.sum(h2 * w3_ref[...], axis=-1, keepdims=True)
                    + b3_ref[...])


def _pick_tile(padded_b):
    # Largest tile (<=1024, multiple of 256) dividing padded_b while leaving
    # >=2 grid steps when possible (so both v7x TensorCores get work).
    for t in (MAX_TILE, 512, MIN_TILE):
        if padded_b % t == 0 and padded_b // t >= 2:
            return t
    return min(padded_b, MIN_TILE)


@jax.jit
def critic_forward(x, u, params):
    """x: (B, STATE_DIM) f32, u: (B, ACTION_DIM) f32 -> (B, 1) f32."""
    B = x.shape[0]
    padded_B = max(MIN_TILE, ((B + MIN_TILE - 1) // MIN_TILE) * MIN_TILE)
    tile_b = _pick_tile(padded_B)
    n_tiles = padded_B // tile_b

    # torch.cat([x, u], 1) once in the wrapper; bf16 halves per-tile
    # activation DMA and removes per-tile casts from the kernel.
    xu = jnp.concatenate([x, u], axis=1).astype(jnp.bfloat16)
    if padded_B != B:
        xu = jnp.pad(xu, ((0, padded_B - B), (0, 0)))

    const = lambda shape: pl.BlockSpec(shape, lambda i: (0, 0))

    flops = 2 * padded_B * (IN_DIM * H1 + H1 * H2 + H2)
    bytes_accessed = (padded_B * IN_DIM * 2          # xu (bf16)
                      + padded_B * 4                 # out (f32)
                      + IN_DIM * H1 * 2 + H1 * H2 * 2  # bf16 weights
                      + (H1 + H2 + H2 + 1) * 4)        # f32 biases + w3 row

    # NOTE: on v7x, `"parallel"` should let the batch axis shard across both
    # TensorCores; if profiling shows a single-core run, switch to
    # pltpu.CORE_PARALLEL.
    out = pl.pallas_call(
        _critic_kernel,
        out_shape=jax.ShapeDtypeStruct((padded_B, 1), jnp.float32),
        grid=(n_tiles,),
        in_specs=[
            pl.BlockSpec((tile_b, IN_DIM), lambda i: (i, 0)),  # xu tile (bf16)
            const((IN_DIM, H1)),   # w1 (bf16, VMEM-resident)
            const((1, H1)),        # b1 (f32)
            const((H1, H2)),       # w2 (bf16, VMEM-resident)
            const((1, H2)),        # b2 (f32)
            const((1, H2)),        # w3 row (f32)
            const((1, 1)),         # b3 (f32)
        ],
        out_specs=pl.BlockSpec((tile_b, 1), lambda i: (i, 0)),
        compiler_params=pltpu.CompilerParams(
            dimension_semantics=("parallel",),
            vmem_limit_bytes=32 * 1024 * 1024),
        cost_estimate=pl.CostEstimate(flops=flops, transcendentals=0,
                                      bytes_accessed=bytes_accessed),
    )(xu, params["w1"], params["b1"], params["w2"], params["b2"],
      params["w3"], params["b3"])

    return out[:B]


def init_params(key):
    """Deterministic init mimicking PyTorch's default Linear init
    (uniform(-1/sqrt(fan_in), 1/sqrt(fan_in))).  Weights stored as
    [in_features, out_features]; w1/w2 kept in bf16 for the MXU."""
    def linear(key, fan_in, fan_out):
        kw, kb = jax.random.split(key)
        bound = 1.0 / jnp.sqrt(jnp.float32(fan_in))
        w = jax.random.uniform(kw, (fan_in, fan_out), jnp.float32,
                               -bound, bound)
        b = jax.random.uniform(kb, (1, fan_out), jnp.float32, -bound, bound)
        return w, b

    k1, k2, k3 = jax.random.split(key, 3)
    w1, b1 = linear(k1, IN_DIM, H1)
    w2, b2 = linear(k2, H1, H2)
    w3, b3 = linear(k3, H2, 1)
    return dict(
        w1=w1.astype(jnp.bfloat16),
        b1=b1,
        w2=w2.astype(jnp.bfloat16),
        b2=b2,
        w3=w3.T,        # stored as (1, H2) row for the VPU projection
        b3=b3,
    )


def critic_reference(x, u, params):
    """f32 reference on the same (bf16-quantized) weights the kernel uses."""
    hp = jax.lax.Precision.HIGHEST
    xu = jnp.concatenate([x, u], axis=1)
    xu_q = xu.astype(jnp.bfloat16).astype(jnp.float32)
    h1 = jax.nn.relu(jnp.dot(xu_q, params["w1"].astype(jnp.float32),
                             precision=hp) + params["b1"])
    h1_q = h1.astype(jnp.bfloat16).astype(jnp.float32)
    h2 = jax.nn.relu(jnp.dot(h1_q, params["w2"].astype(jnp.float32),
                             precision=hp) + params["b2"])
    return jnp.sum(h2 * params["w3"], axis=-1, keepdims=True) + params["b3"]


if __name__ == "__main__":
    key = jax.random.PRNGKey(0)
    kp, kx, ku = jax.random.split(key, 3)

    params = init_params(kp)

    batch = 2
    x = jax.random.normal(kx, (batch, STATE_DIM), jnp.float32)
    u = jax.random.normal(ku, (batch, ACTION_DIM), jnp.float32)

    out = critic_forward(x, u, params)
    out = jax.block_until_ready(out)

    ref = critic_reference(x, u, params)
    assert out.shape == (batch, 1), out.shape
    assert jnp.allclose(out, ref, atol=1e-3, rtol=1e-3), (out, ref)

    print("KERNEL_OK")
</pallas_src>

<mosaic_0001>
module attributes {stable_mosaic.version = 11 : i64} {
  func.func @_critic_kernel(%arg0: i32, %arg1: memref<256x18xbf16, #tpu.memory_space<vmem>>, %arg2: memref<18x700xbf16, #tpu.memory_space<vmem>>, %arg3: memref<1x700xf32, #tpu.memory_space<vmem>>, %arg4: memref<700x500xbf16, #tpu.memory_space<vmem>>, %arg5: memref<1x500xf32, #tpu.memory_space<vmem>>, %arg6: memref<1x500xf32, #tpu.memory_space<vmem>>, %arg7: memref<1x1xf32, #tpu.memory_space<vmem>>, %arg8: memref<256x1xf32, #tpu.memory_space<vmem>>) attributes {dimension_semantics = [#tpu.dimension_semantics<parallel>], iteration_bounds = array<i64: 1>, scalar_prefetch = 0 : i64, scratch_operands = 0 : i64, tpu.core_type = #tpu.core_type<tc>, window_params = [{transform_indices = @transform_0, window_bounds = array<i64: 256, 18>}, {pipeline_mode = #tpu.pipeline_mode<synchronous>, transform_indices = @transform_1, window_bounds = array<i64: 18, 700>}, {pipeline_mode = #tpu.pipeline_mode<synchronous>, transform_indices = @transform_2, window_bounds = array<i64: 1, 700>}, {pipeline_mode = #tpu.pipeline_mode<synchronous>, transform_indices = @transform_3, window_bounds = array<i64: 700, 500>}, {pipeline_mode = #tpu.pipeline_mode<synchronous>, transform_indices = @transform_4, window_bounds = array<i64: 1, 500>}, {pipeline_mode = #tpu.pipeline_mode<synchronous>, transform_indices = @transform_5, window_bounds = array<i64: 1, 500>}, {pipeline_mode = #tpu.pipeline_mode<synchronous>, transform_indices = @transform_6, window_bounds = array<i64: 1, 1>}, {transform_indices = @transform_7, window_bounds = array<i64: 256, 1>}]} {
    %c0 = arith.constant 0 : index
    %c0_0 = arith.constant 0 : index
    %0 = vector.load %arg1[%c0, %c0_0] : memref<256x18xbf16, #tpu.memory_space<vmem>>, vector<256x18xbf16>
    %c0_1 = arith.constant 0 : index
    %c0_2 = arith.constant 0 : index
    %1 = vector.load %arg2[%c0_1, %c0_2] : memref<18x700xbf16, #tpu.memory_space<vmem>>, vector<18x700xbf16>
    %cst = arith.constant dense<0.000000e+00> : vector<256x700xf32>
    %2 = tpu.matmul %0, %1, %cst {dimension_numbers = #tpu.dot_dimension_numbers<[1], [0], [0], [1], [0, 0, 1, 1], [], []>} : vector<256x18xbf16>, vector<18x700xbf16>, vector<256x700xf32> -> vector<256x700xf32>
    %c0_3 = arith.constant 0 : index
    %c0_4 = arith.constant 0 : index
    %3 = vector.load %arg3[%c0_3, %c0_4] : memref<1x700xf32, #tpu.memory_space<vmem>>, vector<1x700xf32>
    %4 = vector.broadcast %3 : vector<1x700xf32> to vector<256x700xf32>
    %5 = arith.addf %2, %4 : vector<256x700xf32>
    %cst_5 = arith.constant 0.000000e+00 : f32
    %6 = vector.broadcast %cst_5 : f32 to vector<256x700xf32>
    %7 = arith.maximumf %5, %6 : vector<256x700xf32>
    %8 = arith.truncf %7 : vector<256x700xf32> to vector<256x700xbf16>
    %c0_6 = arith.constant 0 : index
    %c0_7 = arith.constant 0 : index
    %9 = vector.load %arg4[%c0_6, %c0_7] : memref<700x500xbf16, #tpu.memory_space<vmem>>, vector<700x500xbf16>
    %cst_8 = arith.constant dense<0.000000e+00> : vector<256x500xf32>
    %10 = tpu.matmul %8, %9, %cst_8 {dimension_numbers = #tpu.dot_dimension_numbers<[1], [0], [0], [1], [0, 0, 1, 1], [], []>} : vector<256x700xbf16>, vector<700x500xbf16>, vector<256x500xf32> -> vector<256x500xf32>
    %c0_9 = arith.constant 0 : index
    %c0_10 = arith.constant 0 : index
    %11 = vector.load %arg5[%c0_9, %c0_10] : memref<1x500xf32, #tpu.memory_space<vmem>>, vector<1x500xf32>
    %12 = vector.broadcast %11 : vector<1x500xf32> to vector<256x500xf32>
    %13 = arith.addf %10, %12 : vector<256x500xf32>
    %cst_11 = arith.constant 0.000000e+00 : f32
    %14 = vector.broadcast %cst_11 : f32 to vector<256x500xf32>
    %15 = arith.maximumf %13, %14 : vector<256x500xf32>
    %c0_12 = arith.constant 0 : index
    %c0_13 = arith.constant 0 : index
    %16 = vector.load %arg6[%c0_12, %c0_13] : memref<1x500xf32, #tpu.memory_space<vmem>>, vector<1x500xf32>
    %17 = vector.broadcast %16 : vector<1x500xf32> to vector<256x500xf32>
    %18 = arith.mulf %15, %17 : vector<256x500xf32>
    %cst_14 = arith.constant dense<0.000000e+00> : vector<256xf32>
    %19 = vector.multi_reduction <add>, %18, %cst_14 [1] : vector<256x500xf32> to vector<256xf32>
    %20 = vector.shape_cast %19 : vector<256xf32> to vector<256x1xf32>
    %c0_15 = arith.constant 0 : index
    %c0_16 = arith.constant 0 : index
    %21 = vector.load %arg7[%c0_15, %c0_16] : memref<1x1xf32, #tpu.memory_space<vmem>>, vector<1x1xf32>
    %22 = vector.broadcast %21 : vector<1x1xf32> to vector<256x1xf32>
    %23 = arith.addf %20, %22 : vector<256x1xf32>
    %c0_17 = arith.constant 0 : index
    %c0_18 = arith.constant 0 : index
    %24 = vector.load %arg8[%c0_17, %c0_18] : memref<256x1xf32, #tpu.memory_space<vmem>>, vector<256x1xf32>
    tpu.vector_store %arg8[%c0_17, %c0_18], %23 {strides = array<i32>} : memref<256x1xf32, #tpu.memory_space<vmem>>, vector<256x1xf32>,
    return
  }
  func.func @transform_0(%arg0: i32) -> (i32, i32) {
    %c0_i32 = arith.constant 0 : i32
    %c0_i32_0 = arith.constant 0 : i32
    return %arg0, %c0_i32 : i32, i32
  }
  func.func @transform_1(%arg0: i32) -> (i32, i32) {
    %c0_i32 = arith.constant 0 : i32
    %c0_i32_0 = arith.constant 0 : i32
    %c0_i32_1 = arith.constant 0 : i32
    return %c0_i32, %c0_i32_0 : i32, i32
  }
  func.func @transform_2(%arg0: i32) -> (i32, i32) {
    %c0_i32 = arith.constant 0 : i32
    %c0_i32_0 = arith.constant 0 : i32
    %c0_i32_1 = arith.constant 0 : i32
    return %c0_i32, %c0_i32_0 : i32, i32
  }
  func.func @transform_3(%arg0: i32) -> (i32, i32) {
    %c0_i32 = arith.constant 0 : i32
    %c0_i32_0 = arith.constant 0 : i32
    %c0_i32_1 = arith.constant 0 : i32
    return %c0_i32, %c0_i32_0 : i32, i32
  }
  func.func @transform_4(%arg0: i32) -> (i32, i32) {
    %c0_i32 = arith.constant 0 : i32
    %c0_i32_0 = arith.constant 0 : i32
    %c0_i32_1 = arith.constant 0 : i32
    return %c0_i32, %c0_i32_0 : i32, i32
  }
  func.func @transform_5(%arg0: i32) -> (i32, i32) {
    %c0_i32 = arith.constant 0 : i32
    %c0_i32_0 = arith.constant 0 : i32
    %c0_i32_1 = arith.constant 0 : i32
    return %c0_i32, %c0_i32_0 : i32, i32
  }
  func.func @transform_6(%arg0: i32) -> (i32, i32) {
    %c0_i32 = arith.constant 0 : i32
    %c0_i32_0 = arith.constant 0 : i32
    %c0_i32_1 = arith.constant 0 : i32
    return %c0_i32, %c0_i32_0 : i32, i32
  }
  func.func @transform_7(%arg0: i32) -> (i32, i32) {
    %c0_i32 = arith.constant 0 : i32
    %c0_i32_0 = arith.constant 0 : i32
    return %arg0, %c0_i32 : i32, i32
  }
}

</mosaic_0001>

<bundles_post_ra>
// kernel: critic_forward.1
= control target key start
LH: loop header
LB: loop body
LE: loop exit
PB: predicated region body
PF: predicated region fallthrough
CT: control target
= control target key end

     0   :  { %s6395_s0 = inlined_call_operand.vmem [shape: bf16[256,18], index: 0, kind: input, shape index: {}]   ;;  %s6396_s1 = inlined_call_operand.vmem [shape: bf16[18,700], index: 1, kind: input, shape index: {}]   ;;  %s6397_s2 = inlined_call_operand.vmem [shape: f32[1,700], index: 2, kind: input, shape index: {}]   ;;  %s6398_s3 = inlined_call_operand.hbm [shape: bf16[700,500], index: 3, kind: input, shape index: {}]   ;;  %s6399_s4 = inlined_call_operand.vmem [shape: f32[1,500], index: 4, kind: input, shape index: {}]   ;;  %s6400_s5 = inlined_call_operand.vmem [shape: f32[1,500], index: 5, kind: input, shape index: {}]   ;;  %s6401_s6 = inlined_call_operand.<no memory space> [shape: f32[1,1], index: 6, kind: input, shape index: {}]   ;;  %s6402_s7 = inlined_call_operand.vmem [shape: f32[256,1], index: 7, kind: output, shape index: {}]  }
   0x1   :  { %v12_v0 = vstv %s6401_s6 }
   0x2   :  { %13 = vst [vmem:[#allocation2] sm:$0x1] %v12_v0 }
   0x3   :  { %14 = vsyncpa [#allocation4], 0  ;;  %s5019_s26 = smov [#allocation3]   ;;  %s4995_s30 = scalar_lea.hbm %s6398_s3, 22528 }
   0x4   :  { %s26_s27 = sshll.u32 %s5019_s26, 4  ;;  %p4996_p0 = scmp.ne.s32.totalorder %s6398_s3, %s4995_s30  ;;  %s27_s27 = int_to_ptr.vmem [resolvable:$true] %s26_s27 }
   0x5   :  { %p4999_p1 = scmp.lt.u32.totalorder %s4995_s30, %s6398_s3 }
   0x7   :  { %p5001_p2 = pnand %p4999_p1, %p4996_p0 }
   0x9   :  { %5004 = shalt.err (!%p5001_p2)
}
   0xa   :  { %s5005_s6 = scalar_lea.vmem %s27_s27, 22528  ;;  %p5010_p4 = scmp.lt.s32.totalorder %s27_s27, %s27_s27 }
   0xb   :  { %p5006_p3 = scmp.ne.s32.totalorder %s27_s27, %s5005_s6  ;;  %p5011_p5 = scmp.lt.s32.totalorder %s5005_s6, %s5005_s6 }
   0xd   :  { %p5012_p6 = por %p5011_p5, %p5010_p4 }
   0xf   :  { %p5013_p7 = pnand %p5012_p6, %p5006_p3 }
  0x11   :  { %5016 = shalt.err (!%p5013_p7)
}
  0x12   :  { %s5020_s12 = smov 256   ;;  %s5021_s13 = smov 16  }
  0x13   :  { %32 = dma.hbm_to_vmem [thread:$0]  %s6398_s3, 22528, %s27_s27, [#allocation4], %s5020_s12, %s5020_s12, %s5021_s13  }
  0x14   :  { %5017 = dma.done.wait [#allocation4], 22528  }
  0x15   :  { %5018 = vsyncadd [#allocation4], 4294944768  ;;  %v5022_v1 = vmov 0   ;;  %v4700_v2 = vld [vmem:[%s6396_s1 + $0x4] ss:$24 sps:$4 sm:$0xff]   ;;  %vm290_vm0 = vcmask 1040384  }
  0x16   :  { %341 = vmatprep.mubr.bf16.mxu0 %v5022_v1  ;;  %421 = vmatprep.mubr.bf16.mxu1 %v5022_v1  ;;  %v4702_v3 = vld [vmem:[%s6396_s1] ss:$24 sps:$4 sm:$0xff]   ;;  %v81_v4 = vld [vmem:[%s6396_s1 + $0x30] sm:$0x11]  ;;  %vm241_vm1 = vcmask 146432   ;;  %v5123_v14 = vld [vmem:[%s6395_s0 + $0x8] sm:$0xff]  }
  0x17   :  { %309 = vmatprep.subr.bf16.mxu0 %v4700_v2  ;;  %v4041_v5 = vcombine.high %v81_v4, %v81_v4  ;;  %v4040_v6 = vcombine.low %v81_v4, %v81_v4  ;;  %4308 = vmatprep.subr.bf16.mxu1 %v4700_v2  ;;  %v5095_v8 = vld [vmem:[%s6395_s0] sm:$0xff]   ;;  %v4714_v12 = vld [vmem:[%s6396_s1 + $0x10] ss:$24 sps:$4 sm:$0xff]   ;;  %v4716_v13 = vld [vmem:[%s6396_s1 + $0x14] ss:$24 sps:$4 sm:$0xff]   ;;  %vm2299_vm2 = vcmask 1045504  }
  0x18   :  { %310 = vmatpush1.bf16.msra.mxu0 %v4702_v3  ;;  %4310 = vmatpush1.bf16.msra.mxu1 %v4702_v3  ;;  %v5100_v9 = vld [vmem:[%s6395_s0 + $0x40] sm:$0xff]   ;;  %v5128_v15 = vld [vmem:[%s6395_s0 + $0x48] sm:$0xff]   ;;  %v82_v16 = vld [vmem:[%s6396_s1 + $0x38] sm:$0x11]  ;;  %vm2250_vm3 = vcmask 490496   ;;  %vm3750_vm4 = vcmask 949248  }
  0x19   :  { %4046 = vmatprep.subr.msk.bf16.mxu0 %vm290_vm0, %v4041_v5  ;;  %v292_v7 = vsel %vm290_vm0, %v4040_v6, 0  ;;  %4309 = vmatprep.subr.msk.bf16.mxu1 %vm290_vm0, %v4041_v5  ;;  %v4710_v10 = vld [vmem:[%s6396_s1 + $0x8] ss:$24 sps:$4 sm:$0xff]   ;;  %v4712_v11 = vld [vmem:[%s6396_s1 + $0xc] ss:$24 sps:$4 sm:$0xff]   ;;  %v4043_v18 = vcombine.high %v82_v16, %v82_v16  ;;  %v4042_v19 = vcombine.low %v82_v16, %v82_v16  ;;  %v5145_v22 = vld [vmem:[%s6395_s0 + $0x10] sm:$0xff]  }
  0x1a   :  { %v83_v17 = vld [vmem:[%s6396_s1 + $0x40] sm:$0x11]  ;;  %v5153_v24 = vld [vmem:[%s6395_s0 + $0x50] sm:$0xff]   ;;  %v5165_v28 = vld [vmem:[%s6395_s0 + $0x18] sm:$0xff]   ;;  %vm3980_vm5 = vcmask 7168  }
  0x1b   :  { %v4045_v20 = vcombine.high %v83_v17, %v83_v17  ;;  %v4044_v21 = vcombine.low %v83_v17, %v83_v17  ;;  %v298_v23 = vsel %vm290_vm0, %v4042_v19, 0  ;;  %v4733_v26 = vld [vmem:[#allocation3 + $0x4] ss:$16 sps:$4 sm:$0xff]   ;;  %v4736_v27 = vld [vmem:[#allocation3 + $0xc] ss:$16 sps:$4 sm:$0xff]  }
  0x1c   :  { %312 = vmatpush1.bf16.msra.mxu0 %v292_v7  ;;  %4311 = vmatpush1.bf16.msra.mxu1 %v292_v7  ;;  %v5170_v29 = vld [vmem:[%s6395_s0 + $0x58] sm:$0xff]   ;;  %v5181_v30 = vld [vmem:[%s6395_s0 + $0x20] sm:$0xff]   ;;  %v5197_v32 = vld [vmem:[%s6395_s0 + $0x28] sm:$0xff]  }
  0x1d   :  { %502 = vmatprep.subr.bf16.mxu1 %v4712_v11  ;;  %695 = vmatprep.subr.bf16.mxu0 %v4716_v13  ;;  %v304_v25 = vsel %vm290_vm0, %v4044_v21, 0  ;;  %v5186_v31 = vld [vmem:[%s6395_s0 + $0x60] sm:$0xff]   ;;  %v5202_v33 = vld [vmem:[%s6395_s0 + $0x68] sm:$0xff]   ;;  %v5213_v34 = vld [vmem:[%s6395_s0 + $0x30] sm:$0xff]  }
  0x1e   :  { %v5218_v35 = vld [vmem:[%s6395_s0 + $0x70] sm:$0xff]   ;;  %v5229_v36 = vld [vmem:[%s6395_s0 + $0x38] sm:$0xff]  }
  0x1f   :  { %4047 = vmatmul.mubr.msk.bf16.vlgmr.msra.gmra.mrb[0].mxu0 %vm241_vm1, %v5095_v8  ;;  %4055 = vmatmul.mubr.msk.bf16.vlgmr.msra.gmra.mrb[0].mxu1 %vm241_vm1, %v5100_v9  ;;  %v5234_v37 = vld [vmem:[%s6395_s0 + $0x78] sm:$0xff]   ;;  %v4731_v38 = vld [vmem:[#allocation3] ss:$16 sps:$4 sm:$0xff]  }
  0x20   :  { %351 = vmatprep.mubr.bf16.mxu0 %v5022_v1  ;;  %503 = vmatpush1.bf16.msra.mxu1 %v4710_v10  ;;  %v4734_v39 = vld [vmem:[#allocation3 + $0x8] ss:$16 sps:$4 sm:$0xff]   ;;  %v4739_v40 = vld [vmem:[#allocation3 + $0x24] ss:$16 sps:$4 sm:$0xff]   ;;  %v4742_v41 = vld [vmem:[#allocation3 + $0x2c] ss:$16 sps:$4 sm:$0xff]  }
  0x21   :  { %431 = vmatprep.mubr.bf16.mxu1 %v5022_v1  ;;  %696 = vmatpush1.bf16.msra.mxu0 %v4714_v12  ;;  %v4737_v42 = vld [vmem:[#allocation3 + $0x20] ss:$16 sps:$4 sm:$0xff]   ;;  %v4740_v43 = vld [vmem:[#allocation3 + $0x28] ss:$16 sps:$4 sm:$0xff]   ;;  %v4745_v44 = vld [vmem:[#allocation3 + $0x44] ss:$16 sps:$4 sm:$0xff]  }
  0x22   :  { %4063 = vmatprep.subr.msk.bf16.mxu1 %vm290_vm0, %v4043_v18  ;;  %4080 = vmatprep.subr.msk.bf16.mxu0 %vm290_vm0, %v4045_v20  ;;  %v4748_v45 = vld [vmem:[#allocation3 + $0x4c] ss:$16 sps:$4 sm:$0xff]   ;;  %v4743_v46 = vld [vmem:[#allocation3 + $0x40] ss:$16 sps:$4 sm:$0xff]   ;;  %v4746_v47 = vld [vmem:[#allocation3 + $0x48] ss:$16 sps:$4 sm:$0xff]  }
  0x23   :  { %v4751_v48 = vld [vmem:[#allocation3 + $0x64] ss:$16 sps:$4 sm:$0xff]   ;;  %v4754_v49 = vld [vmem:[#allocation3 + $0x6c] ss:$16 sps:$4 sm:$0xff]   ;;  %v4749_v50 = vld [vmem:[#allocation3 + $0x60] ss:$16 sps:$4 sm:$0xff]  }
  0x24   :  { %505 = vmatpush1.bf16.msra.mxu1 %v298_v23  ;;  %v4752_v51 = vld [vmem:[#allocation3 + $0x68] ss:$16 sps:$4 sm:$0xff]   ;;  %v4757_v52 = vld [vmem:[#allocation3 + $0x84] ss:$16 sps:$4 sm:$0xff]   ;;  %v4760_v53 = vld [vmem:[#allocation3 + $0x8c] ss:$16 sps:$4 sm:$0xff]  }
  0x25   :  { %698 = vmatpush1.bf16.msra.mxu0 %v304_v25  ;;  %2312 = vmatprep.subr.bf16.mxu1 %v4733_v26  ;;  %v4755_v54 = vld [vmem:[#allocation3 + $0x80] ss:$16 sps:$4 sm:$0xff]   ;;  %v4758_v55 = vld [vmem:[#allocation3 + $0x88] ss:$16 sps:$4 sm:$0xff]   ;;  %v4763_v56 = vld [vmem:[#allocation3 + $0xa4] ss:$16 sps:$4 sm:$0xff]  }
  0x26   :  { %2891 = vmatprep.subr.bf16.mxu0 %v4736_v27  ;;  %v4766_v57 = vld [vmem:[#allocation3 + $0xac] ss:$16 sps:$4 sm:$0xff]   ;;  %v4761_v58 = vld [vmem:[#allocation3 + $0xa0] ss:$16 sps:$4 sm:$0xff]   ;;  %v4764_v59 = vld [vmem:[#allocation3 + $0xa8] ss:$16 sps:$4 sm:$0xff]  }
  0x27   :  { %4048 = vmatmul.mubr.msk.bf16.gmra.mrb[4].mxu0 %vm241_vm1, %v5123_v14  ;;  %4056 = vmatmul.mubr.msk.bf16.gmra.mrb[4].mxu1 %vm241_vm1, %v5128_v15  ;;  %v4769_v60 = vld [vmem:[#allocation3 + $0xc4] ss:$16 sps:$4 sm:$0xff]   ;;  %v4772_v61 = vld [vmem:[#allocation3 + $0xcc] ss:$16 sps:$4 sm:$0xff]   ;;  %v4767_v62 = vld [vmem:[#allocation3 + $0xc0] ss:$16 sps:$4 sm:$0xff]  }
  0x28   :  { %361 = vmatprep.mubr.bf16.mxu0 %v5022_v1  ;;  %441 = vmatprep.mubr.bf16.mxu1 %v5022_v1  ;;  %v4770_v63 = vld [vmem:[#allocation3 + $0xc8] ss:$16 sps:$4 sm:$0xff]   ;;  %v4775_v0 = vld [vmem:[#allocation3 + $0xe4] ss:$16 sps:$4 sm:$0xff]   ;;  %v4778_v2 = vld [vmem:[#allocation3 + $0xec] ss:$16 sps:$4 sm:$0xff]  }
  0x29   :  { %v4773_v3 = vld [vmem:[#allocation3 + $0xe0] ss:$16 sps:$4 sm:$0xff]   ;;  %v4776_v4 = vld [vmem:[#allocation3 + $0xe8] ss:$16 sps:$4 sm:$0xff]   ;;  %v4781_v5 = vld [vmem:[#allocation3 + $0x104] ss:$16 sps:$4 sm:$0xff]  }
  0x2a   :  { %v4784_v6 = vld [vmem:[#allocation3 + $0x10c] ss:$16 sps:$4 sm:$0xff]   ;;  %v4779_v7 = vld [vmem:[#allocation3 + $0x100] ss:$16 sps:$4 sm:$0xff]   ;;  %v4787_v10 = vld [vmem:[#allocation3 + $0x124] ss:$16 sps:$4 sm:$0xff]  }
  0x2b   :  { %v4790_v11 = vld [vmem:[#allocation3 + $0x12c] ss:$16 sps:$4 sm:$0xff]   ;;  %v4785_v12 = vld [vmem:[#allocation3 + $0x120] ss:$16 sps:$4 sm:$0xff]   ;;  %v4788_v13 = vld [vmem:[#allocation3 + $0x128] ss:$16 sps:$4 sm:$0xff]  }
  0x2c   :  { %v4796_v16 = vld [vmem:[#allocation3 + $0x14c] ss:$16 sps:$4 sm:$0xff]   ;;  %v4791_v17 = vld [vmem:[#allocation3 + $0x140] ss:$16 sps:$4 sm:$0xff]   ;;  %v4794_v18 = vld [vmem:[#allocation3 + $0x148] ss:$16 sps:$4 sm:$0xff]  }
  0x2d   :  { %v4799_v19 = vld [vmem:[#allocation3 + $0x164] ss:$16 sps:$4 sm:$0xff]   ;;  %v4802_v20 = vld [vmem:[#allocation3 + $0x16c] ss:$16 sps:$4 sm:$0xff]   ;;  %v4797_v21 = vld [vmem:[#allocation3 + $0x160] ss:$16 sps:$4 sm:$0xff]  }
  0x2e   :  { %v4805_v23 = vld [vmem:[#allocation3 + $0x184] ss:$16 sps:$4 sm:$0xff]   ;;  %v4808_v25 = vld [vmem:[#allocation3 + $0x18c] ss:$16 sps:$4 sm:$0xff]   ;;  %v4803_v26 = vld [vmem:[#allocation3 + $0x180] ss:$16 sps:$4 sm:$0xff]  }
  0x2f   :  { %4049 = vmatmul.mubr.msk.bf16.gmra.mrb[8].mxu0 %vm241_vm1, %v5145_v22  ;;  %4057 = vmatmul.mubr.msk.bf16.gmra.mrb[8].mxu1 %vm241_vm1, %v5153_v24  ;;  %v4806_v27 = vld [vmem:[#allocation3 + $0x188] ss:$16 sps:$4 sm:$0xff]  }
  0x30   :  { %371 = vmatprep.mubr.bf16.mxu0 %v5022_v1  ;;  %451 = vmatprep.mubr.bf16.mxu1 %v5022_v1 }
  0x37   :  { %4050 = vmatmul.mubr.msk.bf16.gmra.mrb[12].mxu0 %vm241_vm1, %v5165_v28  ;;  %4058 = vmatmul.mubr.msk.bf16.gmra.mrb[12].mxu1 %vm241_vm1, %v5170_v29 }
  0x38   :  { %381 = vmatprep.mubr.bf16.mxu0 %v5022_v1  ;;  %461 = vmatprep.mubr.bf16.mxu1 %v5022_v1 }
  0x3f   :  { %4051 = vmatmul.mubr.msk.bf16.gmra.mrb[16].mxu0 %vm241_vm1, %v5181_v30  ;;  %4059 = vmatmul.mubr.msk.bf16.gmra.mrb[16].mxu1 %vm241_vm1, %v5186_v31 }
  0x40   :  { %391 = vmatprep.mubr.bf16.mxu0 %v5022_v1  ;;  %471 = vmatprep.mubr.bf16.mxu1 %v5022_v1 }
  0x47   :  { %4052 = vmatmul.mubr.msk.bf16.gmra.mrb[20].mxu0 %vm241_vm1, %v5197_v32  ;;  %4060 = vmatmul.mubr.msk.bf16.gmra.mrb[20].mxu1 %vm241_vm1, %v5202_v33 }
  0x48   :  { %401 = vmatprep.mubr.bf16.mxu0 %v5022_v1  ;;  %481 = vmatprep.mubr.bf16.mxu1 %v5022_v1 }
  0x4f   :  { %4053 = vmatmul.mubr.msk.bf16.gmra.mrb[24].mxu0 %vm241_vm1, %v5213_v34  ;;  %4061 = vmatmul.mubr.msk.bf16.gmra.mrb[24].mxu1 %vm241_vm1, %v5218_v35 }
  0x50   :  { %411 = vmatprep.mubr.bf16.mxu0 %v5022_v1  ;;  %491 = vmatprep.mubr.bf16.mxu1 %v5022_v1 }
  0x57   :  { %4054 = vmatmul.mubr.msk.bf16.gmra.mrb[28].mxu0 %vm241_vm1, %v5229_v36  ;;  %4062 = vmatmul.mubr.msk.bf16.gmra.mrb[28].mxu1 %vm241_vm1, %v5234_v37 }
  0x58   :  { %534 = vmatprep.mubr.bf16.mxu1 %v5022_v1  ;;  %727 = vmatprep.mubr.bf16.mxu0 %v5022_v1 }
  0x5f   :  { %4064 = vmatmul.mubr.msk.bf16.vlgmr.msra.gmra.mrb[32].mxu1 %vm241_vm1, %v5095_v8  ;;  %4081 = vmatmul.mubr.msk.bf16.vlgmr.msra.gmra.mrb[32].mxu0 %vm241_vm1, %v5095_v8  ;;  %v4782_v8 = vld [vmem:[#allocation3 + $0x108] ss:$16 sps:$4 sm:$0xff]  }
  0x60   :  { %2313 = vmatpush1.bf16.msra.mxu1 %v4731_v38  ;;  %2892 = vmatpush1.bf16.msra.mxu0 %v4734_v39  ;;  %v4812_v38 = vld [vmem:[#allocation3 + $0x1a8] ss:$16 sps:$4 sm:$0xff]   ;;  %v4817_v39 = vld [vmem:[#allocation3 + $0x1c4] ss:$16 sps:$4 sm:$0xff]  }
  0x61   :  { %544 = vmatprep.mubr.bf16.mxu1 %v5022_v1  ;;  %737 = vmatprep.mubr.bf16.mxu0 %v5022_v1 }
  0x62   :  { %2314 = vmatprep.subr.bf16.mxu1 %v4739_v40  ;;  %2893 = vmatprep.subr.bf16.mxu0 %v4742_v41  ;;  %v4820_v40 = vld [vmem:[#allocation3 + $0x1cc] ss:$16 sps:$4 sm:$0xff]   ;;  %v4815_v41 = vld [vmem:[#allocation3 + $0x1c0] ss:$16 sps:$4 sm:$0xff]  }
  0x64   :  { %2315 = vmatpush1.bf16.msra.mxu1 %v4737_v42  ;;  %2894 = vmatpush1.bf16.msra.mxu0 %v4740_v43  ;;  %v4818_v42 = vld [vmem:[#allocation3 + $0x1c8] ss:$16 sps:$4 sm:$0xff]   ;;  %v4823_v43 = vld [vmem:[#allocation3 + $0x1e4] ss:$16 sps:$4 sm:$0xff]  }
  0x65   :  { %2316 = vmatprep.subr.bf16.mxu1 %v4745_v44  ;;  %2895 = vmatprep.subr.bf16.mxu0 %v4748_v45  ;;  %v4821_v44 = vld [vmem:[#allocation3 + $0x1e0] ss:$16 sps:$4 sm:$0xff]   ;;  %v4824_v45 = vld [vmem:[#allocation3 + $0x1e8] ss:$16 sps:$4 sm:$0xff]  }
  0x67   :  { %4065 = vmatmul.mubr.msk.bf16.gmra.mrb[36].mxu1 %vm241_vm1, %v5123_v14  ;;  %4082 = vmatmul.mubr.msk.bf16.gmra.mrb[36].mxu0 %vm241_vm1, %v5123_v14  ;;  %v4793_v14 = vld [vmem:[#allocation3 + $0x144] ss:$16 sps:$4 sm:$0xff]  }
  0x68   :  { %554 = vmatprep.mubr.bf16.mxu1 %v5022_v1  ;;  %747 = vmatprep.mubr.bf16.mxu0 %v5022_v1 }
  0x69   :  { %2317 = vmatpush1.bf16.msra.mxu1 %v4743_v46  ;;  %2896 = vmatpush1.bf16.msra.mxu0 %v4746_v47  ;;  %v4829_v46 = vld [vmem:[#allocation3 + $0x204] ss:$16 sps:$4 sm:$0xff]   ;;  %v4832_v47 = vld [vmem:[#allocation3 + $0x20c] ss:$16 sps:$4 sm:$0xff]  }
  0x6a   :  { %2318 = vmatprep.subr.bf16.mxu1 %v4751_v48  ;;  %2897 = vmatprep.subr.bf16.mxu0 %v4754_v49 }
  0x6d   :  { %2319 = vmatpush1.bf16.msra.mxu1 %v4749_v50  ;;  %2898 = vmatpush1.bf16.msra.mxu0 %v4752_v51 }
  0x6e   :  { %2320 = vmatprep.subr.bf16.mxu1 %v4757_v52  ;;  %2899 = vmatprep.subr.bf16.mxu0 %v4760_v53 }
  0x6f   :  { %4066 = vmatmul.mubr.msk.bf16.gmra.mrb[40].mxu1 %vm241_vm1, %v5145_v22  ;;  %4083 = vmatmul.mubr.msk.bf16.gmra.mrb[40].mxu0 %vm241_vm1, %v5145_v22  ;;  %v4800_v22 = vld [vmem:[#allocation3 + $0x168] ss:$16 sps:$4 sm:$0xff]  }
  0x70   :  { %564 = vmatprep.mubr.bf16.mxu1 %v5022_v1  ;;  %757 = vmatprep.mubr.bf16.mxu0 %v5022_v1 }
  0x71   :  { %2321 = vmatpush1.bf16.msra.mxu1 %v4755_v54  ;;  %2900 = vmatpush1.bf16.msra.mxu0 %v4758_v55 }
  0x72   :  { %2322 = vmatprep.subr.bf16.mxu1 %v4763_v56  ;;  %2901 = vmatprep.subr.bf16.mxu0 %v4766_v57 }
  0x75   :  { %2323 = vmatpush1.bf16.msra.mxu1 %v4761_v58  ;;  %2902 = vmatpush1.bf16.msra.mxu0 %v4764_v59 }
  0x76   :  { %2324 = vmatprep.subr.bf16.mxu1 %v4769_v60  ;;  %2903 = vmatprep.subr.bf16.mxu0 %v4772_v61 }
  0x77   :  { %4067 = vmatmul.mubr.msk.bf16.gmra.mrb[44].mxu1 %vm241_vm1, %v5165_v28  ;;  %4084 = vmatmul.mubr.msk.bf16.gmra.mrb[44].mxu0 %vm241_vm1, %v5165_v28  ;;  %v4811_v28 = vld [vmem:[#allocation3 + $0x1a4] ss:$16 sps:$4 sm:$0xff]  }
  0x78   :  { %574 = vmatprep.mubr.bf16.mxu1 %v5022_v1  ;;  %767 = vmatprep.mubr.bf16.mxu0 %v5022_v1 }
  0x79   :  { %2325 = vmatpush1.bf16.msra.mxu1 %v4767_v62  ;;  %2904 = vmatpush1.bf16.msra.mxu0 %v4770_v63 }
  0x7a   :  { %2326 = vmatprep.subr.bf16.mxu1 %v4775_v0  ;;  %2905 = vmatprep.subr.bf16.mxu0 %v4778_v2 }
  0x7d   :  { %2327 = vmatpush1.bf16.msra.mxu1 %v4773_v3  ;;  %2906 = vmatpush1.bf16.msra.mxu0 %v4776_v4 }
  0x7e   :  { %2328 = vmatprep.subr.bf16.mxu1 %v4781_v5  ;;  %2907 = vmatprep.subr.bf16.mxu0 %v4784_v6 }
  0x7f   :  { %4068 = vmatmul.mubr.msk.bf16.gmra.mrb[48].mxu1 %vm241_vm1, %v5181_v30  ;;  %4085 = vmatmul.mubr.msk.bf16.gmra.mrb[48].mxu0 %vm241_vm1, %v5181_v30  ;;  %v4814_v30 = vld [vmem:[#allocation3 + $0x1ac] ss:$16 sps:$4 sm:$0xff]  }
  0x80   :  { %584 = vmatprep.mubr.bf16.mxu1 %v5022_v1  ;;  %777 = vmatprep.mubr.bf16.mxu0 %v5022_v1 }
  0x81   :  { %2329 = vmatpush1.bf16.msra.mxu1 %v4779_v7  ;;  %2908 = vmatpush1.bf16.msra.mxu0 %v4782_v8 }
  0x82   :  { %2330 = vmatprep.subr.bf16.mxu1 %v4787_v10  ;;  %2909 = vmatprep.subr.bf16.mxu0 %v4790_v11  ;;  %v4827_v11 = vld [vmem:[#allocation3 + $0x200] ss:$16 sps:$4 sm:$0xff]  }
  0x85   :  { %2331 = vmatpush1.bf16.msra.mxu1 %v4785_v12  ;;  %2910 = vmatpush1.bf16.msra.mxu0 %v4788_v13  ;;  %v4830_v12 = vld [vmem:[#allocation3 + $0x208] ss:$16 sps:$4 sm:$0xff]  }
  0x86   :  { %2332 = vmatprep.subr.bf16.mxu1 %v4793_v14  ;;  %2911 = vmatprep.subr.bf16.mxu0 %v4796_v16 }
  0x87   :  { %4069 = vmatmul.mubr.msk.bf16.gmra.mrb[52].mxu1 %vm241_vm1, %v5197_v32  ;;  %4086 = vmatmul.mubr.msk.bf16.gmra.mrb[52].mxu0 %vm241_vm1, %v5197_v32  ;;  %v4809_v32 = vld [vmem:[#allocation3 + $0x1a0] ss:$16 sps:$4 sm:$0xff]  }
  0x88   :  { %594 = vmatprep.mubr.bf16.mxu1 %v5022_v1  ;;  %787 = vmatprep.mubr.bf16.mxu0 %v5022_v1 }
  0x89   :  { %2333 = vmatpush1.bf16.msra.mxu1 %v4791_v17  ;;  %2912 = vmatpush1.bf16.msra.mxu0 %v4794_v18  ;;  %v4835_v18 = vld [vmem:[#allocation3 + $0x224] ss:$16 sps:$4 sm:$0xff]  }
  0x8a   :  { %2334 = vmatprep.subr.bf16.mxu1 %v4799_v19  ;;  %2913 = vmatprep.subr.bf16.mxu0 %v4802_v20  ;;  %v4838_v19 = vld [vmem:[#allocation3 + $0x22c] ss:$16 sps:$4 sm:$0xff]  }
  0x8d   :  { %2335 = vmatpush1.bf16.msra.mxu1 %v4797_v21  ;;  %2914 = vmatpush1.bf16.msra.mxu0 %v4800_v22 }
  0x8e   :  { %2336 = vmatprep.subr.bf16.mxu1 %v4805_v23  ;;  %2915 = vmatprep.subr.bf16.mxu0 %v4808_v25 }
  0x8f   :  { %4070 = vmatmul.mubr.msk.bf16.gmra.mrb[56].mxu1 %vm241_vm1, %v5213_v34  ;;  %4087 = vmatmul.mubr.msk.bf16.gmra.mrb[56].mxu0 %vm241_vm1, %v5213_v34  ;;  %v4826_v34 = vld [vmem:[#allocation3 + $0x1ec] ss:$16 sps:$4 sm:$0xff]  }
  0x90   :  { %604 = vmatprep.mubr.bf16.mxu1 %v5022_v1  ;;  %797 = vmatprep.mubr.bf16.mxu0 %v5022_v1 }
  0x91   :  { %2337 = vmatpush1.bf16.msra.mxu1 %v4803_v26  ;;  %2916 = vmatpush1.bf16.msra.mxu0 %v4806_v27 }
  0x92   :  { %2338 = vmatprep.subr.bf16.mxu1 %v4811_v28  ;;  %2917 = vmatprep.subr.bf16.mxu0 %v4814_v30  ;;  %v4833_v30 = vld [vmem:[#allocation3 + $0x220] ss:$16 sps:$4 sm:$0xff]  }
  0x95   :  { %2339 = vmatpush1.bf16.msra.mxu1 %v4809_v32  ;;  %2918 = vmatpush1.bf16.msra.mxu0 %v4812_v38 }
  0x96   :  { %2340 = vmatprep.subr.bf16.mxu1 %v4817_v39  ;;  %2919 = vmatprep.subr.bf16.mxu0 %v4820_v40 }
  0x97   :  { %4071 = vmatmul.mubr.msk.bf16.gmra.mrb[60].mxu1 %vm241_vm1, %v5229_v36  ;;  %4088 = vmatmul.mubr.msk.bf16.gmra.mrb[60].mxu0 %vm241_vm1, %v5229_v36 }
  0x98   :  { %614 = vmatprep.mubr.bf16.mxu1 %v5022_v1  ;;  %807 = vmatprep.mubr.bf16.mxu0 %v5022_v1 }
  0x99   :  { %2341 = vmatpush1.bf16.msra.mxu1 %v4815_v41  ;;  %2920 = vmatpush1.bf16.msra.mxu0 %v4818_v42  ;;  %v4836_v41 = vld [vmem:[#allocation3 + $0x228] ss:$16 sps:$4 sm:$0xff]   ;;  %v4841_v42 = vld [vmem:[#allocation3 + $0x244] ss:$16 sps:$4 sm:$0xff]  }
  0x9a   :  { %2342 = vmatprep.subr.bf16.mxu1 %v4823_v43  ;;  %2921 = vmatprep.subr.bf16.mxu0 %v4826_v34 }
  0x9d   :  { %2343 = vmatpush1.bf16.msra.mxu1 %v4821_v44  ;;  %2922 = vmatpush1.bf16.msra.mxu0 %v4824_v45 }
  0x9e   :  { %2505 = vmatprep.subr.bf16.mxu1 %v4829_v46  ;;  %3084 = vmatprep.subr.bf16.mxu0 %v4832_v47  ;;  %v4844_v46 = vld [vmem:[#allocation3 + $0x24c] ss:$16 sps:$4 sm:$0xff]  }
  0x9f   :  { %4072 = vmatmul.mubr.msk.bf16.gmra.mrb[64].mxu1 %vm241_vm1, %v5100_v9  ;;  %4089 = vmatmul.mubr.msk.bf16.gmra.mrb[64].mxu0 %vm241_vm1, %v5100_v9  ;;  %v86_v9 = vlaneseq }
  0xa0   :  { %624 = vmatprep.mubr.bf16.mxu1 %v5022_v1  ;;  %817 = vmatprep.mubr.bf16.mxu0 %v5022_v1 }
  0xa7   :  { %4073 = vmatmul.mubr.msk.bf16.gmra.mrb[68].mxu1 %vm241_vm1, %v5128_v15  ;;  %4090 = vmatmul.mubr.msk.bf16.gmra.mrb[68].mxu0 %vm241_vm1, %v5128_v15  ;;  %v5336_v15 = vshrl.u32 %v86_v9, 7 }
  0xa8   :  { %634 = vmatprep.mubr.bf16.mxu1 %v5022_v1  ;;  %827 = vmatprep.mubr.bf16.mxu0 %v5022_v1 }
  0xaf   :  { %4074 = vmatmul.mubr.msk.bf16.gmra.mrb[72].mxu1 %vm241_vm1, %v5153_v24  ;;  %4091 = vmatmul.mubr.msk.bf16.gmra.mrb[72].mxu0 %vm241_vm1, %v5153_v24  ;;  %v5339_v24 = vsub.s32 0, %v5336_v15 }
  0xb0   :  { %644 = vmatprep.mubr.bf16.mxu1 %v5022_v1  ;;  %837 = vmatprep.mubr.bf16.mxu0 %v5022_v1 }
  0xb1   :  { %6419 = vst [vmem:[#allocation6_spill] sm:$0xff] %v5339_v24 }
  0xb7   :  { %4075 = vmatmul.mubr.msk.bf16.gmra.mrb[76].mxu1 %vm241_vm1, %v5170_v29  ;;  %4092 = vmatmul.mubr.msk.bf16.gmra.mrb[76].mxu0 %vm241_vm1, %v5170_v29  ;;  %v5344_v29 = vld [vmem:[%s6397_s2] sm:$0x3f] }
  0xb8   :  { %654 = vmatprep.mubr.bf16.mxu1 %v5022_v1  ;;  %847 = vmatprep.mubr.bf16.mxu0 %v5022_v1 }
  0xbf   :  { %4076 = vmatmul.mubr.msk.bf16.gmra.mrb[80].mxu1 %vm241_vm1, %v5186_v31  ;;  %4093 = vmatmul.mubr.msk.bf16.gmra.mrb[80].mxu0 %vm241_vm1, %v5186_v31  ;;  %v5347_v31 = vsub.s32 1, %v5336_v15 }
  0xc0   :  { %664 = vmatprep.mubr.bf16.mxu1 %v5022_v1  ;;  %857 = vmatprep.mubr.bf16.mxu0 %v5022_v1 }
  0xc1   :  { %6420 = vst [vmem:[#allocation7_spill] sm:$0xff] %v5347_v31 }
  0xc7   :  { %4077 = vmatmul.mubr.msk.bf16.gmra.mrb[84].mxu1 %vm241_vm1, %v5202_v33  ;;  %4094 = vmatmul.mubr.msk.bf16.gmra.mrb[84].mxu0 %vm241_vm1, %v5202_v33  ;;  %v5355_v33 = vrot.slane %v5344_v29, %v5347_v31 }
  0xc8   :  { %674 = vmatprep.mubr.bf16.mxu1 %v5022_v1  ;;  %867 = vmatprep.mubr.bf16.mxu0 %v5022_v1 }
  0xcf   :  { %4078 = vmatmul.mubr.msk.bf16.gmra.mrb[88].mxu1 %vm241_vm1, %v5218_v35  ;;  %4095 = vmatmul.mubr.msk.bf16.gmra.mrb[88].mxu0 %vm241_vm1, %v5218_v35 }
  0xd0   :  { %684 = vmatprep.mubr.bf16.mxu1 %v5022_v1  ;;  %877 = vmatprep.mubr.bf16.mxu0 %v5022_v1  ;;  %v5351_v1 = vrot.slane %v5344_v29, %v5339_v24  ;;  %v4952_v24 = vld [vmem:[#allocation3 + $0x48c] ss:$16 sps:$4 sm:$0xff]  }
  0xd7   :  { %4079 = vmatmul.mubr.msk.bf16.gmra.mrb[92].mxu1 %vm241_vm1, %v5234_v37  ;;  %4096 = vmatmul.mubr.msk.bf16.gmra.mrb[92].mxu0 %vm241_vm1, %v5234_v37 }
  0xf2   :  { %v343_v35 = vpop.f32.mrb[0].mxu0  ;;  %v423_v36 = vpop.f32.mrb[0].mxu1 }
  0xf3   :  { %v344_v37 = vadd.f32 %v343_v35, %v5351_v1  ;;  %v345_v48 = vpop.f32.mrb[1].mxu0  ;;  %v424_v49 = vadd.f32 %v423_v36, %v5351_v1  ;;  %v425_v50 = vpop.f32.mrb[1].mxu1 }
  0xf4   :  { %v346_v51 = vadd.f32 %v345_v48, %v5355_v33  ;;  %v347_v52 = vpop.f32.mrb[2].mxu0  ;;  %v426_v53 = vadd.f32 %v425_v50, %v5355_v33  ;;  %v427_v54 = vpop.f32.mrb[2].mxu1 }
  0xf5   :  { %v348_v55 = vadd.f32 %v347_v52, %v5351_v1  ;;  %v349_v56 = vpop.f32.mrb[3].mxu0  ;;  %v984_v57 = vmax.f32 %v424_v49, 0.0  ;;  %v428_v58 = vadd.f32 %v427_v54, %v5351_v1  ;;  %v429_v59 = vpop.f32.mrb[3].mxu1  ;;  %v888_v63 = vmax.f32 %v344_v37, 0.0  ;;  %v4842_v52 = vld [vmem:[#allocation3 + $0x248] ss:$16 sps:$4 sm:$0xff]  }
  0xf6   :  { %v350_v60 = vadd.f32 %v349_v56, %v5355_v33  ;;  %v985_v61 = vmax.f32 %v426_v53, 0.0  ;;  %v430_v62 = vadd.f32 %v429_v59, %v5355_v33  ;;  %v889_v3 = vmax.f32 %v346_v51, 0.0  ;;  %v4839_v51 = vld [vmem:[#allocation3 + $0x240] ss:$16 sps:$4 sm:$0xff]  }
  0xf7   :  { %v894_v0 = vmax.f32 %v348_v55, 0.0  ;;  %v990_v2 = vmax.f32 %v428_v58, 0.0  ;;  %v4850_v58 = vld [vmem:[#allocation3 + $0x26c] ss:$16 sps:$4 sm:$0xff]  }
  0xf8   :  { %v895_v4 = vmax.f32 %v350_v60, 0.0  ;;  %v991_v5 = vmax.f32 %v430_v62, 0.0 }
  0xf9   :  { %v1080_v6 = vpack.c.bf16 %v894_v0, %v888_v63  ;;  %v5365_v7 = vpack.c.bf16 %v990_v2, %v984_v57  ;;  %v4847_v57 = vld [vmem:[#allocation3 + $0x264] ss:$16 sps:$4 sm:$0xff]  }
  0xfa   :  { %v1081_v8 = vpack.c.bf16 %v895_v4, %v889_v3  ;;  %v353_v10 = vpop.f32.mrb[4].mxu0  ;;  %v5367_v13 = vpack.c.bf16 %v991_v5, %v985_v61  ;;  %v433_v14 = vpop.f32.mrb[4].mxu1  ;;  %v4845_v4 = vld [vmem:[#allocation3 + $0x260] ss:$16 sps:$4 sm:$0xff]  }
  0xfb   :  { %v354_v16 = vadd.f32 %v353_v10, %v5351_v1  ;;  %v355_v17 = vpop.f32.mrb[5].mxu0  ;;  %v434_v20 = vadd.f32 %v433_v14, %v5351_v1  ;;  %v435_v21 = vpop.f32.mrb[5].mxu1 }
  0xfc   :  { %v356_v22 = vadd.f32 %v355_v17, %v5355_v33  ;;  %v357_v23 = vpop.f32.mrb[6].mxu0  ;;  %2344 = vmatprep.mubr.bf16.mxu1 %v1081_v8  ;;  %2923 = vmatprep.mubr.bf16.mxu0 %v1081_v8  ;;  %v436_v25 = vadd.f32 %v435_v21, %v5355_v33  ;;  %v437_v26 = vpop.f32.mrb[6].mxu1 }
  0xfd   :  { %v358_v27 = vadd.f32 %v357_v23, %v5351_v1  ;;  %v359_v28 = vpop.f32.mrb[7].mxu0  ;;  %2345 = vmatmul.mubr.bf16.vlgmr.msra.gmra.mrb[96].mxu1 %v1080_v6  ;;  %2924 = vmatmul.mubr.bf16.vlgmr.msra.gmra.mrb[96].mxu0 %v1080_v6  ;;  %v996_v32 = vmax.f32 %v434_v20, 0.0  ;;  %v438_v38 = vadd.f32 %v437_v26, %v5351_v1  ;;  %v439_v39 = vpop.f32.mrb[7].mxu1  ;;  %v900_v44 = vmax.f32 %v354_v16, 0.0  ;;  %v4856_v20 = vld [vmem:[#allocation3 + $0x28c] ss:$16 sps:$4 sm:$0xff]  }
  0xfe   :  { %v360_v40 = vadd.f32 %v359_v28, %v5355_v33  ;;  %2506 = vmatpush1.bf16.msra.mxu1 %v4827_v11  ;;  %3085 = vmatpush1.bf16.msra.mxu0 %v4830_v12  ;;  %v997_v43 = vmax.f32 %v436_v25, 0.0  ;;  %v440_v34 = vadd.f32 %v439_v39, %v5355_v33  ;;  %v901_v9 = vmax.f32 %v356_v22, 0.0  ;;  %v4848_v11 = vld [vmem:[#allocation3 + $0x268] ss:$16 sps:$4 sm:$0xff]   ;;  %v4853_v12 = vld [vmem:[#allocation3 + $0x284] ss:$16 sps:$4 sm:$0xff]  }
  0xff   :  { %v906_v45 = vmax.f32 %v358_v27, 0.0  ;;  %2507 = vmatprep.subr.bf16.mxu1 %v4835_v18  ;;  %3086 = vmatprep.subr.bf16.mxu0 %v4838_v19  ;;  %v1002_v47 = vmax.f32 %v438_v38, 0.0 }
 0x100   :  { %v907_v35 = vmax.f32 %v360_v40, 0.0  ;;  %v1003_v36 = vmax.f32 %v440_v34, 0.0 }
 0x101   :  { %v1086_v37 = vpack.c.bf16 %v906_v45, %v900_v44  ;;  %v5377_v48 = vpack.c.bf16 %v1002_v47, %v996_v32  ;;  %v4854_v32 = vld [vmem:[#allocation3 + $0x288] ss:$16 sps:$4 sm:$0xff]   ;;  %v4862_v44 = vld [vmem:[#allocation3 + $0x2ac] ss:$16 sps:$4 sm:$0xff]  }
 0x102   :  { %v1087_v49 = vpack.c.bf16 %v907_v35, %v901_v9  ;;  %v363_v50 = vpop.f32.mrb[8].mxu0  ;;  %2508 = vmatpush1.bf16.msra.mxu1 %v4833_v30  ;;  %3087 = vmatpush1.bf16.msra.mxu0 %v4836_v41  ;;  %v5379_v53 = vpack.c.bf16 %v1003_v36, %v997_v43  ;;  %v443_v54 = vpop.f32.mrb[8].mxu1  ;;  %v4851_v30 = vld [vmem:[#allocation3 + $0x280] ss:$16 sps:$4 sm:$0xff]  }
 0x103   :  { %v364_v55 = vadd.f32 %v363_v50, %v5351_v1  ;;  %v365_v56 = vpop.f32.mrb[9].mxu0  ;;  %2509 = vmatprep.subr.bf16.mxu1 %v4841_v42  ;;  %3088 = vmatprep.subr.bf16.mxu0 %v4844_v46  ;;  %v444_v59 = vadd.f32 %v443_v54, %v5351_v1  ;;  %v445_v60 = vpop.f32.mrb[9].mxu1  ;;  %v4859_v42 = vld [vmem:[#allocation3 + $0x2a4] ss:$16 sps:$4 sm:$0xff]  }
 0x104   :  { %v366_v61 = vadd.f32 %v365_v56, %v5355_v33  ;;  %v367_v62 = vpop.f32.mrb[10].mxu0  ;;  %2354 = vmatprep.mubr.bf16.mxu1 %v1087_v49  ;;  %2933 = vmatprep.mubr.bf16.mxu0 %v1087_v49  ;;  %v446_v63 = vadd.f32 %v445_v60, %v5355_v33  ;;  %v447_v0 = vpop.f32.mrb[10].mxu1 }
 0x105   :  { %v368_v2 = vadd.f32 %v367_v62, %v5351_v1  ;;  %v369_v3 = vpop.f32.mrb[11].mxu0  ;;  %2355 = vmatmul.mubr.bf16.gmra.mrb[100].mxu1 %v1086_v37  ;;  %2934 = vmatmul.mubr.bf16.gmra.mrb[100].mxu0 %v1086_v37  ;;  %v1008_v5 = vmax.f32 %v444_v59, 0.0  ;;  %v448_v6 = vadd.f32 %v447_v0, %v5351_v1  ;;  %v449_v8 = vpop.f32.mrb[11].mxu1  ;;  %v912_v17 = vmax.f32 %v364_v55, 0.0  ;;  %v4857_v37 = vld [vmem:[#allocation3 + $0x2a0] ss:$16 sps:$4 sm:$0xff]  }
 0x106   :  { %v370_v10 = vadd.f32 %v369_v3, %v5355_v33  ;;  %2510 = vmatpush1.bf16.msra.mxu1 %v4839_v51  ;;  %3089 = vmatpush1.bf16.msra.mxu0 %v4842_v52  ;;  %v1009_v14 = vmax.f32 %v446_v63, 0.0  ;;  %v450_v16 = vadd.f32 %v449_v8, %v5355_v33  ;;  %v913_v21 = vmax.f32 %v366_v61, 0.0  ;;  %v4860_v55 = vld [vmem:[#allocation3 + $0x2a8] ss:$16 sps:$4 sm:$0xff]   ;;  %v4868_v61 = vld [vmem:[#allocation3 + $0x2cc] ss:$16 sps:$4 sm:$0xff]  }
 0x107   :  { %v918_v18 = vmax.f32 %v368_v2, 0.0  ;;  %2511 = vmatprep.subr.bf16.mxu1 %v4847_v57  ;;  %3090 = vmatprep.subr.bf16.mxu0 %v4850_v58  ;;  %v1014_v19 = vmax.f32 %v448_v6, 0.0  ;;  %v4865_v57 = vld [vmem:[#allocation3 + $0x2c4] ss:$16 sps:$4 sm:$0xff]   ;;  %v4863_v8 = vld [vmem:[#allocation3 + $0x2c0] ss:$16 sps:$4 sm:$0xff]  }
 0x108   :  { %v919_v22 = vmax.f32 %v370_v10, 0.0  ;;  %v1015_v23 = vmax.f32 %v450_v16, 0.0 }
 0x109   :  { %v1092_v25 = vpack.c.bf16 %v918_v18, %v912_v17  ;;  %v5389_v26 = vpack.c.bf16 %v1014_v19, %v1008_v5  ;;  %v4871_v18 = vld [vmem:[#allocation3 + $0x2e4] ss:$16 sps:$4 sm:$0xff]   ;;  %v4874_v19 = vld [vmem:[#allocation3 + $0x2ec] ss:$16 sps:$4 sm:$0xff]  }
 0x10a   :  { %v1093_v27 = vpack.c.bf16 %v919_v22, %v913_v21  ;;  %v373_v28 = vpop.f32.mrb[12].mxu0  ;;  %2512 = vmatpush1.bf16.msra.mxu1 %v4845_v4  ;;  %3091 = vmatpush1.bf16.msra.mxu0 %v4848_v11  ;;  %v5391_v38 = vpack.c.bf16 %v1015_v23, %v1009_v14  ;;  %v453_v39 = vpop.f32.mrb[12].mxu1  ;;  %v4866_v11 = vld [vmem:[#allocation3 + $0x2c8] ss:$16 sps:$4 sm:$0xff]  }
 0x10b   :  { %v374_v40 = vadd.f32 %v373_v28, %v5351_v1  ;;  %v375_v41 = vpop.f32.mrb[13].mxu0  ;;  %2513 = vmatprep.subr.bf16.mxu1 %v4853_v12  ;;  %3092 = vmatprep.subr.bf16.mxu0 %v4856_v20  ;;  %v454_v43 = vadd.f32 %v453_v39, %v5351_v1  ;;  %v455_v34 = vpop.f32.mrb[13].mxu1  ;;  %v4869_v39 = vld [vmem:[#allocation3 + $0x2e0] ss:$16 sps:$4 sm:$0xff]  }
 0x10c   :  { %v376_v45 = vadd.f32 %v375_v41, %v5355_v33  ;;  %v377_v46 = vpop.f32.mrb[14].mxu0  ;;  %2364 = vmatprep.mubr.bf16.mxu1 %v1093_v27  ;;  %2943 = vmatprep.mubr.bf16.mxu0 %v1093_v27  ;;  %v456_v47 = vadd.f32 %v455_v34, %v5355_v33  ;;  %v457_v9 = vpop.f32.mrb[14].mxu1  ;;  %v4877_v34 = vld [vmem:[#allocation3 + $0x304] ss:$16 sps:$4 sm:$0xff]  }
 0x10d   :  { %v378_v35 = vadd.f32 %v377_v46, %v5351_v1  ;;  %v379_v36 = vpop.f32.mrb[15].mxu0  ;;  %2365 = vmatmul.mubr.bf16.gmra.mrb[104].mxu1 %v1092_v25  ;;  %2944 = vmatmul.mubr.bf16.gmra.mrb[104].mxu0 %v1092_v25  ;;  %v1020_v49 = vmax.f32 %v454_v43, 0.0  ;;  %v458_v50 = vadd.f32 %v457_v9, %v5351_v1  ;;  %v459_v51 = vpop.f32.mrb[15].mxu1  ;;  %v924_v58 = vmax.f32 %v374_v40, 0.0  ;;  %v4872_v43 = vld [vmem:[#allocation3 + $0x2e8] ss:$16 sps:$4 sm:$0xff]  }
 0x10e   :  { %v380_v52 = vadd.f32 %v379_v36, %v5355_v33  ;;  %2514 = vmatpush1.bf16.msra.mxu1 %v4851_v30  ;;  %3093 = vmatpush1.bf16.msra.mxu0 %v4854_v32  ;;  %v1021_v54 = vmax.f32 %v456_v47, 0.0  ;;  %v460_v56 = vadd.f32 %v459_v51, %v5355_v33  ;;  %v925_v62 = vmax.f32 %v376_v45, 0.0  ;;  %v4880_v47 = vld [vmem:[#allocation3 + $0x30c] ss:$16 sps:$4 sm:$0xff]  }
 0x10f   :  { %v930_v59 = vmax.f32 %v378_v35, 0.0  ;;  %2515 = vmatprep.subr.bf16.mxu1 %v4859_v42  ;;  %v1026_v60 = vmax.f32 %v458_v50, 0.0  ;;  %3094 = vmatprep.subr.bf16.mxu0 %v4862_v44 }
 0x110   :  { %v931_v63 = vmax.f32 %v380_v52, 0.0  ;;  %v1027_v0 = vmax.f32 %v460_v56, 0.0  ;;  %v4878_v56 = vld [vmem:[#allocation3 + $0x308] ss:$16 sps:$4 sm:$0xff]  }
 0x111   :  { %v1098_v2 = vpack.c.bf16 %v930_v59, %v924_v58  ;;  %v5401_v3 = vpack.c.bf16 %v1026_v60, %v1020_v49 }
 0x112   :  { %v1099_v4 = vpack.c.bf16 %v931_v63, %v925_v62  ;;  %v383_v5 = vpop.f32.mrb[16].mxu0  ;;  %2516 = vmatpush1.bf16.msra.mxu1 %v4857_v37  ;;  %v5403_v6 = vpack.c.bf16 %v1027_v0, %v1021_v54  ;;  %3095 = vmatpush1.bf16.msra.mxu0 %v4860_v55  ;;  %v463_v10 = vpop.f32.mrb[16].mxu1  ;;  %v4875_v55 = vld [vmem:[#allocation3 + $0x300] ss:$16 sps:$4 sm:$0xff]   ;;  %v4886_v62 = vld [vmem:[#allocation3 + $0x32c] ss:$16 sps:$4 sm:$0xff]  }
 0x113   :  { %v384_v12 = vadd.f32 %v383_v5, %v5351_v1  ;;  %v385_v14 = vpop.f32.mrb[17].mxu0  ;;  %2517 = vmatprep.subr.bf16.mxu1 %v4865_v57  ;;  %v464_v16 = vadd.f32 %v463_v10, %v5351_v1  ;;  %v465_v17 = vpop.f32.mrb[17].mxu1  ;;  %3096 = vmatprep.subr.bf16.mxu0 %v4868_v61  ;;  %v4883_v61 = vld [vmem:[#allocation3 + $0x324] ss:$16 sps:$4 sm:$0xff]  }
 0x114   :  { %v386_v20 = vadd.f32 %v385_v14, %v5355_v33  ;;  %v387_v21 = vpop.f32.mrb[18].mxu0  ;;  %2374 = vmatprep.mubr.bf16.mxu1 %v1099_v4  ;;  %2953 = vmatprep.mubr.bf16.mxu0 %v1099_v4  ;;  %v466_v22 = vadd.f32 %v465_v17, %v5355_v33  ;;  %v467_v23 = vpop.f32.mrb[18].mxu1  ;;  %v4881_v14 = vld [vmem:[#allocation3 + $0x320] ss:$16 sps:$4 sm:$0xff]  }
 0x115   :  { %v388_v25 = vadd.f32 %v387_v21, %v5351_v1  ;;  %v389_v27 = vpop.f32.mrb[19].mxu0  ;;  %2375 = vmatmul.mubr.bf16.gmra.mrb[108].mxu1 %v1098_v2  ;;  %2954 = vmatmul.mubr.bf16.gmra.mrb[108].mxu0 %v1098_v2  ;;  %v1032_v28 = vmax.f32 %v464_v16, 0.0  ;;  %v468_v30 = vadd.f32 %v467_v23, %v5351_v1  ;;  %v469_v32 = vpop.f32.mrb[19].mxu1  ;;  %v936_v44 = vmax.f32 %v384_v12, 0.0 }
 0x116   :  { %v390_v40 = vadd.f32 %v389_v27, %v5355_v33  ;;  %2518 = vmatpush1.bf16.msra.mxu1 %v4863_v8  ;;  %v1033_v41 = vmax.f32 %v466_v22, 0.0  ;;  %v470_v42 = vadd.f32 %v469_v32, %v5355_v33  ;;  %3097 = vmatpush1.bf16.msra.mxu0 %v4866_v11  ;;  %v937_v9 = vmax.f32 %v386_v20, 0.0  ;;  %v4889_v20 = vld [vmem:[#allocation3 + $0x344] ss:$16 sps:$4 sm:$0xff]  }
 0x117   :  { %v942_v45 = vmax.f32 %v388_v25, 0.0  ;;  %v1038_v46 = vmax.f32 %v468_v30, 0.0  ;;  %2519 = vmatprep.subr.bf16.mxu1 %v4871_v18  ;;  %3098 = vmatprep.subr.bf16.mxu0 %v4874_v19  ;;  %v4884_v19 = vld [vmem:[#allocation3 + $0x328] ss:$16 sps:$4 sm:$0xff]   ;;  %v4892_v25 = vld [vmem:[#allocation3 + $0x34c] ss:$16 sps:$4 sm:$0xff]  }
 0x118   :  { %v943_v35 = vmax.f32 %v390_v40, 0.0  ;;  %v1039_v36 = vmax.f32 %v470_v42, 0.0 }
 0x119   :  { %v1104_v37 = vpack.c.bf16 %v942_v45, %v936_v44  ;;  %v5413_v49 = vpack.c.bf16 %v1038_v46, %v1032_v28  ;;  %v4890_v44 = vld [vmem:[#allocation3 + $0x348] ss:$16 sps:$4 sm:$0xff]  }
 0x11a   :  { %v1105_v50 = vpack.c.bf16 %v943_v35, %v937_v9  ;;  %v393_v51 = vpop.f32.mrb[20].mxu0  ;;  %v5415_v52 = vpack.c.bf16 %v1039_v36, %v1033_v41  ;;  %v473_v54 = vpop.f32.mrb[20].mxu1  ;;  %2520 = vmatpush1.bf16.msra.mxu1 %v4869_v39  ;;  %3099 = vmatpush1.bf16.msra.mxu0 %v4872_v43  ;;  %v4895_v35 = vld [vmem:[#allocation3 + $0x364] ss:$16 sps:$4 sm:$0xff]   ;;  %v4898_v36 = vld [vmem:[#allocation3 + $0x36c] ss:$16 sps:$4 sm:$0xff]  }
 0x11b   :  { %v394_v57 = vadd.f32 %v393_v51, %v5351_v1  ;;  %v395_v58 = vpop.f32.mrb[21].mxu0  ;;  %v474_v59 = vadd.f32 %v473_v54, %v5351_v1  ;;  %v475_v60 = vpop.f32.mrb[21].mxu1  ;;  %2521 = vmatprep.subr.bf16.mxu1 %v4877_v34  ;;  %3100 = vmatprep.subr.bf16.mxu0 %v4880_v47  ;;  %v4887_v34 = vld [vmem:[#allocation3 + $0x340] ss:$16 sps:$4 sm:$0xff]  }
 0x11c   :  { %v396_v63 = vadd.f32 %v395_v58, %v5355_v33  ;;  %v397_v0 = vpop.f32.mrb[22].mxu0  ;;  %2384 = vmatprep.mubr.bf16.mxu1 %v1105_v50  ;;  %2963 = vmatprep.mubr.bf16.mxu0 %v1105_v50  ;;  %v476_v2 = vadd.f32 %v475_v60, %v5355_v33  ;;  %v477_v4 = vpop.f32.mrb[22].mxu1  ;;  %v4893_v60 = vld [vmem:[#allocation3 + $0x360] ss:$16 sps:$4 sm:$0xff]  }
 0x11d   :  { %v398_v5 = vadd.f32 %v397_v0, %v5351_v1  ;;  %v399_v8 = vpop.f32.mrb[23].mxu0  ;;  %2385 = vmatmul.mubr.bf16.gmra.mrb[112].mxu1 %v1104_v37  ;;  %2964 = vmatmul.mubr.bf16.gmra.mrb[112].mxu0 %v1104_v37  ;;  %v1044_v10 = vmax.f32 %v474_v59, 0.0  ;;  %v478_v11 = vadd.f32 %v477_v4, %v5351_v1  ;;  %v479_v12 = vpop.f32.mrb[23].mxu1  ;;  %v948_v21 = vmax.f32 %v394_v57, 0.0  ;;  %v4896_v0 = vld [vmem:[#allocation3 + $0x368] ss:$16 sps:$4 sm:$0xff]  }
 0x11e   :  { %v400_v16 = vadd.f32 %v399_v8, %v5355_v33  ;;  %v1045_v17 = vmax.f32 %v476_v2, 0.0  ;;  %v480_v18 = vadd.f32 %v479_v12, %v5355_v33  ;;  %2522 = vmatpush1.bf16.msra.mxu1 %v4875_v55  ;;  %3101 = vmatpush1.bf16.msra.mxu0 %v4878_v56  ;;  %v949_v27 = vmax.f32 %v396_v63, 0.0  ;;  %v4901_v2 = vld [vmem:[#allocation3 + $0x384] ss:$16 sps:$4 sm:$0xff]  }
 0x11f   :  { %v954_v22 = vmax.f32 %v398_v5, 0.0  ;;  %v1050_v23 = vmax.f32 %v478_v11, 0.0  ;;  %2523 = vmatprep.subr.bf16.mxu1 %v4883_v61  ;;  %3102 = vmatprep.subr.bf16.mxu0 %v4886_v62 }
 0x120   :  { %v955_v28 = vmax.f32 %v400_v16, 0.0  ;;  %v1051_v30 = vmax.f32 %v480_v18, 0.0  ;;  %v5438_v16 = vsub.s32 2, %v5336_v15 }
 0x121   :  { %v1110_v32 = vpack.c.bf16 %v954_v22, %v948_v21  ;;  %v5425_v39 = vpack.c.bf16 %v1050_v23, %v1044_v10  ;;  %v4904_v10 = vld [vmem:[#allocation3 + $0x38c] ss:$16 sps:$4 sm:$0xff]  }
 0x122   :  { %v1111_v40 = vpack.c.bf16 %v955_v28, %v949_v27  ;;  %v403_v41 = vpop.f32.mrb[24].mxu0  ;;  %v5427_v42 = vpack.c.bf16 %v1051_v30, %v1045_v17  ;;  %v483_v43 = vpop.f32.mrb[24].mxu1  ;;  %2524 = vmatpush1.bf16.msra.mxu1 %v4881_v14  ;;  %3103 = vmatpush1.bf16.msra.mxu0 %v4884_v19  ;;  %6421 = vst [vmem:[#allocation8_spill] sm:$0xff] %v5438_v16  ;;  %v5443_v19 = vsub.s32 3, %v5336_v15  ;;  %v4899_v27 = vld [vmem:[#allocation3 + $0x380] ss:$16 sps:$4 sm:$0xff]  }
 0x123   :  { %v404_v45 = vadd.f32 %v403_v41, %v5351_v1  ;;  %v405_v46 = vpop.f32.mrb[25].mxu0  ;;  %v484_v47 = vadd.f32 %v483_v43, %v5351_v1  ;;  %v485_v9 = vpop.f32.mrb[25].mxu1  ;;  %2525 = vmatprep.subr.bf16.mxu1 %v4889_v20  ;;  %3104 = vmatprep.subr.bf16.mxu0 %v4892_v25  ;;  %v104_v20 = vsub.s32 4, %v5336_v15  ;;  %v4902_v28 = vld [vmem:[#allocation3 + $0x388] ss:$16 sps:$4 sm:$0xff]  }
 0x124   :  { %v406_v37 = vadd.f32 %v405_v46, %v5355_v33  ;;  %v407_v50 = vpop.f32.mrb[26].mxu0  ;;  %2394 = vmatprep.mubr.bf16.mxu1 %v1111_v40  ;;  %2973 = vmatprep.mubr.bf16.mxu0 %v1111_v40  ;;  %v486_v51 = vadd.f32 %v485_v9, %v5355_v33  ;;  %v487_v54 = vpop.f32.mrb[26].mxu1  ;;  %6422 = vst [vmem:[#allocation9_spill] sm:$0xff] %v5443_v19  ;;  %v4907_v43 = vld [vmem:[#allocation3 + $0x3a4] ss:$16 sps:$4 sm:$0xff]   ;;  %v108_v9 = vsub.s32 5, %v5336_v15 }
 0x125   :  { %v408_v55 = vadd.f32 %v407_v50, %v5351_v1  ;;  %v409_v56 = vpop.f32.mrb[27].mxu0  ;;  %2395 = vmatmul.mubr.bf16.gmra.mrb[116].mxu1 %v1110_v32  ;;  %2974 = vmatmul.mubr.bf16.gmra.mrb[116].mxu0 %v1110_v32  ;;  %v1056_v57 = vmax.f32 %v484_v47, 0.0  ;;  %v488_v58 = vadd.f32 %v487_v54, %v5351_v1  ;;  %v489_v59 = vpop.f32.mrb[27].mxu1  ;;  %v960_v4 = vmax.f32 %v404_v45, 0.0 }
 0x126   :  { %v410_v61 = vadd.f32 %v409_v56, %v5355_v33  ;;  %v1057_v62 = vmax.f32 %v486_v51, 0.0  ;;  %v490_v63 = vadd.f32 %v489_v59, %v5355_v33  ;;  %2526 = vmatpush1.bf16.msra.mxu1 %v4887_v34  ;;  %3105 = vmatpush1.bf16.msra.mxu0 %v4890_v44  ;;  %v961_v11 = vmax.f32 %v406_v37, 0.0  ;;  %v4910_v34 = vld [vmem:[#allocation3 + $0x3ac] ss:$16 sps:$4 sm:$0xff]   ;;  %v4908_v59 = vld [vmem:[#allocation3 + $0x3a8] ss:$16 sps:$4 sm:$0xff]  }
 0x127   :  { %v966_v5 = vmax.f32 %v408_v55, 0.0  ;;  %v1062_v8 = vmax.f32 %v488_v58, 0.0  ;;  %2527 = vmatprep.subr.bf16.mxu1 %v4895_v35  ;;  %3106 = vmatprep.subr.bf16.mxu0 %v4898_v36  ;;  %v5457_v54 = vrot.slane %v5344_v29, %v5438_v16  ;;  %v4905_v55 = vld [vmem:[#allocation3 + $0x3a0] ss:$16 sps:$4 sm:$0xff]   ;;  %v5463_v15 = vrot.slane %v5344_v29, %v5443_v19  ;;  %v4949_v16 = vld [vmem:[#allocation3 + $0x484] ss:$16 sps:$4 sm:$0xff]  }
 0x128   :  { %v967_v12 = vmax.f32 %v410_v61, 0.0  ;;  %v1063_v14 = vmax.f32 %v490_v63, 0.0  ;;  %v5466_v63 = vrot.slane %v5344_v29, %v104_v20 }
 0x129   :  { %v1116_v17 = vpack.c.bf16 %v966_v5, %v960_v4  ;;  %v5440_v18 = vpack.c.bf16 %v1062_v8, %v1056_v57  ;;  %v5469_v5 = vrot.slane %v5344_v29, %v108_v9  ;;  %v4914_v29 = vld [vmem:[#allocation3 + $0x3c8] ss:$16 sps:$4 sm:$0xff]  }
 0x12a   :  { %v1117_v21 = vpack.c.bf16 %v967_v12, %v961_v11  ;;  %v413_v22 = vpop.f32.mrb[28].mxu0  ;;  %v5446_v23 = vpack.c.bf16 %v1063_v14, %v1057_v62  ;;  %v493_v25 = vpop.f32.mrb[28].mxu1  ;;  %2528 = vmatpush1.bf16.msra.mxu1 %v4893_v60  ;;  %3107 = vmatpush1.bf16.msra.mxu0 %v4896_v0  ;;  %v4913_v60 = vld [vmem:[#allocation3 + $0x3c4] ss:$16 sps:$4 sm:$0xff]   ;;  %v4916_v0 = vld [vmem:[#allocation3 + $0x3cc] ss:$16 sps:$4 sm:$0xff]  }
 0x12b   :  { %v414_v30 = vadd.f32 %v413_v22, %v5351_v1  ;;  %v415_v32 = vpop.f32.mrb[29].mxu0  ;;  %v494_v40 = vadd.f32 %v493_v25, %v5351_v1  ;;  %v495_v41 = vpop.f32.mrb[29].mxu1  ;;  %2529 = vmatprep.subr.bf16.mxu1 %v4901_v2  ;;  %3108 = vmatprep.subr.bf16.mxu0 %v4904_v10 }
 0x12c   :  { %v416_v44 = vadd.f32 %v415_v32, %v5355_v33  ;;  %v417_v45 = vpop.f32.mrb[30].mxu0  ;;  %2404 = vmatprep.mubr.bf16.mxu1 %v1117_v21  ;;  %2983 = vmatprep.mubr.bf16.mxu0 %v1117_v21  ;;  %v496_v46 = vadd.f32 %v495_v41, %v5355_v33  ;;  %v497_v47 = vpop.f32.mrb[30].mxu1  ;;  %v4919_v41 = vld [vmem:[#allocation3 + $0x3e4] ss:$16 sps:$4 sm:$0xff]  }
 0x12d   :  { %v418_v35 = vadd.f32 %v417_v45, %v5351_v1  ;;  %v419_v36 = vpop.f32.mrb[31].mxu0  ;;  %2405 = vmatmul.mubr.bf16.gmra.mrb[120].mxu1 %v1116_v17  ;;  %2984 = vmatmul.mubr.bf16.gmra.mrb[120].mxu0 %v1116_v17  ;;  %v1068_v37 = vmax.f32 %v494_v40, 0.0  ;;  %v498_v50 = vadd.f32 %v497_v47, %v5351_v1  ;;  %v499_v51 = vpop.f32.mrb[31].mxu1  ;;  %v972_v1 = vmax.f32 %v414_v30, 0.0 }
 0x12e   :  { %v420_v56 = vadd.f32 %v419_v36, %v5355_v33  ;;  %v1069_v57 = vmax.f32 %v496_v46, 0.0  ;;  %v500_v58 = vadd.f32 %v499_v51, %v5355_v33  ;;  %2530 = vmatpush1.bf16.msra.mxu1 %v4899_v27  ;;  %3109 = vmatpush1.bf16.msra.mxu0 %v4902_v28  ;;  %v973_v2 = vmax.f32 %v416_v44, 0.0  ;;  %v4911_v27 = vld [vmem:[#allocation3 + $0x3c0] ss:$16 sps:$4 sm:$0xff]  }
 0x12f   :  { %v978_v61 = vmax.f32 %v418_v35, 0.0  ;;  %v1074_v62 = vmax.f32 %v498_v50, 0.0  ;;  %2531 = vmatprep.subr.bf16.mxu1 %v4907_v43  ;;  %3110 = vmatprep.subr.bf16.mxu0 %v4910_v34  ;;  %v4922_v43 = vld [vmem:[#allocation3 + $0x3ec] ss:$16 sps:$4 sm:$0xff]  }
 0x130   :  { %v979_v4 = vmax.f32 %v420_v56, 0.0  ;;  %v1075_v33 = vmax.f32 %v500_v58, 0.0  ;;  %v4917_v56 = vld [vmem:[#allocation3 + $0x3e0] ss:$16 sps:$4 sm:$0xff]  }
 0x131   :  { %v1122_v8 = vpack.c.bf16 %v978_v61, %v972_v1  ;;  %v5471_v10 = vpack.c.bf16 %v1074_v62, %v1068_v37  ;;  %v4928_v1 = vld [vmem:[#allocation3 + $0x40c] ss:$16 sps:$4 sm:$0xff]  }
 0x132   :  { %v1123_v11 = vpack.c.bf16 %v979_v4, %v973_v2  ;;  %v5473_v12 = vpack.c.bf16 %v1075_v33, %v1069_v57  ;;  %v536_v14 = vpop.f32.mrb[32].mxu1  ;;  %v729_v17 = vpop.f32.mrb[32].mxu0  ;;  %2532 = vmatpush1.bf16.msra.mxu1 %v4905_v55  ;;  %3111 = vmatpush1.bf16.msra.mxu0 %v4908_v59  ;;  %v4920_v57 = vld [vmem:[#allocation3 + $0x3e8] ss:$16 sps:$4 sm:$0xff]  }
 0x133   :  { %v537_v20 = vadd.f32 %v536_v14, %v5457_v54  ;;  %v538_v21 = vpop.f32.mrb[33].mxu1  ;;  %v730_v22 = vadd.f32 %v729_v17, %v5466_v63  ;;  %v731_v25 = vpop.f32.mrb[33].mxu0  ;;  %2533 = vmatprep.subr.bf16.mxu1 %v4913_v60  ;;  %3112 = vmatprep.subr.bf16.mxu0 %v4916_v0  ;;  %v4925_v60 = vld [vmem:[#allocation3 + $0x404] ss:$16 sps:$4 sm:$0xff]  }
 0x134   :  { %2414 = vmatprep.mubr.bf16.mxu1 %v1123_v11  ;;  %2993 = vmatprep.mubr.bf16.mxu0 %v1123_v11  ;;  %v539_v28 = vadd.f32 %v538_v21, %v5463_v15  ;;  %v540_v30 = vpop.f32.mrb[34].mxu1  ;;  %v732_v32 = vadd.f32 %v731_v25, %v5469_v5  ;;  %v733_v40 = vpop.f32.mrb[34].mxu0 }
 0x135   :  { %2415 = vmatmul.mubr.bf16.gmra.mrb[124].mxu1 %v1122_v8  ;;  %2994 = vmatmul.mubr.bf16.gmra.mrb[124].mxu0 %v1122_v8  ;;  %v890_v34 = vmax.f32 %v537_v20, 0.0  ;;  %v541_v44 = vadd.f32 %v540_v30, %v5457_v54  ;;  %v542_v45 = vpop.f32.mrb[35].mxu1  ;;  %v892_v46 = vmax.f32 %v730_v22, 0.0  ;;  %v734_v47 = vadd.f32 %v733_v40, %v5466_v63  ;;  %v735_v9 = vpop.f32.mrb[35].mxu0 }
 0x136   :  { %2424 = vmatprep.mubr.bf16.mxu1 %v5367_v13  ;;  %3003 = vmatprep.mubr.bf16.mxu0 %v5367_v13  ;;  %v891_v35 = vmax.f32 %v539_v28, 0.0  ;;  %v543_v36 = vadd.f32 %v542_v45, %v5463_v15  ;;  %v893_v37 = vmax.f32 %v732_v32, 0.0  ;;  %v736_v50 = vadd.f32 %v735_v9, %v5469_v5 }
 0x137   :  { %v896_v51 = vmax.f32 %v541_v44, 0.0  ;;  %v898_v55 = vmax.f32 %v734_v47, 0.0  ;;  %2534 = vmatpush1.bf16.msra.mxu1 %v4911_v27  ;;  %3113 = vmatpush1.bf16.msra.mxu0 %v4914_v29 }
 0x138   :  { %v897_v58 = vmax.f32 %v543_v36, 0.0  ;;  %v899_v59 = vmax.f32 %v736_v50, 0.0  ;;  %2535 = vmatprep.subr.bf16.mxu1 %v4919_v41  ;;  %3114 = vmatprep.subr.bf16.mxu0 %v4922_v43 }
 0x139   :  { %v5485_v61 = vpack.c.bf16 %v896_v51, %v890_v34  ;;  %v5487_v13 = vpack.c.bf16 %v898_v55, %v892_v46 }
 0x13a   :  { %v5489_v62 = vpack.c.bf16 %v897_v58, %v891_v35  ;;  %v5491_v0 = vpack.c.bf16 %v899_v59, %v893_v37  ;;  %v546_v2 = vpop.f32.mrb[36].mxu1  ;;  %v739_v4 = vpop.f32.mrb[36].mxu0 }
 0x13b   :  { %v547_v33 = vadd.f32 %v546_v2, %v5457_v54  ;;  %v548_v8 = vpop.f32.mrb[37].mxu1  ;;  %v740_v11 = vadd.f32 %v739_v4, %v5466_v63  ;;  %v741_v14 = vpop.f32.mrb[37].mxu0  ;;  %2536 = vmatpush1.bf16.msra.mxu1 %v4917_v56  ;;  %3115 = vmatpush1.bf16.msra.mxu0 %v4920_v57 }
 0x13c   :  { %v549_v17 = vadd.f32 %v548_v8, %v5463_v15  ;;  %v550_v20 = vpop.f32.mrb[38].mxu1  ;;  %v742_v21 = vadd.f32 %v741_v14, %v5469_v5  ;;  %v743_v22 = vpop.f32.mrb[38].mxu0  ;;  %2698 = vmatprep.subr.bf16.mxu1 %v4925_v60  ;;  %3277 = vmatprep.subr.bf16.mxu0 %v4928_v1 }
 0x13d   :  { %2425 = vmatmul.mubr.bf16.gmra.mrb[128].mxu1 %v5365_v7  ;;  %3004 = vmatmul.mubr.bf16.gmra.mrb[128].mxu0 %v5365_v7  ;;  %v902_v25 = vmax.f32 %v547_v33, 0.0  ;;  %v551_v27 = vadd.f32 %v550_v20, %v5457_v54  ;;  %v552_v29 = vpop.f32.mrb[39].mxu1  ;;  %v904_v28 = vmax.f32 %v740_v11, 0.0  ;;  %v744_v30 = vadd.f32 %v743_v22, %v5466_v63  ;;  %v745_v32 = vpop.f32.mrb[39].mxu0 }
 0x13e   :  { %2434 = vmatprep.mubr.bf16.mxu1 %v5379_v53  ;;  %3013 = vmatprep.mubr.bf16.mxu0 %v5379_v53  ;;  %v903_v40 = vmax.f32 %v549_v17, 0.0  ;;  %v553_v41 = vadd.f32 %v552_v29, %v5463_v15  ;;  %v905_v43 = vmax.f32 %v742_v21, 0.0  ;;  %v746_v34 = vadd.f32 %v745_v32, %v5469_v5 }
 0x13f   :  { %v908_v44 = vmax.f32 %v551_v27, 0.0  ;;  %v910_v7 = vmax.f32 %v744_v30, 0.0 }
 0x140   :  { %v909_v45 = vmax.f32 %v553_v41, 0.0  ;;  %v911_v46 = vmax.f32 %v746_v34, 0.0 }
 0x141   :  { %v5505_v47 = vpack.c.bf16 %v908_v44, %v902_v25  ;;  %v5507_v9 = vpack.c.bf16 %v910_v7, %v904_v28 }
 0x142   :  { %v5509_v35 = vpack.c.bf16 %v909_v45, %v903_v40  ;;  %v5511_v36 = vpack.c.bf16 %v911_v46, %v905_v43  ;;  %v556_v37 = vpop.f32.mrb[40].mxu1  ;;  %v749_v53 = vpop.f32.mrb[40].mxu0 }
 0x143   :  { %v557_v50 = vadd.f32 %v556_v37, %v5457_v54  ;;  %v558_v51 = vpop.f32.mrb[41].mxu1  ;;  %v750_v55 = vadd.f32 %v749_v53, %v5466_v63  ;;  %v751_v56 = vpop.f32.mrb[41].mxu0 }
 0x144   :  { %v559_v57 = vadd.f32 %v558_v51, %v5463_v15  ;;  %v560_v58 = vpop.f32.mrb[42].mxu1  ;;  %v752_v59 = vadd.f32 %v751_v56, %v5469_v5  ;;  %v753_v60 = vpop.f32.mrb[42].mxu0 }
 0x145   :  { %2435 = vmatmul.mubr.bf16.gmra.mrb[132].mxu1 %v5377_v48  ;;  %3014 = vmatmul.mubr.bf16.gmra.mrb[132].mxu0 %v5377_v48  ;;  %v914_v1 = vmax.f32 %v557_v50, 0.0  ;;  %v561_v2 = vadd.f32 %v560_v58, %v5457_v54  ;;  %v562_v4 = vpop.f32.mrb[43].mxu1  ;;  %v916_v33 = vmax.f32 %v750_v55, 0.0  ;;  %v754_v8 = vadd.f32 %v753_v60, %v5466_v63  ;;  %v755_v11 = vpop.f32.mrb[43].mxu0 }
 0x146   :  { %2444 = vmatprep.mubr.bf16.mxu1 %v5391_v38  ;;  %3023 = vmatprep.mubr.bf16.mxu0 %v5391_v38  ;;  %v915_v14 = vmax.f32 %v559_v57, 0.0  ;;  %v563_v17 = vadd.f32 %v562_v4, %v5463_v15  ;;  %v917_v20 = vmax.f32 %v752_v59, 0.0  ;;  %v756_v21 = vadd.f32 %v755_v11, %v5469_v5 }
 0x147   :  { %v920_v22 = vmax.f32 %v561_v2, 0.0  ;;  %v922_v48 = vmax.f32 %v754_v8, 0.0 }
 0x148   :  { %v921_v25 = vmax.f32 %v563_v17, 0.0  ;;  %v923_v27 = vmax.f32 %v756_v21, 0.0 }
 0x149   :  { %v5525_v29 = vpack.c.bf16 %v920_v22, %v914_v1  ;;  %v5527_v28 = vpack.c.bf16 %v922_v48, %v916_v33 }
 0x14a   :  { %v5529_v30 = vpack.c.bf16 %v921_v25, %v915_v14  ;;  %v5531_v32 = vpack.c.bf16 %v923_v27, %v917_v20  ;;  %v566_v40 = vpop.f32.mrb[44].mxu1  ;;  %v759_v38 = vpop.f32.mrb[44].mxu0 }
 0x14b   :  { %v567_v41 = vadd.f32 %v566_v40, %v5457_v54  ;;  %v568_v43 = vpop.f32.mrb[45].mxu1  ;;  %v760_v34 = vadd.f32 %v759_v38, %v5466_v63  ;;  %v761_v44 = vpop.f32.mrb[45].mxu0 }
 0x14c   :  { %v569_v7 = vadd.f32 %v568_v43, %v5463_v15  ;;  %v570_v45 = vpop.f32.mrb[46].mxu1  ;;  %v762_v46 = vadd.f32 %v761_v44, %v5469_v5  ;;  %v763_v37 = vpop.f32.mrb[46].mxu0 }
 0x14d   :  { %2445 = vmatmul.mubr.bf16.gmra.mrb[136].mxu1 %v5389_v26  ;;  %3024 = vmatmul.mubr.bf16.gmra.mrb[136].mxu0 %v5389_v26  ;;  %v926_v53 = vmax.f32 %v567_v41, 0.0  ;;  %v571_v50 = vadd.f32 %v570_v45, %v5457_v54  ;;  %v572_v51 = vpop.f32.mrb[47].mxu1  ;;  %v928_v55 = vmax.f32 %v760_v34, 0.0  ;;  %v764_v56 = vadd.f32 %v763_v37, %v5466_v63  ;;  %v765_v57 = vpop.f32.mrb[47].mxu0 }
 0x14e   :  { %2454 = vmatprep.mubr.bf16.mxu1 %v5403_v6  ;;  %3033 = vmatprep.mubr.bf16.mxu0 %v5403_v6  ;;  %v927_v58 = vmax.f32 %v569_v7, 0.0  ;;  %v573_v59 = vadd.f32 %v572_v51, %v5463_v15  ;;  %v929_v60 = vmax.f32 %v762_v46, 0.0  ;;  %v766_v1 = vadd.f32 %v765_v57, %v5469_v5 }
 0x14f   :  { %v932_v2 = vmax.f32 %v571_v50, 0.0  ;;  %v934_v26 = vmax.f32 %v764_v56, 0.0 }
 0x150   :  { %v933_v4 = vmax.f32 %v573_v59, 0.0  ;;  %v935_v33 = vmax.f32 %v766_v1, 0.0 }
 0x151   :  { %v5545_v8 = vpack.c.bf16 %v932_v2, %v926_v53  ;;  %v5547_v11 = vpack.c.bf16 %v934_v26, %v928_v55 }
 0x152   :  { %v5549_v14 = vpack.c.bf16 %v933_v4, %v927_v58  ;;  %v5551_v17 = vpack.c.bf16 %v935_v33, %v929_v60  ;;  %v576_v20 = vpop.f32.mrb[48].mxu1  ;;  %v769_v6 = vpop.f32.mrb[48].mxu0 }
 0x153   :  { %v577_v21 = vadd.f32 %v576_v20, %v5457_v54  ;;  %v578_v22 = vpop.f32.mrb[49].mxu1  ;;  %v770_v48 = vadd.f32 %v769_v6, %v5466_v63  ;;  %v771_v25 = vpop.f32.mrb[49].mxu0 }
 0x154   :  { %v579_v27 = vadd.f32 %v578_v22, %v5463_v15  ;;  %v580_v40 = vpop.f32.mrb[50].mxu1  ;;  %v772_v38 = vadd.f32 %v771_v25, %v5469_v5  ;;  %v773_v41 = vpop.f32.mrb[50].mxu0 }
 0x155   :  { %2455 = vmatmul.mubr.bf16.gmra.mrb[140].mxu1 %v5401_v3  ;;  %3034 = vmatmul.mubr.bf16.gmra.mrb[140].mxu0 %v5401_v3  ;;  %v938_v43 = vmax.f32 %v577_v21, 0.0  ;;  %v581_v34 = vadd.f32 %v580_v40, %v5457_v54  ;;  %v582_v44 = vpop.f32.mrb[51].mxu1  ;;  %v940_v7 = vmax.f32 %v770_v48, 0.0  ;;  %v774_v45 = vadd.f32 %v773_v41, %v5466_v63  ;;  %v775_v46 = vpop.f32.mrb[51].mxu0 }
 0x156   :  { %2464 = vmatprep.mubr.bf16.mxu1 %v5415_v52  ;;  %3043 = vmatprep.mubr.bf16.mxu0 %v5415_v52  ;;  %v939_v37 = vmax.f32 %v579_v27, 0.0  ;;  %v583_v53 = vadd.f32 %v582_v44, %v5463_v15  ;;  %v941_v50 = vmax.f32 %v772_v38, 0.0  ;;  %v776_v51 = vadd.f32 %v775_v46, %v5469_v5 }
 0x157   :  { %v944_v55 = vmax.f32 %v581_v34, 0.0  ;;  %v946_v3 = vmax.f32 %v774_v45, 0.0 }
 0x158   :  { %v945_v56 = vmax.f32 %v583_v53, 0.0  ;;  %v947_v57 = vmax.f32 %v776_v51, 0.0 }
 0x159   :  { %v5565_v58 = vpack.c.bf16 %v944_v55, %v938_v43  ;;  %v5567_v59 = vpack.c.bf16 %v946_v3, %v940_v7 }
 0x15a   :  { %v5569_v60 = vpack.c.bf16 %v945_v56, %v939_v37  ;;  %v5571_v1 = vpack.c.bf16 %v947_v57, %v941_v50  ;;  %v586_v2 = vpop.f32.mrb[52].mxu1  ;;  %v779_v52 = vpop.f32.mrb[52].mxu0 }
 0x15b   :  { %v587_v26 = vadd.f32 %v586_v2, %v5457_v54  ;;  %v588_v4 = vpop.f32.mrb[53].mxu1  ;;  %v780_v33 = vadd.f32 %v779_v52, %v5466_v63  ;;  %v781_v20 = vpop.f32.mrb[53].mxu0 }
 0x15c   :  { %v589_v6 = vadd.f32 %v588_v4, %v5463_v15  ;;  %v590_v21 = vpop.f32.mrb[54].mxu1  ;;  %v782_v22 = vadd.f32 %v781_v20, %v5469_v5  ;;  %v783_v48 = vpop.f32.mrb[54].mxu0 }
 0x15d   :  { %2465 = vmatmul.mubr.bf16.gmra.mrb[144].mxu1 %v5413_v49  ;;  %3044 = vmatmul.mubr.bf16.gmra.mrb[144].mxu0 %v5413_v49  ;;  %v950_v25 = vmax.f32 %v587_v26, 0.0  ;;  %v591_v27 = vadd.f32 %v590_v21, %v5457_v54  ;;  %v592_v40 = vpop.f32.mrb[55].mxu1  ;;  %v952_v38 = vmax.f32 %v780_v33, 0.0  ;;  %v784_v41 = vadd.f32 %v783_v48, %v5466_v63  ;;  %v785_v43 = vpop.f32.mrb[55].mxu0 }
 0x15e   :  { %2474 = vmatprep.mubr.bf16.mxu1 %v5427_v42  ;;  %3053 = vmatprep.mubr.bf16.mxu0 %v5427_v42  ;;  %v951_v34 = vmax.f32 %v589_v6, 0.0  ;;  %v593_v44 = vadd.f32 %v592_v40, %v5463_v15  ;;  %v953_v7 = vmax.f32 %v782_v22, 0.0  ;;  %v786_v45 = vadd.f32 %v785_v43, %v5469_v5 }
 0x15f   :  { %v956_v46 = vmax.f32 %v591_v27, 0.0  ;;  %v958_v49 = vmax.f32 %v784_v41, 0.0 }
 0x160   :  { %v957_v37 = vmax.f32 %v593_v44, 0.0  ;;  %v959_v53 = vmax.f32 %v786_v45, 0.0 }
 0x161   :  { %v5585_v50 = vpack.c.bf16 %v956_v46, %v950_v25  ;;  %v5587_v51 = vpack.c.bf16 %v958_v49, %v952_v38 }
 0x162   :  { %v5589_v55 = vpack.c.bf16 %v957_v37, %v951_v34  ;;  %v5591_v3 = vpack.c.bf16 %v959_v53, %v953_v7  ;;  %v596_v56 = vpop.f32.mrb[56].mxu1  ;;  %v789_v42 = vpop.f32.mrb[56].mxu0 }
 0x163   :  { %v597_v57 = vadd.f32 %v596_v56, %v5457_v54  ;;  %v598_v2 = vpop.f32.mrb[57].mxu1  ;;  %v790_v52 = vadd.f32 %v789_v42, %v5466_v63  ;;  %v791_v26 = vpop.f32.mrb[57].mxu0 }
 0x164   :  { %v599_v4 = vadd.f32 %v598_v2, %v5463_v15  ;;  %v600_v33 = vpop.f32.mrb[58].mxu1  ;;  %v792_v20 = vadd.f32 %v791_v26, %v5469_v5  ;;  %v793_v6 = vpop.f32.mrb[58].mxu0 }
 0x165   :  { %2475 = vmatmul.mubr.bf16.gmra.mrb[148].mxu1 %v5425_v39  ;;  %3054 = vmatmul.mubr.bf16.gmra.mrb[148].mxu0 %v5425_v39  ;;  %v962_v21 = vmax.f32 %v597_v57, 0.0  ;;  %v601_v22 = vadd.f32 %v600_v33, %v5457_v54  ;;  %v602_v48 = vpop.f32.mrb[59].mxu1  ;;  %v964_v25 = vmax.f32 %v790_v52, 0.0  ;;  %v794_v27 = vadd.f32 %v793_v6, %v5466_v63  ;;  %v795_v40 = vpop.f32.mrb[59].mxu0 }
 0x166   :  { %2484 = vmatprep.mubr.bf16.mxu1 %v5446_v23  ;;  %3063 = vmatprep.mubr.bf16.mxu0 %v5446_v23  ;;  %v963_v38 = vmax.f32 %v599_v4, 0.0  ;;  %v603_v41 = vadd.f32 %v602_v48, %v5463_v15  ;;  %v965_v43 = vmax.f32 %v792_v20, 0.0  ;;  %v796_v34 = vadd.f32 %v795_v40, %v5469_v5 }
 0x167   :  { %v968_v44 = vmax.f32 %v601_v22, 0.0  ;;  %v970_v39 = vmax.f32 %v794_v27, 0.0 }
 0x168   :  { %v969_v7 = vmax.f32 %v603_v41, 0.0  ;;  %v971_v45 = vmax.f32 %v796_v34, 0.0 }
 0x169   :  { %v5605_v46 = vpack.c.bf16 %v968_v44, %v962_v21  ;;  %v5607_v49 = vpack.c.bf16 %v970_v39, %v964_v25 }
 0x16a   :  { %v5609_v37 = vpack.c.bf16 %v969_v7, %v963_v38  ;;  %v5611_v53 = vpack.c.bf16 %v971_v45, %v965_v43  ;;  %v606_v56 = vpop.f32.mrb[60].mxu1  ;;  %v799_v23 = vpop.f32.mrb[60].mxu0 }
 0x16b   :  { %v607_v42 = vadd.f32 %v606_v56, %v5457_v54  ;;  %v608_v57 = vpop.f32.mrb[61].mxu1  ;;  %v800_v2 = vadd.f32 %v799_v23, %v5466_v63  ;;  %v801_v52 = vpop.f32.mrb[61].mxu0 }
 0x16c   :  { %v609_v26 = vadd.f32 %v608_v57, %v5463_v15  ;;  %v610_v4 = vpop.f32.mrb[62].mxu1  ;;  %v802_v33 = vadd.f32 %v801_v52, %v5469_v5  ;;  %v803_v20 = vpop.f32.mrb[62].mxu0 }
 0x16d   :  { %2485 = vmatmul.mubr.bf16.gmra.mrb[152].mxu1 %v5440_v18  ;;  %3064 = vmatmul.mubr.bf16.gmra.mrb[152].mxu0 %v5440_v18  ;;  %v974_v6 = vmax.f32 %v607_v42, 0.0  ;;  %v611_v21 = vadd.f32 %v610_v4, %v5457_v54  ;;  %v612_v22 = vpop.f32.mrb[63].mxu1  ;;  %v976_v48 = vmax.f32 %v800_v2, 0.0  ;;  %v804_v25 = vadd.f32 %v803_v20, %v5466_v63  ;;  %v805_v27 = vpop.f32.mrb[63].mxu0 }
 0x16e   :  { %2494 = vmatprep.mubr.bf16.mxu1 %v5473_v12  ;;  %3073 = vmatprep.mubr.bf16.mxu0 %v5473_v12  ;;  %v975_v40 = vmax.f32 %v609_v26, 0.0  ;;  %v613_v38 = vadd.f32 %v612_v22, %v5463_v15  ;;  %v977_v41 = vmax.f32 %v802_v33, 0.0  ;;  %v806_v43 = vadd.f32 %v805_v27, %v5469_v5 }
 0x16f   :  { %v980_v34 = vmax.f32 %v611_v21, 0.0  ;;  %v982_v18 = vmax.f32 %v804_v25, 0.0 }
 0x170   :  { %v981_v44 = vmax.f32 %v613_v38, 0.0  ;;  %v983_v39 = vmax.f32 %v806_v43, 0.0 }
 0x171   :  { %v5625_v7 = vpack.c.bf16 %v980_v34, %v974_v6  ;;  %v5627_v45 = vpack.c.bf16 %v982_v18, %v976_v48 }
 0x172   :  { %v5629_v56 = vpack.c.bf16 %v981_v44, %v975_v40  ;;  %v5631_v23 = vpack.c.bf16 %v983_v39, %v977_v41  ;;  %v616_v42 = vpop.f32.mrb[64].mxu1  ;;  %v809_v12 = vpop.f32.mrb[64].mxu0 }
 0x173   :  { %v617_v57 = vadd.f32 %v616_v42, %v5457_v54  ;;  %v618_v2 = vpop.f32.mrb[65].mxu1  ;;  %v810_v52 = vadd.f32 %v809_v12, %v5466_v63  ;;  %v811_v26 = vpop.f32.mrb[65].mxu0 }
 0x174   :  { %v619_v4 = vadd.f32 %v618_v2, %v5463_v15  ;;  %v620_v33 = vpop.f32.mrb[66].mxu1  ;;  %v812_v20 = vadd.f32 %v811_v26, %v5469_v5  ;;  %v813_v6 = vpop.f32.mrb[66].mxu0 }
 0x175   :  { %2495 = vmatmul.mubr.bf16.gmra.mrb[156].mxu1 %v5471_v10  ;;  %3074 = vmatmul.mubr.bf16.gmra.mrb[156].mxu0 %v5471_v10  ;;  %v986_v21 = vmax.f32 %v617_v57, 0.0  ;;  %v621_v22 = vadd.f32 %v620_v33, %v5457_v54  ;;  %v622_v48 = vpop.f32.mrb[67].mxu1  ;;  %v988_v25 = vmax.f32 %v810_v52, 0.0  ;;  %v814_v27 = vadd.f32 %v813_v6, %v5466_v63  ;;  %v815_v40 = vpop.f32.mrb[67].mxu0  ;;  %v4923_v57 = vld [vmem:[#allocation3 + $0x400] ss:$16 sps:$4 sm:$0xff]  }
 0x176   :  { %2537 = vmatprep.mubr.bf16.mxu1 %v5489_v62  ;;  %3116 = vmatprep.mubr.bf16.mxu0 %v5489_v62  ;;  %v987_v38 = vmax.f32 %v619_v4, 0.0  ;;  %v623_v41 = vadd.f32 %v622_v48, %v5463_v15  ;;  %v989_v43 = vmax.f32 %v812_v20, 0.0  ;;  %v816_v34 = vadd.f32 %v815_v40, %v5469_v5  ;;  %v4926_v4 = vld [vmem:[#allocation3 + $0x408] ss:$16 sps:$4 sm:$0xff]   ;;  %v4931_v48 = vld [vmem:[#allocation3 + $0x424] ss:$16 sps:$4 sm:$0xff]  }
 0x177   :  { %v992_v18 = vmax.f32 %v621_v22, 0.0  ;;  %v994_v10 = vmax.f32 %v814_v27, 0.0  ;;  %v4934_v27 = vld [vmem:[#allocation3 + $0x42c] ss:$16 sps:$4 sm:$0xff]  }
 0x178   :  { %v993_v44 = vmax.f32 %v623_v41, 0.0  ;;  %v995_v39 = vmax.f32 %v816_v34, 0.0 }
 0x179   :  { %v5645_v42 = vpack.c.bf16 %v992_v18, %v986_v21  ;;  %v5647_v12 = vpack.c.bf16 %v994_v10, %v988_v25 }
 0x17a   :  { %v5649_v2 = vpack.c.bf16 %v993_v44, %v987_v38  ;;  %v5651_v52 = vpack.c.bf16 %v995_v39, %v989_v43  ;;  %v626_v62 = vpop.f32.mrb[68].mxu1  ;;  %v819_v26 = vpop.f32.mrb[68].mxu0  ;;  %v4929_v39 = vld [vmem:[#allocation3 + $0x420] ss:$16 sps:$4 sm:$0xff]  }
 0x17b   :  { %v627_v33 = vadd.f32 %v626_v62, %v5457_v54  ;;  %v628_v20 = vpop.f32.mrb[69].mxu1  ;;  %v820_v6 = vadd.f32 %v819_v26, %v5466_v63  ;;  %v821_v22 = vpop.f32.mrb[69].mxu0 }
 0x17c   :  { %v629_v21 = vadd.f32 %v628_v20, %v5463_v15  ;;  %v630_v25 = vpop.f32.mrb[70].mxu1  ;;  %v822_v40 = vadd.f32 %v821_v22, %v5469_v5  ;;  %v823_v38 = vpop.f32.mrb[70].mxu0 }
 0x17d   :  { %2538 = vmatmul.mubr.bf16.vlgmr.msra.gmra.mrb[96].mxu1 %v5485_v61  ;;  %3117 = vmatmul.mubr.bf16.vlgmr.msra.gmra.mrb[96].mxu0 %v5485_v61  ;;  %v998_v41 = vmax.f32 %v627_v33, 0.0  ;;  %v631_v43 = vadd.f32 %v630_v25, %v5457_v54  ;;  %v632_v34 = vpop.f32.mrb[71].mxu1  ;;  %v1000_v18 = vmax.f32 %v820_v6, 0.0  ;;  %v824_v10 = vadd.f32 %v823_v38, %v5466_v63  ;;  %v825_v44 = vpop.f32.mrb[71].mxu0  ;;  %v4932_v61 = vld [vmem:[#allocation3 + $0x428] ss:$16 sps:$4 sm:$0xff]  }
 0x17e   :  { %2699 = vmatpush1.bf16.msra.mxu1 %v4923_v57  ;;  %2547 = vmatprep.mubr.bf16.mxu1 %v5509_v35  ;;  %v999_v62 = vmax.f32 %v629_v21, 0.0  ;;  %v633_v26 = vadd.f32 %v632_v34, %v5463_v15  ;;  %v1001_v20 = vmax.f32 %v822_v40, 0.0  ;;  %v826_v22 = vadd.f32 %v825_v44, %v5469_v5  ;;  %v4937_v33 = vld [vmem:[#allocation3 + $0x444] ss:$16 sps:$4 sm:$0xff]   ;;  %v4940_v38 = vld [vmem:[#allocation3 + $0x44c] ss:$16 sps:$4 sm:$0xff]  }
 0x17f   :  { %3126 = vmatprep.mubr.bf16.mxu0 %v5509_v35  ;;  %3278 = vmatpush1.bf16.msra.mxu0 %v4926_v4  ;;  %v1004_v25 = vmax.f32 %v631_v43, 0.0  ;;  %v1006_v6 = vmax.f32 %v824_v10, 0.0  ;;  %v4935_v44 = vld [vmem:[#allocation3 + $0x440] ss:$16 sps:$4 sm:$0xff]   ;;  %v4938_v43 = vld [vmem:[#allocation3 + $0x448] ss:$16 sps:$4 sm:$0xff]  }
 0x180   :  { %2700 = vmatprep.subr.bf16.mxu1 %v4931_v48  ;;  %3279 = vmatprep.subr.bf16.mxu0 %v4934_v27  ;;  %v1005_v57 = vmax.f32 %v633_v26, 0.0  ;;  %v1007_v19 = vmax.f32 %v826_v22, 0.0  ;;  %v4946_v26 = vld [vmem:[#allocation3 + $0x46c] ss:$16 sps:$4 sm:$0xff]  }
 0x181   :  { %v5665_v31 = vpack.c.bf16 %v1004_v25, %v998_v41  ;;  %v5667_v21 = vpack.c.bf16 %v1006_v6, %v1000_v18  ;;  %v4943_v18 = vld [vmem:[#allocation3 + $0x464] ss:$16 sps:$4 sm:$0xff]  }
 0x182   :  { %2701 = vmatpush1.bf16.msra.mxu1 %v4929_v39  ;;  %v5669_v40 = vpack.c.bf16 %v1005_v57, %v999_v62  ;;  %v5671_v34 = vpack.c.bf16 %v1007_v19, %v1001_v20  ;;  %v636_v35 = vpop.f32.mrb[72].mxu1  ;;  %v829_v4 = vpop.f32.mrb[72].mxu0 }
 0x183   :  { %6423 = vst [vmem:[#allocation10_spill] sm:$0xff] %v5667_v21  ;;  %3280 = vmatpush1.bf16.msra.mxu0 %v4932_v61  ;;  %2702 = vmatprep.subr.bf16.mxu1 %v4937_v33  ;;  %v637_v48 = vadd.f32 %v636_v35, %v5457_v54  ;;  %v638_v27 = vpop.f32.mrb[73].mxu1  ;;  %v830_v10 = vadd.f32 %v829_v4, %v5466_v63  ;;  %v831_v41 = vpop.f32.mrb[73].mxu0 }
 0x184   :  { %3281 = vmatprep.subr.bf16.mxu0 %v4940_v38  ;;  %v639_v39 = vadd.f32 %v638_v27, %v5463_v15  ;;  %v640_v62 = vpop.f32.mrb[74].mxu1  ;;  %v832_v19 = vadd.f32 %v831_v41, %v5469_v5  ;;  %v833_v20 = vpop.f32.mrb[74].mxu0  ;;  %v4944_v41 = vld [vmem:[#allocation3 + $0x468] ss:$16 sps:$4 sm:$0xff]  }
 0x185   :  { %2548 = vmatmul.mubr.bf16.gmra.mrb[100].mxu1 %v5505_v47  ;;  %3127 = vmatmul.mubr.bf16.gmra.mrb[100].mxu0 %v5505_v47  ;;  %v1010_v22 = vmax.f32 %v637_v48, 0.0  ;;  %v641_v61 = vadd.f32 %v640_v62, %v5457_v54  ;;  %v642_v33 = vpop.f32.mrb[75].mxu1  ;;  %v1012_v25 = vmax.f32 %v830_v10, 0.0  ;;  %v834_v6 = vadd.f32 %v833_v20, %v5466_v63  ;;  %v835_v38 = vpop.f32.mrb[75].mxu0  ;;  %v4941_v47 = vld [vmem:[#allocation3 + $0x460] ss:$16 sps:$4 sm:$0xff]  }
 0x186   :  { %2557 = vmatprep.mubr.bf16.mxu1 %v5529_v30  ;;  %3136 = vmatprep.mubr.bf16.mxu0 %v5529_v30  ;;  %v1011_v57 = vmax.f32 %v639_v39, 0.0  ;;  %v643_v35 = vadd.f32 %v642_v33, %v5463_v15  ;;  %v1013_v4 = vmax.f32 %v832_v19, 0.0  ;;  %v836_v27 = vadd.f32 %v835_v38, %v5469_v5  ;;  %v4950_v38 = vld [vmem:[#allocation3 + $0x488] ss:$16 sps:$4 sm:$0xff]  }
 0x187   :  { %2703 = vmatpush1.bf16.msra.mxu1 %v4935_v44  ;;  %3282 = vmatpush1.bf16.msra.mxu0 %v4938_v43  ;;  %v1016_v48 = vmax.f32 %v641_v61, 0.0  ;;  %v1018_v62 = vmax.f32 %v834_v6, 0.0 }
 0x188   :  { %2704 = vmatprep.subr.bf16.mxu1 %v4943_v18  ;;  %3283 = vmatprep.subr.bf16.mxu0 %v4946_v26  ;;  %v1017_v10 = vmax.f32 %v643_v35, 0.0  ;;  %v1019_v20 = vmax.f32 %v836_v27, 0.0  ;;  %v4947_v26 = vld [vmem:[#allocation3 + $0x480] ss:$16 sps:$4 sm:$0xff]   ;;  %v4958_v27 = vld [vmem:[#allocation3 + $0x4ac] ss:$16 sps:$4 sm:$0xff]  }
 0x189   :  { %v5685_v21 = vpack.c.bf16 %v1016_v48, %v1010_v22  ;;  %v5687_v30 = vpack.c.bf16 %v1018_v62, %v1012_v25 }
 0x18a   :  { %v5689_v39 = vpack.c.bf16 %v1017_v10, %v1011_v57  ;;  %v5691_v19 = vpack.c.bf16 %v1019_v20, %v1013_v4  ;;  %v646_v44 = vpop.f32.mrb[76].mxu1  ;;  %v839_v43 = vpop.f32.mrb[76].mxu0  ;;  %v4955_v4 = vld [vmem:[#allocation3 + $0x4a4] ss:$16 sps:$4 sm:$0xff]  }
 0x18b   :  { %6424 = vst [vmem:[#allocation11_spill] sm:$0xff] %v5687_v30  ;;  %2705 = vmatpush1.bf16.msra.mxu1 %v4941_v47  ;;  %3284 = vmatpush1.bf16.msra.mxu0 %v4944_v41  ;;  %v647_v61 = vadd.f32 %v646_v44, %v5457_v54  ;;  %v648_v18 = vpop.f32.mrb[77].mxu1  ;;  %v840_v33 = vadd.f32 %v839_v43, %v5466_v63  ;;  %v841_v6 = vpop.f32.mrb[77].mxu0  ;;  %v4964_v30 = vld [vmem:[#allocation3 + $0x4cc] ss:$16 sps:$4 sm:$0xff]  }
 0x18c   :  { %6425 = vst [vmem:[#allocation12_spill] sm:$0xff] %v5691_v19  ;;  %v649_v22 = vadd.f32 %v648_v18, %v5463_v15  ;;  %v650_v25 = vpop.f32.mrb[78].mxu1  ;;  %2706 = vmatprep.subr.bf16.mxu1 %v4949_v16  ;;  %v842_v57 = vadd.f32 %v841_v6, %v5469_v5  ;;  %v843_v35 = vpop.f32.mrb[78].mxu0  ;;  %3285 = vmatprep.subr.bf16.mxu0 %v4952_v24  ;;  %v4956_v6 = vld [vmem:[#allocation3 + $0x4a8] ss:$16 sps:$4 sm:$0xff]  }
 0x18d   :  { %2558 = vmatmul.mubr.bf16.gmra.mrb[104].mxu1 %v5525_v29  ;;  %3137 = vmatmul.mubr.bf16.gmra.mrb[104].mxu0 %v5525_v29  ;;  %v1022_v47 = vmax.f32 %v647_v61, 0.0  ;;  %v651_v48 = vadd.f32 %v650_v25, %v5457_v54  ;;  %v652_v41 = vpop.f32.mrb[79].mxu1  ;;  %v1024_v62 = vmax.f32 %v840_v33, 0.0  ;;  %v844_v10 = vadd.f32 %v843_v35, %v5466_v63  ;;  %v845_v20 = vpop.f32.mrb[79].mxu0  ;;  %v4953_v61 = vld [vmem:[#allocation3 + $0x4a0] ss:$16 sps:$4 sm:$0xff]  }
 0x18e   :  { %2567 = vmatprep.mubr.bf16.mxu1 %v5549_v14  ;;  %3146 = vmatprep.mubr.bf16.mxu0 %v5549_v14  ;;  %v1023_v16 = vmax.f32 %v649_v22, 0.0  ;;  %v653_v24 = vadd.f32 %v652_v41, %v5463_v15  ;;  %v1025_v44 = vmax.f32 %v842_v57, 0.0  ;;  %v846_v43 = vadd.f32 %v845_v20, %v5469_v5  ;;  %v4961_v35 = vld [vmem:[#allocation3 + $0x4c4] ss:$16 sps:$4 sm:$0xff]  }
 0x18f   :  { %v1028_v18 = vmax.f32 %v651_v48, 0.0  ;;  %2707 = vmatpush1.bf16.msra.mxu1 %v4947_v26  ;;  %v1030_v29 = vmax.f32 %v844_v10, 0.0  ;;  %3286 = vmatpush1.bf16.msra.mxu0 %v4950_v38 }
 0x190   :  { %v1029_v33 = vmax.f32 %v653_v24, 0.0  ;;  %v1031_v25 = vmax.f32 %v846_v43, 0.0  ;;  %2708 = vmatprep.subr.bf16.mxu1 %v4955_v4  ;;  %3287 = vmatprep.subr.bf16.mxu0 %v4958_v27  ;;  %v4959_v4 = vld [vmem:[#allocation3 + $0x4c0] ss:$16 sps:$4 sm:$0xff]   ;;  %v4962_v27 = vld [vmem:[#allocation3 + $0x4c8] ss:$16 sps:$4 sm:$0xff]  }
 0x191   :  { %v5705_v19 = vpack.c.bf16 %v1028_v18, %v1022_v47  ;;  %v5707_v14 = vpack.c.bf16 %v1030_v29, %v1024_v62  ;;  %v4970_v43 = vld [vmem:[#allocation3 + $0x4ec] ss:$16 sps:$4 sm:$0xff]  }
 0x192   :  { %v5709_v22 = vpack.c.bf16 %v1029_v33, %v1023_v16  ;;  %v5711_v57 = vpack.c.bf16 %v1031_v25, %v1025_v44  ;;  %v656_v48 = vpop.f32.mrb[80].mxu1  ;;  %v849_v26 = vpop.f32.mrb[80].mxu0  ;;  %v4967_v44 = vld [vmem:[#allocation3 + $0x4e4] ss:$16 sps:$4 sm:$0xff]  }
 0x193   :  { %6426 = vst [vmem:[#allocation13_spill] sm:$0xff] %v5707_v14  ;;  %v657_v38 = vadd.f32 %v656_v48, %v5457_v54  ;;  %v658_v41 = vpop.f32.mrb[81].mxu1  ;;  %v850_v10 = vadd.f32 %v849_v26, %v5466_v63  ;;  %v851_v20 = vpop.f32.mrb[81].mxu0  ;;  %2709 = vmatpush1.bf16.msra.mxu1 %v4953_v61  ;;  %3288 = vmatpush1.bf16.msra.mxu0 %v4956_v6  ;;  %v4976_v14 = vld [vmem:[#allocation3 + $0x50c] ss:$16 sps:$4 sm:$0xff]  }
 0x194   :  { %6427 = vst [vmem:[#allocation14_spill] sm:$0xff] %v5711_v57  ;;  %v659_v47 = vadd.f32 %v658_v41, %v5463_v15  ;;  %v660_v62 = vpop.f32.mrb[82].mxu1  ;;  %v852_v16 = vadd.f32 %v851_v20, %v5469_v5  ;;  %v853_v24 = vpop.f32.mrb[82].mxu0  ;;  %2710 = vmatprep.subr.bf16.mxu1 %v4961_v35  ;;  %3289 = vmatprep.subr.bf16.mxu0 %v4964_v30  ;;  %v4968_v20 = vld [vmem:[#allocation3 + $0x4e8] ss:$16 sps:$4 sm:$0xff]  }
 0x195   :  { %2568 = vmatmul.mubr.bf16.gmra.mrb[108].mxu1 %v5545_v8  ;;  %3147 = vmatmul.mubr.bf16.gmra.mrb[108].mxu0 %v5545_v8  ;;  %v1034_v18 = vmax.f32 %v657_v38, 0.0  ;;  %v661_v29 = vadd.f32 %v660_v62, %v5457_v54  ;;  %v662_v61 = vpop.f32.mrb[83].mxu1  ;;  %v1036_v6 = vmax.f32 %v850_v10, 0.0  ;;  %v854_v33 = vadd.f32 %v853_v24, %v5466_v63  ;;  %v855_v25 = vpop.f32.mrb[83].mxu0  ;;  %v4965_v38 = vld [vmem:[#allocation3 + $0x4e0] ss:$16 sps:$4 sm:$0xff]  }
 0x196   :  { %2577 = vmatprep.mubr.bf16.mxu1 %v5569_v60  ;;  %3156 = vmatprep.mubr.bf16.mxu0 %v5569_v60  ;;  %v1035_v35 = vmax.f32 %v659_v47, 0.0  ;;  %v663_v30 = vadd.f32 %v662_v61, %v5463_v15  ;;  %v1037_v48 = vmax.f32 %v852_v16, 0.0  ;;  %v856_v26 = vadd.f32 %v855_v25, %v5469_v5  ;;  %v4973_v24 = vld [vmem:[#allocation3 + $0x504] ss:$16 sps:$4 sm:$0xff]  }
 0x197   :  { %v1040_v41 = vmax.f32 %v661_v29, 0.0  ;;  %v1042_v8 = vmax.f32 %v854_v33, 0.0  ;;  %2711 = vmatpush1.bf16.msra.mxu1 %v4959_v4  ;;  %3290 = vmatpush1.bf16.msra.mxu0 %v4962_v27 }
 0x198   :  { %v1041_v10 = vmax.f32 %v663_v30, 0.0  ;;  %v1043_v62 = vmax.f32 %v856_v26, 0.0  ;;  %2712 = vmatprep.subr.bf16.mxu1 %v4967_v44  ;;  %3291 = vmatprep.subr.bf16.mxu0 %v4970_v43  ;;  %v4971_v44 = vld [vmem:[#allocation3 + $0x500] ss:$16 sps:$4 sm:$0xff]   ;;  %v4974_v43 = vld [vmem:[#allocation3 + $0x508] ss:$16 sps:$4 sm:$0xff]  }
 0x199   :  { %v5725_v57 = vpack.c.bf16 %v1040_v41, %v1034_v18  ;;  %v5727_v60 = vpack.c.bf16 %v1042_v8, %v1036_v6  ;;  %v4982_v26 = vld [vmem:[#allocation3 + $0x52c] ss:$16 sps:$4 sm:$0xff]  }
 0x19a   :  { %v5729_v47 = vpack.c.bf16 %v1041_v10, %v1035_v35  ;;  %v5731_v16 = vpack.c.bf16 %v1043_v62, %v1037_v48  ;;  %v666_v29 = vpop.f32.mrb[84].mxu1  ;;  %v859_v61 = vpop.f32.mrb[84].mxu0  ;;  %v4979_v48 = vld [vmem:[#allocation3 + $0x524] ss:$16 sps:$4 sm:$0xff]  }
 0x19b   :  { %6428 = vst [vmem:[#allocation15_spill] sm:$0xff] %v5727_v60  ;;  %v667_v4 = vadd.f32 %v666_v29, %v5457_v54  ;;  %v668_v27 = vpop.f32.mrb[85].mxu1  ;;  %v860_v33 = vadd.f32 %v859_v61, %v5466_v63  ;;  %v861_v25 = vpop.f32.mrb[85].mxu0  ;;  %2713 = vmatpush1.bf16.msra.mxu1 %v4965_v38  ;;  %3292 = vmatpush1.bf16.msra.mxu0 %v4968_v20  ;;  %v4988_v60 = vld [vmem:[#allocation3 + $0x54c] ss:$16 sps:$4 sm:$0xff]  }
 0x19c   :  { %6429 = vst [vmem:[#allocation16_spill] sm:$0xff] %v5731_v16  ;;  %v669_v18 = vadd.f32 %v668_v27, %v5463_v15  ;;  %v670_v6 = vpop.f32.mrb[86].mxu1  ;;  %v862_v35 = vadd.f32 %v861_v25, %v5469_v5  ;;  %v863_v30 = vpop.f32.mrb[86].mxu0  ;;  %2714 = vmatprep.subr.bf16.mxu1 %v4973_v24  ;;  %3293 = vmatprep.subr.bf16.mxu0 %v4976_v14  ;;  %v4980_v25 = vld [vmem:[#allocation3 + $0x528] ss:$16 sps:$4 sm:$0xff]  }
 0x19d   :  { %2578 = vmatmul.mubr.bf16.gmra.mrb[112].mxu1 %v5565_v58  ;;  %3157 = vmatmul.mubr.bf16.gmra.mrb[112].mxu0 %v5565_v58  ;;  %v1046_v41 = vmax.f32 %v667_v4, 0.0  ;;  %v671_v8 = vadd.f32 %v670_v6, %v5457_v54  ;;  %v672_v38 = vpop.f32.mrb[87].mxu1  ;;  %v1048_v20 = vmax.f32 %v860_v33, 0.0  ;;  %v864_v10 = vadd.f32 %v863_v30, %v5466_v63  ;;  %v865_v62 = vpop.f32.mrb[87].mxu0  ;;  %v4977_v4 = vld [vmem:[#allocation3 + $0x520] ss:$16 sps:$4 sm:$0xff]  }
 0x19e   :  { %2587 = vmatprep.mubr.bf16.mxu1 %v5589_v55  ;;  %3166 = vmatprep.mubr.bf16.mxu0 %v5589_v55  ;;  %v1047_v24 = vmax.f32 %v669_v18, 0.0  ;;  %v673_v14 = vadd.f32 %v672_v38, %v5463_v15  ;;  %v1049_v29 = vmax.f32 %v862_v35, 0.0  ;;  %v866_v61 = vadd.f32 %v865_v62, %v5469_v5  ;;  %v4985_v30 = vld [vmem:[#allocation3 + $0x544] ss:$16 sps:$4 sm:$0xff]   ;;  %v4983_v18 = vld [vmem:[#allocation3 + $0x540] ss:$16 sps:$4 sm:$0xff]  }
 0x19f   :  { %v1052_v27 = vmax.f32 %v671_v8, 0.0  ;;  %v1054_v58 = vmax.f32 %v864_v10, 0.0  ;;  %2715 = vmatpush1.bf16.msra.mxu1 %v4971_v44  ;;  %3294 = vmatpush1.bf16.msra.mxu0 %v4974_v43  ;;  %v4986_v35 = vld [vmem:[#allocation3 + $0x548] ss:$16 sps:$4 sm:$0xff]  }
 0x1a0   :  { %v1053_v33 = vmax.f32 %v673_v14, 0.0  ;;  %v1055_v6 = vmax.f32 %v866_v61, 0.0  ;;  %2716 = vmatprep.subr.bf16.mxu1 %v4979_v48  ;;  %3295 = vmatprep.subr.bf16.mxu0 %v4982_v26  ;;  %v4989_v10 = vld [vmem:[#allocation3 + $0x564] ss:$16 sps:$4 sm:$0x3f]  }
 0x1a1   :  { %v5745_v16 = vpack.c.bf16 %v1052_v27, %v1046_v41  ;;  %v5747_v55 = vpack.c.bf16 %v1054_v58, %v1048_v20  ;;  %v4991_v62 = vld [vmem:[#allocation3 + $0x560] ss:$16 sps:$4 sm:$0x3f]   ;;  %v4992_v41 = vld [vmem:[#allocation3 + $0x56c] ss:$16 sps:$4 sm:$0x3f]  }
 0x1a2   :  { %v5749_v38 = vpack.c.bf16 %v1053_v33, %v1047_v24  ;;  %v5751_v8 = vpack.c.bf16 %v1055_v6, %v1049_v29  ;;  %v676_v44 = vpop.f32.mrb[88].mxu1  ;;  %v869_v43 = vpop.f32.mrb[88].mxu0  ;;  %v4994_v58 = vld [vmem:[#allocation3 + $0x568] ss:$16 sps:$4 sm:$0x3f]  }
 0x1a3   :  { %6430 = vst [vmem:[#allocation17_spill] sm:$0xff] %v5747_v55  ;;  %v677_v14 = vadd.f32 %v676_v44, %v5457_v54  ;;  %v678_v48 = vpop.f32.mrb[89].mxu1  ;;  %v870_v26 = vadd.f32 %v869_v43, %v5466_v63  ;;  %v871_v61 = vpop.f32.mrb[89].mxu0  ;;  %2717 = vmatpush1.bf16.msra.mxu1 %v4977_v4  ;;  %3296 = vmatpush1.bf16.msra.mxu0 %v4980_v25 }
 0x1a4   :  { %v679_v20 = vadd.f32 %v678_v48, %v5463_v15  ;;  %v680_v27 = vpop.f32.mrb[90].mxu1  ;;  %v872_v24 = vadd.f32 %v871_v61, %v5469_v5  ;;  %v873_v29 = vpop.f32.mrb[90].mxu0  ;;  %2718 = vmatprep.subr.bf16.mxu1 %v4985_v30  ;;  %3297 = vmatprep.subr.bf16.mxu0 %v4988_v60 }
 0x1a5   :  { %2588 = vmatmul.mubr.bf16.gmra.mrb[116].mxu1 %v5585_v50  ;;  %3167 = vmatmul.mubr.bf16.gmra.mrb[116].mxu0 %v5585_v50  ;;  %v1058_v33 = vmax.f32 %v677_v14, 0.0  ;;  %v681_v6 = vadd.f32 %v680_v27, %v5457_v54  ;;  %v682_v4 = vpop.f32.mrb[91].mxu1  ;;  %v1060_v25 = vmax.f32 %v870_v26, 0.0  ;;  %v874_v44 = vadd.f32 %v873_v29, %v5466_v63  ;;  %v875_v43 = vpop.f32.mrb[91].mxu0 }
 0x1a6   :  { %2597 = vmatprep.mubr.bf16.mxu1 %v5609_v37  ;;  %3176 = vmatprep.mubr.bf16.mxu0 %v5609_v37  ;;  %v1059_v30 = vmax.f32 %v679_v20, 0.0  ;;  %v683_v60 = vadd.f32 %v682_v4, %v5463_v15  ;;  %v1061_v48 = vmax.f32 %v872_v24, 0.0  ;;  %v876_v61 = vadd.f32 %v875_v43, %v5469_v5 }
 0x1a7   :  { %v1064_v55 = vmax.f32 %v681_v6, 0.0  ;;  %v1066_v50 = vmax.f32 %v874_v44, 0.0  ;;  %2719 = vmatpush1.bf16.msra.mxu1 %v4983_v18  ;;  %3298 = vmatpush1.bf16.msra.mxu0 %v4986_v35  ;;  %v2301_v26 = vsel %vm2299_vm2, %v4991_v62, 0  ;;  %v2307_v37 = vsel %vm2299_vm2, %v4994_v58, 0 }
 0x1a8   :  { %v1065_v14 = vmax.f32 %v683_v60, 0.0  ;;  %v1067_v27 = vmax.f32 %v876_v61, 0.0  ;;  %4273 = vmatprep.subr.msk.bf16.mxu1 %vm2299_vm2, %v4989_v10  ;;  %4290 = vmatprep.subr.msk.bf16.mxu0 %vm2299_vm2, %v4992_v41 }
 0x1a9   :  { %v5769_v20 = vpack.c.bf16 %v1064_v55, %v1058_v33  ;;  %v5771_v29 = vpack.c.bf16 %v1066_v50, %v1060_v25 }
 0x1aa   :  { %v1167_v24 = vpack.c.bf16 %v1065_v14, %v1059_v30  ;;  %v5773_v4 = vpack.c.bf16 %v1067_v27, %v1061_v48  ;;  %v686_v6 = vpop.f32.mrb[92].mxu1  ;;  %v879_v18 = vpop.f32.mrb[92].mxu0 }
 0x1ab   :  { %v687_v35 = vadd.f32 %v686_v6, %v5457_v54  ;;  %v688_v44 = vpop.f32.mrb[93].mxu1  ;;  %v880_v10 = vadd.f32 %v879_v18, %v5466_v63  ;;  %v881_v43 = vpop.f32.mrb[93].mxu0  ;;  %2721 = vmatpush1.bf16.msra.mxu1 %v2301_v26  ;;  %3300 = vmatpush1.bf16.msra.mxu0 %v2307_v37 }
 0x1ac   :  { %v689_v62 = vadd.f32 %v688_v44, %v5463_v15  ;;  %v690_v41 = vpop.f32.mrb[94].mxu1  ;;  %v882_v55 = vadd.f32 %v881_v43, %v5469_v5  ;;  %v883_v58 = vpop.f32.mrb[94].mxu0 }
 0x1ad   :  { %2598 = vmatmul.mubr.bf16.gmra.mrb[120].mxu1 %v5605_v46  ;;  %3177 = vmatmul.mubr.bf16.gmra.mrb[120].mxu0 %v5605_v46  ;;  %v1070_v33 = vmax.f32 %v687_v35, 0.0  ;;  %v691_v25 = vadd.f32 %v690_v41, %v5457_v54  ;;  %v692_v30 = vpop.f32.mrb[95].mxu1  ;;  %v1072_v60 = vmax.f32 %v880_v10, 0.0  ;;  %v884_v48 = vadd.f32 %v883_v58, %v5466_v63  ;;  %v885_v61 = vpop.f32.mrb[95].mxu0 }
 0x1ae   :  { %2607 = vmatprep.mubr.bf16.mxu1 %v5629_v56  ;;  %3186 = vmatprep.mubr.bf16.mxu0 %v5629_v56  ;;  %v1071_v50 = vmax.f32 %v689_v62, 0.0  ;;  %v693_v14 = vadd.f32 %v692_v30, %v5463_v15  ;;  %v1073_v27 = vmax.f32 %v882_v55, 0.0  ;;  %v886_v26 = vadd.f32 %v885_v61, %v5469_v5  ;;  %v6432_v15 = vld [vmem:[#allocation12_spill] sm:$0xff]  ;;  %v6433_v5 = vld [vmem:[#allocation11_spill] sm:$0xff] }
 0x1af   :  { %v1076_v37 = vmax.f32 %v691_v25, 0.0  ;;  %v1078_v46 = vmax.f32 %v884_v48, 0.0 }
 0x1b0   :  { %v1077_v6 = vmax.f32 %v693_v14, 0.0  ;;  %v1079_v18 = vmax.f32 %v886_v26, 0.0 }
 0x1b1   :  { %v1172_v54 = vpack.c.bf16 %v1076_v37, %v1070_v33  ;;  %v5787_v35 = vpack.c.bf16 %v1078_v46, %v1072_v60 }
 0x1b2   :  { %v1173_v44 = vpack.c.bf16 %v1077_v6, %v1071_v50  ;;  %v5789_v63 = vpack.c.bf16 %v1079_v18, %v1073_v27 }
 0x1b5   :  { %2608 = vmatmul.mubr.bf16.gmra.mrb[124].mxu1 %v5625_v7  ;;  %3187 = vmatmul.mubr.bf16.gmra.mrb[124].mxu0 %v5625_v7 }
 0x1b6   :  { %2617 = vmatprep.mubr.bf16.mxu1 %v5649_v2  ;;  %3196 = vmatprep.mubr.bf16.mxu0 %v5649_v2 }
 0x1bd   :  { %2618 = vmatmul.mubr.bf16.gmra.mrb[128].mxu1 %v5645_v42  ;;  %3197 = vmatmul.mubr.bf16.gmra.mrb[128].mxu0 %v5645_v42 }
 0x1be   :  { %2627 = vmatprep.mubr.bf16.mxu1 %v5669_v40  ;;  %3206 = vmatprep.mubr.bf16.mxu0 %v5669_v40 }
 0x1c5   :  { %2628 = vmatmul.mubr.bf16.gmra.mrb[132].mxu1 %v5665_v31  ;;  %3207 = vmatmul.mubr.bf16.gmra.mrb[132].mxu0 %v5665_v31  ;;  %v6431_v31 = vld [vmem:[#allocation10_spill] sm:$0xff] }
 0x1c6   :  { %2637 = vmatprep.mubr.bf16.mxu1 %v5689_v39  ;;  %3216 = vmatprep.mubr.bf16.mxu0 %v5689_v39 }
 0x1cd   :  { %2638 = vmatmul.mubr.bf16.gmra.mrb[136].mxu1 %v5685_v21  ;;  %3217 = vmatmul.mubr.bf16.gmra.mrb[136].mxu0 %v5685_v21 }
 0x1ce   :  { %2647 = vmatprep.mubr.bf16.mxu1 %v5709_v22  ;;  %3226 = vmatprep.mubr.bf16.mxu0 %v5709_v22 }
 0x1d5   :  { %2648 = vmatmul.mubr.bf16.gmra.mrb[140].mxu1 %v5705_v19  ;;  %3227 = vmatmul.mubr.bf16.gmra.mrb[140].mxu0 %v5705_v19 }
 0x1d6   :  { %2657 = vmatprep.mubr.bf16.mxu1 %v5729_v47  ;;  %3236 = vmatprep.mubr.bf16.mxu0 %v5729_v47 }
 0x1dd   :  { %2658 = vmatmul.mubr.bf16.gmra.mrb[144].mxu1 %v5725_v57  ;;  %3237 = vmatmul.mubr.bf16.gmra.mrb[144].mxu0 %v5725_v57 }
 0x1de   :  { %2667 = vmatprep.mubr.bf16.mxu1 %v5749_v38  ;;  %3246 = vmatprep.mubr.bf16.mxu0 %v5749_v38 }
 0x1e5   :  { %2668 = vmatmul.mubr.bf16.gmra.mrb[148].mxu1 %v5745_v16  ;;  %3247 = vmatmul.mubr.bf16.gmra.mrb[148].mxu0 %v5745_v16 }
 0x1e6   :  { %2677 = vmatprep.mubr.bf16.mxu1 %v1167_v24  ;;  %3256 = vmatprep.mubr.bf16.mxu0 %v1167_v24 }
 0x1ed   :  { %2678 = vmatmul.mubr.bf16.gmra.mrb[152].mxu1 %v5769_v20  ;;  %3257 = vmatmul.mubr.bf16.gmra.mrb[152].mxu0 %v5769_v20 }
 0x1ee   :  { %2687 = vmatprep.mubr.bf16.mxu1 %v1173_v44  ;;  %3266 = vmatprep.mubr.bf16.mxu0 %v1173_v44 }
 0x1f5   :  { %2688 = vmatmul.mubr.bf16.gmra.mrb[156].mxu1 %v1172_v54  ;;  %3267 = vmatmul.mubr.bf16.gmra.mrb[156].mxu0 %v1172_v54 }
 0x1f6   :  { %4274 = vmatprep.mubr.msk.bf16.mxu1 %vm2250_vm3, %v5491_v0  ;;  %4291 = vmatprep.mubr.msk.bf16.mxu0 %vm2250_vm3, %v5491_v0  ;;  %v6435_v0 = vld [vmem:[#allocation13_spill] sm:$0xff] }
 0x1fd   :  { %2731 = vmatmul.mubr.bf16.vlgmr.msra.gmra.mrb[96].mxu1 %v5487_v13  ;;  %3310 = vmatmul.mubr.bf16.vlgmr.msra.gmra.mrb[96].mxu0 %v5487_v13  ;;  %v6434_v13 = vld [vmem:[#allocation14_spill] sm:$0xff] }
 0x1fe   :  { %4275 = vmatprep.mubr.msk.bf16.mxu1 %vm2250_vm3, %v5511_v36  ;;  %4292 = vmatprep.mubr.msk.bf16.mxu0 %vm2250_vm3, %v5511_v36  ;;  %v6437_v36 = vld [vmem:[#allocation15_spill] sm:$0xff] }
 0x205   :  { %2741 = vmatmul.mubr.bf16.gmra.mrb[100].mxu1 %v5507_v9  ;;  %3320 = vmatmul.mubr.bf16.gmra.mrb[100].mxu0 %v5507_v9  ;;  %v6436_v9 = vld [vmem:[#allocation16_spill] sm:$0xff] }
 0x206   :  { %4276 = vmatprep.mubr.msk.bf16.mxu1 %vm2250_vm3, %v5531_v32  ;;  %4293 = vmatprep.mubr.msk.bf16.mxu0 %vm2250_vm3, %v5531_v32  ;;  %v1352_v32 = vld [vmem:[%s6399_s4] sm:$0xf] }
 0x20d   :  { %2751 = vmatmul.mubr.bf16.gmra.mrb[104].mxu1 %v5527_v28  ;;  %3330 = vmatmul.mubr.bf16.gmra.mrb[104].mxu0 %v5527_v28  ;;  %v6438_v28 = vld [vmem:[#allocation17_spill] sm:$0xff] }
 0x20e   :  { %4277 = vmatprep.mubr.msk.bf16.mxu1 %vm2250_vm3, %v5551_v17  ;;  %4294 = vmatprep.mubr.msk.bf16.mxu0 %vm2250_vm3, %v5551_v17 }
 0x215   :  { %2761 = vmatmul.mubr.bf16.gmra.mrb[108].mxu1 %v5547_v11  ;;  %3340 = vmatmul.mubr.bf16.gmra.mrb[108].mxu0 %v5547_v11  ;;  %v6439_v11 = vld [vmem:[#allocation6_spill] sm:$0xff] }
 0x216   :  { %4278 = vmatprep.mubr.msk.bf16.mxu1 %vm2250_vm3, %v5571_v1  ;;  %4295 = vmatprep.mubr.msk.bf16.mxu0 %vm2250_vm3, %v5571_v1  ;;  %v5919_v17 = vrot.slane %v1352_v32, %v6439_v11 }
 0x21d   :  { %2771 = vmatmul.mubr.bf16.gmra.mrb[112].mxu1 %v5567_v59  ;;  %3350 = vmatmul.mubr.bf16.gmra.mrb[112].mxu0 %v5567_v59  ;;  %v6440_v59 = vld [vmem:[#allocation8_spill] sm:$0xff] }
 0x21e   :  { %4279 = vmatprep.mubr.msk.bf16.mxu1 %vm2250_vm3, %v5591_v3  ;;  %4296 = vmatprep.mubr.msk.bf16.mxu0 %vm2250_vm3, %v5591_v3  ;;  %v5922_v1 = vrot.slane %v1352_v32, %v6440_v59  ;;  %v6441_v3 = vld [vmem:[#allocation7_spill] sm:$0xff] }
 0x225   :  { %2781 = vmatmul.mubr.bf16.gmra.mrb[116].mxu1 %v5587_v51  ;;  %3360 = vmatmul.mubr.bf16.gmra.mrb[116].mxu0 %v5587_v51  ;;  %v3598_v51 = vld [vmem:[%s6400_s5] sm:$0xf] }
 0x226   :  { %4280 = vmatprep.mubr.msk.bf16.mxu1 %vm2250_vm3, %v5611_v53  ;;  %4297 = vmatprep.mubr.msk.bf16.mxu0 %vm2250_vm3, %v5611_v53  ;;  %v6442_v53 = vld [vmem:[#allocation9_spill] sm:$0xff]  ;;  %v5935_v42 = vrot.slane %v3598_v51, %v6439_v11  ;;  %v5939_v21 = vrot.slane %v3598_v51, %v6440_v59 }
 0x227   :  { %v5931_v7 = vrot.slane %v1352_v32, %v6442_v53  ;;  %v5949_v20 = vrot.slane %v3598_v51, %v6442_v53 }
 0x22d   :  { %2791 = vmatmul.mubr.bf16.gmra.mrb[120].mxu1 %v5607_v49  ;;  %3370 = vmatmul.mubr.bf16.gmra.mrb[120].mxu0 %v5607_v49  ;;  %v5928_v49 = vrot.slane %v1352_v32, %v6441_v3 }
 0x22e   :  { %4281 = vmatprep.mubr.msk.bf16.mxu1 %vm2250_vm3, %v5631_v23  ;;  %4298 = vmatprep.mubr.msk.bf16.mxu0 %vm2250_vm3, %v5631_v23 }
 0x235   :  { %2801 = vmatmul.mubr.bf16.gmra.mrb[124].mxu1 %v5627_v45  ;;  %3380 = vmatmul.mubr.bf16.gmra.mrb[124].mxu0 %v5627_v45 }
 0x236   :  { %4282 = vmatprep.mubr.msk.bf16.mxu1 %vm2250_vm3, %v5651_v52  ;;  %4299 = vmatprep.mubr.msk.bf16.mxu0 %vm2250_vm3, %v5651_v52 }
 0x23d   :  { %2811 = vmatmul.mubr.bf16.gmra.mrb[128].mxu1 %v5647_v12  ;;  %3390 = vmatmul.mubr.bf16.gmra.mrb[128].mxu0 %v5647_v12 }
 0x23e   :  { %4283 = vmatprep.mubr.msk.bf16.mxu1 %vm2250_vm3, %v5671_v34  ;;  %4300 = vmatprep.mubr.msk.bf16.mxu0 %vm2250_vm3, %v5671_v34  ;;  %v5943_v34 = vrot.slane %v3598_v51, %v6441_v3 }
 0x245   :  { %2821 = vmatmul.mubr.bf16.gmra.mrb[132].mxu1 %v6431_v31  ;;  %3400 = vmatmul.mubr.bf16.gmra.mrb[132].mxu0 %v6431_v31 }
 0x246   :  { %4284 = vmatprep.mubr.msk.bf16.mxu1 %vm2250_vm3, %v6432_v15  ;;  %4301 = vmatprep.mubr.msk.bf16.mxu0 %vm2250_vm3, %v6432_v15 }
 0x24d   :  { %2831 = vmatmul.mubr.bf16.gmra.mrb[136].mxu1 %v6433_v5  ;;  %3410 = vmatmul.mubr.bf16.gmra.mrb[136].mxu0 %v6433_v5 }
 0x24e   :  { %4285 = vmatprep.mubr.msk.bf16.mxu1 %vm2250_vm3, %v6434_v13  ;;  %4302 = vmatprep.mubr.msk.bf16.mxu0 %vm2250_vm3, %v6434_v13 }
 0x255   :  { %2841 = vmatmul.mubr.bf16.gmra.mrb[140].mxu1 %v6435_v0  ;;  %3420 = vmatmul.mubr.bf16.gmra.mrb[140].mxu0 %v6435_v0 }
 0x256   :  { %4286 = vmatprep.mubr.msk.bf16.mxu1 %vm2250_vm3, %v6436_v9  ;;  %4303 = vmatprep.mubr.msk.bf16.mxu0 %vm2250_vm3, %v6436_v9 }
 0x25d   :  { %2851 = vmatmul.mubr.bf16.gmra.mrb[144].mxu1 %v6437_v36  ;;  %3430 = vmatmul.mubr.bf16.gmra.mrb[144].mxu0 %v6437_v36 }
 0x25e   :  { %4287 = vmatprep.mubr.msk.bf16.mxu1 %vm2250_vm3, %v5751_v8  ;;  %4304 = vmatprep.mubr.msk.bf16.mxu0 %vm2250_vm3, %v5751_v8 }
 0x265   :  { %2861 = vmatmul.mubr.bf16.gmra.mrb[148].mxu1 %v6438_v28  ;;  %3440 = vmatmul.mubr.bf16.gmra.mrb[148].mxu0 %v6438_v28 }
 0x266   :  { %4288 = vmatprep.mubr.msk.bf16.mxu1 %vm2250_vm3, %v5773_v4  ;;  %4305 = vmatprep.mubr.msk.bf16.mxu0 %vm2250_vm3, %v5773_v4 }
 0x26d   :  { %2871 = vmatmul.mubr.bf16.gmra.mrb[152].mxu1 %v5771_v29  ;;  %3450 = vmatmul.mubr.bf16.gmra.mrb[152].mxu0 %v5771_v29 }
 0x26e   :  { %4289 = vmatprep.mubr.msk.bf16.mxu1 %vm2250_vm3, %v5789_v63  ;;  %4306 = vmatprep.mubr.msk.bf16.mxu0 %vm2250_vm3, %v5789_v63 }
 0x275   :  { %2881 = vmatmul.mubr.bf16.gmra.mrb[156].mxu1 %v5787_v35  ;;  %3460 = vmatmul.mubr.bf16.gmra.mrb[156].mxu0 %v5787_v35 }
 0x2d0   :  { %v2732_v45 = vpop.f32.mrb[96].mxu1  ;;  %v3311_v56 = vpop.f32.mrb[96].mxu0 }
 0x2d1   :  { %v4312_v23 = vadd.f32 %v2732_v45, %v5919_v17  ;;  %v4376_v12 = vadd.f32 %v3311_v56, %v5922_v1  ;;  %v2734_v2 = vpop.f32.mrb[97].mxu1  ;;  %v3313_v52 = vpop.f32.mrb[97].mxu0 }
 0x2d2   :  { %v4313_v40 = vadd.f32 %v2734_v2, %v5928_v49  ;;  %v4377_v39 = vadd.f32 %v3313_v52, %v5931_v7  ;;  %v2736_v19 = vpop.f32.mrb[98].mxu1  ;;  %v3315_v22 = vpop.f32.mrb[98].mxu0 }
 0x2d3   :  { %v3470_v57 = vmax.f32 %v4312_v23, 0.0  ;;  %v4314_v47 = vadd.f32 %v2736_v19, %v5919_v17  ;;  %v4378_v16 = vadd.f32 %v3315_v22, %v5922_v1  ;;  %v2738_v38 = vpop.f32.mrb[99].mxu1  ;;  %v3317_v8 = vpop.f32.mrb[99].mxu0  ;;  %v3472_v29 = vmax.f32 %v4376_v12, 0.0 }
 0x2d4   :  { %v3471_v24 = vmax.f32 %v4313_v40, 0.0  ;;  %v4315_v4 = vadd.f32 %v2738_v38, %v5928_v49  ;;  %v4379_v10 = vadd.f32 %v3317_v8, %v5931_v7  ;;  %v3473_v62 = vmax.f32 %v4377_v39, 0.0 }
 0x2d5   :  { %v3620_v43 = vmul.f32 %v5935_v42, %v3470_v57  ;;  %v3474_v41 = vmax.f32 %v4314_v47, 0.0  ;;  %v3476_v55 = vmax.f32 %v4378_v16, 0.0  ;;  %v3622_v30 = vmul.f32 %v5939_v21, %v3472_v29 }
 0x2d6   :  { %v3621_v58 = vmul.f32 %v5943_v34, %v3471_v24  ;;  %v3475_v33 = vmax.f32 %v4315_v4, 0.0  ;;  %v3477_v48 = vmax.f32 %v4379_v10, 0.0  ;;  %v3623_v18 = vmul.f32 %v5949_v20, %v3473_v62 }
 0x2d7   :  { %v3624_v25 = vmul.f32 %v5935_v42, %v3474_v41  ;;  %v3626_v27 = vmul.f32 %v5939_v21, %v3476_v55 }
 0x2d8   :  { %v3625_v60 = vmul.f32 %v5943_v34, %v3475_v33  ;;  %v2742_v61 = vpop.f32.mrb[100].mxu1  ;;  %v3321_v50 = vpop.f32.mrb[100].mxu0  ;;  %v3748_v14 = vadd.f32 %v3621_v58, %v3620_v43  ;;  %v3627_v32 = vmul.f32 %v5949_v20, %v3477_v48  ;;  %v3751_v56 = vsel %vm3750_vm4, %v3623_v18, 0.0 }
 0x2d9   :  { %v4316_v26 = vadd.f32 %v2742_v61, %v5919_v17  ;;  %v4380_v37 = vadd.f32 %v3321_v50, %v5922_v1  ;;  %v2744_v46 = vpop.f32.mrb[101].mxu1  ;;  %v3323_v6 = vpop.f32.mrb[101].mxu0 }
 0x2da   :  { %v3755_v54 = vadd.f32 %v3625_v60, %v3624_v25  ;;  %v4317_v35 = vadd.f32 %v2744_v46, %v5928_v49  ;;  %v4381_v44 = vadd.f32 %v3323_v6, %v5931_v7  ;;  %v2746_v63 = vpop.f32.mrb[102].mxu1  ;;  %v3325_v31 = vpop.f32.mrb[102].mxu0  ;;  %v3749_v15 = vadd.f32 %v3748_v14, %v3622_v30 }
 0x2db   :  { %v3478_v5 = vmax.f32 %v4316_v26, 0.0  ;;  %v3480_v13 = vmax.f32 %v4380_v37, 0.0  ;;  %v4318_v0 = vadd.f32 %v2746_v63, %v5919_v17  ;;  %v4382_v9 = vadd.f32 %v3325_v31, %v5922_v1  ;;  %v2748_v36 = vpop.f32.mrb[103].mxu1  ;;  %v3327_v28 = vpop.f32.mrb[103].mxu0 }
 0x2dc   :  { %v3479_v11 = vmax.f32 %v4317_v35, 0.0  ;;  %v4319_v59 = vadd.f32 %v2748_v36, %v5928_v49  ;;  %v4383_v51 = vadd.f32 %v3327_v28, %v5931_v7  ;;  %v3481_v53 = vmax.f32 %v4381_v44, 0.0 }
 0x2dd   :  { %v3628_v3 = vmul.f32 %v5935_v42, %v3478_v5  ;;  %v3482_v45 = vmax.f32 %v4318_v0, 0.0  ;;  %v3752_v2 = vadd.f32 %v3751_v56, %v3749_v15  ;;  %v3630_v52 = vmul.f32 %v5939_v21, %v3480_v13 }
 0x2de   :  { %v3629_v23 = vmul.f32 %v5943_v34, %v3479_v11  ;;  %v3483_v12 = vmax.f32 %v4319_v59, 0.0  ;;  %v3484_v39 = vmax.f32 %v4382_v9, 0.0  ;;  %v3756_v19 = vadd.f32 %v3755_v54, %v3626_v27 }
 0x2df   :  { %v3632_v40 = vmul.f32 %v5935_v42, %v3482_v45  ;;  %v3485_v57 = vmax.f32 %v4383_v51, 0.0  ;;  %3753 = vadd.xlane.f32.xlu0 %v3752_v2  ;;  %v3757_v38 = vsel %vm3750_vm4, %v3627_v32, 0.0  ;;  %v3631_v62 = vmul.f32 %v5949_v20, %v3481_v53 }
 0x2e0   :  { %v3633_v22 = vmul.f32 %v5943_v34, %v3483_v12  ;;  %v2752_v47 = vpop.f32.mrb[104].mxu1  ;;  %v3331_v16 = vpop.f32.mrb[104].mxu0  ;;  %v3761_v8 = vadd.f32 %v3629_v23, %v3628_v3  ;;  %v3758_v43 = vadd.f32 %v3757_v38, %v3756_v19  ;;  %v3634_v18 = vmul.f32 %v5939_v21, %v3484_v39 }
 0x2e1   :  { %v4320_v29 = vadd.f32 %v2752_v47, %v5919_v17  ;;  %v4384_v24 = vadd.f32 %v3331_v16, %v5922_v1  ;;  %v2754_v4 = vpop.f32.mrb[105].mxu1  ;;  %v3333_v10 = vpop.f32.mrb[105].mxu0  ;;  %v3635_v54 = vmul.f32 %v5949_v20, %v3485_v57  ;;  %v3763_v9 = vsel %vm3750_vm4, %v3631_v62, 0.0 }
 0x2e2   :  { %v3767_v41 = vadd.f32 %v3633_v22, %v3632_v40  ;;  %v4321_v55 = vadd.f32 %v2754_v4, %v5928_v49  ;;  %v4385_v58 = vadd.f32 %v3333_v10, %v5931_v7  ;;  %v2756_v33 = vpop.f32.mrb[106].mxu1  ;;  %v3335_v25 = vpop.f32.mrb[106].mxu0  ;;  %v3762_v30 = vadd.f32 %v3761_v8, %v3630_v52 }
 0x2e3   :  { %v3486_v60 = vmax.f32 %v4320_v29, 0.0  ;;  %v3488_v48 = vmax.f32 %v4384_v24, 0.0  ;;  %v4322_v61 = vadd.f32 %v2756_v33, %v5919_v17  ;;  %v4386_v50 = vadd.f32 %v3335_v25, %v5922_v1  ;;  %v2758_v14 = vpop.f32.mrb[107].mxu1  ;;  %v3337_v27 = vpop.f32.mrb[107].mxu0  ;;  %3759 = vadd.xlane.f32.xlu0 %v3758_v43 }
 0x2e4   :  { %v3487_v26 = vmax.f32 %v4321_v55, 0.0  ;;  %v3489_v37 = vmax.f32 %v4385_v58, 0.0  ;;  %v4323_v46 = vadd.f32 %v2758_v14, %v5928_v49  ;;  %v4387_v6 = vadd.f32 %v3337_v27, %v5931_v7 }
 0x2e5   :  { %v3636_v35 = vmul.f32 %v5935_v42, %v3486_v60  ;;  %v3490_v44 = vmax.f32 %v4322_v61, 0.0  ;;  %v3638_v63 = vmul.f32 %v5939_v21, %v3488_v48  ;;  %v3492_v0 = vmax.f32 %v4386_v50, 0.0 }
 0x2e6   :  { %v3637_v31 = vmul.f32 %v5943_v34, %v3487_v26  ;;  %v3491_v15 = vmax.f32 %v4323_v46, 0.0  ;;  %v3493_v5 = vmax.f32 %v4387_v6, 0.0  ;;  %v3768_v36 = vadd.f32 %v3767_v41, %v3634_v18 }
 0x2e7   :  { %v3640_v13 = vmul.f32 %v5935_v42, %v3490_v44  ;;  %v3639_v32 = vmul.f32 %v5949_v20, %v3489_v37  ;;  %v3764_v59 = vadd.f32 %v3763_v9, %v3762_v30  ;;  %v3769_v2 = vsel %vm3750_vm4, %v3635_v54, 0.0 }
 0x2e8   :  { %v3773_v28 = vadd.f32 %v3637_v31, %v3636_v35  ;;  %v3641_v11 = vmul.f32 %v5943_v34, %v3491_v15  ;;  %v2762_v51 = vpop.f32.mrb[108].mxu1  ;;  %v3341_v3 = vpop.f32.mrb[108].mxu0  ;;  %v3643_v53 = vmul.f32 %v5949_v20, %v3493_v5  ;;  %v3770_v57 = vadd.f32 %v3769_v2, %v3768_v36 }
 0x2e9   :  { %v4324_v45 = vadd.f32 %v2762_v51, %v5919_v17  ;;  %v4388_v56 = vadd.f32 %v3341_v3, %v5922_v1  ;;  %v2764_v23 = vpop.f32.mrb[109].mxu1  ;;  %v3343_v12 = vpop.f32.mrb[109].mxu0  ;;  %3765 = vadd.xlane.f32.xlu1 %v3764_v59  ;;  %v3642_v41 = vmul.f32 %v5939_v21, %v3492_v0  ;;  %v3775_v33 = vsel %vm3750_vm4, %v3639_v32, 0.0 }
 0x2ea   :  { %v3779_v52 = vadd.f32 %v3641_v11, %v3640_v13  ;;  %v4325_v40 = vadd.f32 %v2764_v23, %v5928_v49  ;;  %v4389_v39 = vadd.f32 %v3343_v12, %v5931_v7  ;;  %v2766_v19 = vpop.f32.mrb[110].mxu1  ;;  %v3345_v22 = vpop.f32.mrb[110].mxu0  ;;  %v3774_v14 = vadd.f32 %v3773_v28, %v3638_v63 }
 0x2eb   :  { %v3494_v47 = vmax.f32 %v4324_v45, 0.0  ;;  %v3496_v16 = vmax.f32 %v4388_v56, 0.0  ;;  %v4326_v38 = vadd.f32 %v2766_v19, %v5919_v17  ;;  %v4390_v8 = vadd.f32 %v3345_v22, %v5922_v1  ;;  %v2768_v29 = vpop.f32.mrb[111].mxu1  ;;  %v3347_v24 = vpop.f32.mrb[111].mxu0 }
 0x2ec   :  { %v3495_v4 = vmax.f32 %v4325_v40, 0.0  ;;  %v3497_v10 = vmax.f32 %v4389_v39, 0.0  ;;  %v4327_v43 = vadd.f32 %v2768_v29, %v5928_v49  ;;  %v4391_v62 = vadd.f32 %v3347_v24, %v5931_v7 }
 0x2ed   :  { %v3644_v55 = vmul.f32 %v5935_v42, %v3494_v47  ;;  %v3498_v58 = vmax.f32 %v4326_v38, 0.0  ;;  %v3646_v25 = vmul.f32 %v5939_v21, %v3496_v16  ;;  %v3500_v60 = vmax.f32 %v4390_v8, 0.0  ;;  %3771 = vadd.xlane.f32.xlu1 %v3770_v57 }
 0x2ee   :  { %v3645_v30 = vmul.f32 %v5943_v34, %v3495_v4  ;;  %v3499_v48 = vmax.f32 %v4327_v43, 0.0  ;;  %v3647_v61 = vmul.f32 %v5949_v20, %v3497_v10  ;;  %v3780_v27 = vadd.f32 %v3779_v52, %v3642_v41 }
 0x2ef   :  { %v3648_v50 = vmul.f32 %v5935_v42, %v3498_v58  ;;  %v3501_v46 = vmax.f32 %v4391_v62, 0.0  ;;  %v3781_v54 = vsel %vm3750_vm4, %v3643_v53, 0.0  ;;  %v3776_v35 = vadd.f32 %v3775_v33, %v3774_v14 }
 0x2f0   :  { %v3785_v26 = vadd.f32 %v3645_v30, %v3644_v55  ;;  %v3649_v37 = vmul.f32 %v5943_v34, %v3499_v48  ;;  %v2772_v6 = vpop.f32.mrb[112].mxu1  ;;  %v3351_v18 = vpop.f32.mrb[112].mxu0  ;;  %v3782_v15 = vadd.f32 %v3781_v54, %v3780_v27  ;;  %v3650_v52 = vmul.f32 %v5939_v21, %v3500_v60 }
 0x2f1   :  { %v4328_v44 = vadd.f32 %v2772_v6, %v5919_v17  ;;  %v4392_v31 = vadd.f32 %v3351_v18, %v5922_v1  ;;  %v2774_v5 = vpop.f32.mrb[113].mxu1  ;;  %v3353_v13 = vpop.f32.mrb[113].mxu0  ;;  %3777 = vadd.xlane.f32.xlu0 %v3776_v35  ;;  %v3651_v40 = vmul.f32 %v5949_v20, %v3501_v46  ;;  %v3787_v29 = vsel %vm3750_vm4, %v3647_v61, 0.0 }
 0x2f2   :  { %v3791_v0 = vadd.f32 %v3649_v37, %v3648_v50  ;;  %v4329_v63 = vadd.f32 %v2774_v5, %v5928_v49  ;;  %v4393_v9 = vadd.f32 %v3353_v13, %v5931_v7  ;;  %v2776_v36 = vpop.f32.mrb[114].mxu1  ;;  %v3355_v28 = vpop.f32.mrb[114].mxu0  ;;  %v3786_v32 = vadd.f32 %v3785_v26, %v3646_v25  ;;  %3783 = vadd.xlane.f32.xlu1 %v3782_v15 }
 0x2f3   :  { %v3502_v11 = vmax.f32 %v4328_v44, 0.0  ;;  %v3504_v59 = vmax.f32 %v4392_v31, 0.0  ;;  %v4330_v51 = vadd.f32 %v2776_v36, %v5919_v17  ;;  %v4394_v3 = vadd.f32 %v3355_v28, %v5922_v1  ;;  %v2778_v53 = vpop.f32.mrb[115].mxu1  ;;  %v3357_v45 = vpop.f32.mrb[115].mxu0 }
 0x2f4   :  { %v3503_v56 = vmax.f32 %v4329_v63, 0.0  ;;  %v3505_v23 = vmax.f32 %v4393_v9, 0.0  ;;  %v4331_v12 = vadd.f32 %v2778_v53, %v5928_v49  ;;  %v4395_v2 = vadd.f32 %v3357_v45, %v5931_v7 }
 0x2f5   :  { %v3652_v39 = vmul.f32 %v5935_v42, %v3502_v11  ;;  %v3506_v19 = vmax.f32 %v4330_v51, 0.0  ;;  %v3654_v22 = vmul.f32 %v5939_v21, %v3504_v59  ;;  %v3508_v8 = vmax.f32 %v4394_v3, 0.0 }
 0x2f6   :  { %v3653_v57 = vmul.f32 %v5943_v34, %v3503_v56  ;;  %v3507_v47 = vmax.f32 %v4331_v12, 0.0  ;;  %v3509_v16 = vmax.f32 %v4395_v2, 0.0  ;;  %v3792_v24 = vadd.f32 %v3791_v0, %v3650_v52 }
 0x2f7   :  { %v3656_v38 = vmul.f32 %v5935_v42, %v3506_v19  ;;  %v3655_v10 = vmul.f32 %v5949_v20, %v3505_v23  ;;  %v3788_v62 = vadd.f32 %v3787_v29, %v3786_v32  ;;  %v3793_v30 = vsel %vm3750_vm4, %v3651_v40, 0.0 }
 0x2f8   :  { %v3797_v4 = vadd.f32 %v3653_v57, %v3652_v39  ;;  %v3657_v43 = vmul.f32 %v5943_v34, %v3507_v47  ;;  %v2782_v41 = vpop.f32.mrb[116].mxu1  ;;  %v3361_v55 = vpop.f32.mrb[116].mxu0  ;;  %v3659_v58 = vmul.f32 %v5949_v20, %v3509_v16  ;;  %v3794_v50 = vadd.f32 %v3793_v30, %v3792_v24 }
 0x2f9   :  { %v4332_v33 = vadd.f32 %v2782_v41, %v5919_v17  ;;  %v4396_v25 = vadd.f32 %v3361_v55, %v5922_v1  ;;  %v2784_v60 = vpop.f32.mrb[117].mxu1  ;;  %v3363_v48 = vpop.f32.mrb[117].mxu0  ;;  %3789 = vadd.xlane.f32.xlu0 %v3788_v62  ;;  %v3658_v0 = vmul.f32 %v5939_v21, %v3508_v8  ;;  %v3799_v36 = vsel %vm3750_vm4, %v3655_v10, 0.0 }
 0x2fa   :  { %v3803_v61 = vadd.f32 %v3657_v43, %v3656_v38  ;;  %v4333_v14 = vadd.f32 %v2784_v60, %v5928_v49  ;;  %v4397_v27 = vadd.f32 %v3363_v48, %v5931_v7  ;;  %v2786_v26 = vpop.f32.mrb[118].mxu1  ;;  %v3365_v37 = vpop.f32.mrb[118].mxu0  ;;  %3795 = vadd.xlane.f32.xlu1 %v3794_v50  ;;  %v3798_v53 = vadd.f32 %v3797_v4, %v3654_v22 }
 0x2fb   :  { %v3510_v46 = vmax.f32 %v4332_v33, 0.0  ;;  %v3512_v6 = vmax.f32 %v4396_v25, 0.0  ;;  %v4334_v18 = vadd.f32 %v2786_v26, %v5919_v17  ;;  %v4398_v54 = vadd.f32 %v3365_v37, %v5922_v1  ;;  %v2788_v35 = vpop.f32.mrb[119].mxu1  ;;  %v3367_v44 = vpop.f32.mrb[119].mxu0 }
 0x2fc   :  { %v3511_v31 = vmax.f32 %v4333_v14, 0.0  ;;  %v3513_v15 = vmax.f32 %v4397_v27, 0.0  ;;  %v4335_v5 = vadd.f32 %v2788_v35, %v5928_v49  ;;  %v4399_v13 = vadd.f32 %v3367_v44, %v5931_v7 }
 0x2fd   :  { %v3660_v63 = vmul.f32 %v5935_v42, %v3510_v46  ;;  %v3514_v9 = vmax.f32 %v4334_v18, 0.0  ;;  %v3662_v28 = vmul.f32 %v5939_v21, %v3512_v6  ;;  %v3516_v11 = vmax.f32 %v4398_v54, 0.0 }
 0x2fe   :  { %v3661_v32 = vmul.f32 %v5943_v34, %v3511_v31  ;;  %v3515_v59 = vmax.f32 %v4335_v5, 0.0  ;;  %v3663_v51 = vmul.f32 %v5949_v20, %v3513_v15  ;;  %v3804_v45 = vadd.f32 %v3803_v61, %v3658_v0 }
 0x2ff   :  { %v3664_v3 = vmul.f32 %v5935_v42, %v3514_v9  ;;  %v3517_v12 = vmax.f32 %v4399_v13, 0.0  ;;  %v3805_v40 = vsel %vm3750_vm4, %v3659_v58, 0.0  ;;  %v3800_v39 = vadd.f32 %v3799_v36, %v3798_v53 }
 0x300   :  { %v3809_v56 = vadd.f32 %v3661_v32, %v3660_v63  ;;  %v3665_v23 = vmul.f32 %v5943_v34, %v3515_v59  ;;  %v2792_v2 = vpop.f32.mrb[120].mxu1  ;;  %v3371_v52 = vpop.f32.mrb[120].mxu0  ;;  %v3806_v47 = vadd.f32 %v3805_v40, %v3804_v45  ;;  %v3666_v61 = vmul.f32 %v5939_v21, %v3516_v11 }
 0x301   :  { %v4336_v19 = vadd.f32 %v2792_v2, %v5919_v17  ;;  %v4400_v57 = vadd.f32 %v3371_v52, %v5922_v1  ;;  %v2794_v16 = vpop.f32.mrb[121].mxu1  ;;  %v3373_v38 = vpop.f32.mrb[121].mxu0  ;;  %3801 = vadd.xlane.f32.xlu0 %v3800_v39  ;;  %v3667_v50 = vmul.f32 %v5949_v20, %v3517_v12  ;;  %v3811_v35 = vsel %vm3750_vm4, %v3663_v51, 0.0 }
 0x302   :  { %v3815_v8 = vadd.f32 %v3665_v23, %v3664_v3  ;;  %v4337_v22 = vadd.f32 %v2794_v16, %v5928_v49  ;;  %v4401_v29 = vadd.f32 %v3373_v38, %v5931_v7  ;;  %v2796_v24 = vpop.f32.mrb[122].mxu1  ;;  %v3375_v4 = vpop.f32.mrb[122].mxu0  ;;  %v3810_v10 = vadd.f32 %v3809_v56, %v3662_v28  ;;  %3807 = vadd.xlane.f32.xlu1 %v3806_v47 }
 0x303   :  { %v3518_v43 = vmax.f32 %v4336_v19, 0.0  ;;  %v3520_v62 = vmax.f32 %v4400_v57, 0.0  ;;  %v4338_v41 = vadd.f32 %v2796_v24, %v5919_v17  ;;  %v4402_v55 = vadd.f32 %v3375_v4, %v5922_v1  ;;  %v2798_v58 = vpop.f32.mrb[123].mxu1  ;;  %v3377_v33 = vpop.f32.mrb[123].mxu0 }
 0x304   :  { %v3519_v25 = vmax.f32 %v4337_v22, 0.0  ;;  %v3521_v30 = vmax.f32 %v4401_v29, 0.0  ;;  %v4339_v60 = vadd.f32 %v2798_v58, %v5928_v49  ;;  %v4403_v48 = vadd.f32 %v3377_v33, %v5931_v7 }
 0x305   :  { %v3668_v14 = vmul.f32 %v5935_v42, %v3518_v43  ;;  %v3522_v27 = vmax.f32 %v4338_v41, 0.0  ;;  %v3670_v26 = vmul.f32 %v5939_v21, %v3520_v62  ;;  %v3524_v54 = vmax.f32 %v4402_v55, 0.0 }
 0x306   :  { %v3669_v37 = vmul.f32 %v5943_v34, %v3519_v25  ;;  %v3523_v46 = vmax.f32 %v4339_v60, 0.0  ;;  %v3525_v6 = vmax.f32 %v4403_v48, 0.0  ;;  %v3816_v44 = vadd.f32 %v3815_v8, %v3666_v61 }
 0x307   :  { %v3672_v18 = vmul.f32 %v5935_v42, %v3522_v27  ;;  %v3671_v15 = vmul.f32 %v5949_v20, %v3521_v30  ;;  %v3812_v13 = vadd.f32 %v3811_v35, %v3810_v10  ;;  %v3817_v32 = vsel %vm3750_vm4, %v3667_v50, 0.0 }
 0x308   :  { %v3821_v31 = vadd.f32 %v3669_v37, %v3668_v14  ;;  %v3673_v5 = vmul.f32 %v5943_v34, %v3523_v46  ;;  %v2802_v0 = vpop.f32.mrb[124].mxu1  ;;  %v3381_v63 = vpop.f32.mrb[124].mxu0  ;;  %v3675_v9 = vmul.f32 %v5949_v20, %v3525_v6  ;;  %v3818_v3 = vadd.f32 %v3817_v32, %v3816_v44 }
 0x309   :  { %v4340_v36 = vadd.f32 %v2802_v0, %v5919_v17  ;;  %v4404_v28 = vadd.f32 %v3381_v63, %v5922_v1  ;;  %v2804_v11 = vpop.f32.mrb[125].mxu1  ;;  %v3383_v59 = vpop.f32.mrb[125].mxu0  ;;  %3813 = vadd.xlane.f32.xlu0 %v3812_v13  ;;  %v3674_v8 = vmul.f32 %v5939_v21, %v3524_v54  ;;  %v3823_v24 = vsel %vm3750_vm4, %v3671_v15, 0.0 }
 0x30a   :  { %v3827_v51 = vadd.f32 %v3673_v5, %v3672_v18  ;;  %v4341_v53 = vadd.f32 %v2804_v11, %v5928_v49  ;;  %v4405_v45 = vadd.f32 %v3383_v59, %v5931_v7  ;;  %v2806_v56 = vpop.f32.mrb[126].mxu1  ;;  %v3385_v23 = vpop.f32.mrb[126].mxu0  ;;  %3819 = vadd.xlane.f32.xlu1 %v3818_v3  ;;  %v3822_v58 = vadd.f32 %v3821_v31, %v3670_v26 }
 0x30b   :  { %v3526_v12 = vmax.f32 %v4340_v36, 0.0  ;;  %v3528_v2 = vmax.f32 %v4404_v28, 0.0  ;;  %v4342_v52 = vadd.f32 %v2806_v56, %v5919_v17  ;;  %v4406_v40 = vadd.f32 %v3385_v23, %v5922_v1  ;;  %v2808_v39 = vpop.f32.mrb[127].mxu1  ;;  %v3387_v19 = vpop.f32.mrb[127].mxu0 }
 0x30c   :  { %v3527_v57 = vmax.f32 %v4341_v53, 0.0  ;;  %v3529_v47 = vmax.f32 %v4405_v45, 0.0  ;;  %v4343_v16 = vadd.f32 %v2808_v39, %v5928_v49  ;;  %v4407_v38 = vadd.f32 %v3387_v19, %v5931_v7 }
 0x30d   :  { %v3676_v22 = vmul.f32 %v5935_v42, %v3526_v12  ;;  %v3530_v29 = vmax.f32 %v4342_v52, 0.0  ;;  %v3678_v4 = vmul.f32 %v5939_v21, %v3528_v2  ;;  %v3532_v43 = vmax.f32 %v4406_v40, 0.0 }
 0x30e   :  { %v3677_v10 = vmul.f32 %v5943_v34, %v3527_v57  ;;  %v3531_v62 = vmax.f32 %v4343_v16, 0.0  ;;  %v3679_v41 = vmul.f32 %v5949_v20, %v3529_v47  ;;  %v3828_v33 = vadd.f32 %v3827_v51, %v3674_v8 }
 0x30f   :  { %v3680_v55 = vmul.f32 %v5935_v42, %v3530_v29  ;;  %v3533_v60 = vmax.f32 %v4407_v38, 0.0  ;;  %v3829_v50 = vsel %vm3750_vm4, %v3675_v9, 0.0  ;;  %v3824_v14 = vadd.f32 %v3823_v24, %v3822_v58 }
 0x310   :  { %v3833_v25 = vadd.f32 %v3677_v10, %v3676_v22  ;;  %v3681_v30 = vmul.f32 %v5943_v34, %v3531_v62  ;;  %v2812_v48 = vpop.f32.mrb[128].mxu1  ;;  %v3391_v61 = vpop.f32.mrb[128].mxu0  ;;  %v3830_v46 = vadd.f32 %v3829_v50, %v3828_v33  ;;  %v3682_v51 = vmul.f32 %v5939_v21, %v3532_v43 }
 0x311   :  { %v4344_v27 = vadd.f32 %v2812_v48, %v5919_v17  ;;  %v4408_v37 = vadd.f32 %v3391_v61, %v5922_v1  ;;  %v2814_v6 = vpop.f32.mrb[129].mxu1  ;;  %v3393_v18 = vpop.f32.mrb[129].mxu0  ;;  %3825 = vadd.xlane.f32.xlu0 %v3824_v14  ;;  %v3683_v3 = vmul.f32 %v5949_v20, %v3533_v60  ;;  %v3835_v39 = vsel %vm3750_vm4, %v3679_v41, 0.0 }
 0x312   :  { %v3839_v54 = vadd.f32 %v3681_v30, %v3680_v55  ;;  %v4345_v26 = vadd.f32 %v2814_v6, %v5928_v49  ;;  %v4409_v35 = vadd.f32 %v3393_v18, %v5931_v7  ;;  %v2816_v44 = vpop.f32.mrb[130].mxu1  ;;  %v3395_v31 = vpop.f32.mrb[130].mxu0  ;;  %v3834_v15 = vadd.f32 %v3833_v25, %v3678_v4  ;;  %3831 = vadd.xlane.f32.xlu1 %v3830_v46 }
 0x313   :  { %v3534_v5 = vmax.f32 %v4344_v27, 0.0  ;;  %v3536_v13 = vmax.f32 %v4408_v37, 0.0  ;;  %v4346_v0 = vadd.f32 %v2816_v44, %v5919_v17  ;;  %v4410_v63 = vadd.f32 %v3395_v31, %v5922_v1  ;;  %v2818_v9 = vpop.f32.mrb[131].mxu1  ;;  %v3397_v36 = vpop.f32.mrb[131].mxu0 }
 0x314   :  { %v3535_v28 = vmax.f32 %v4345_v26, 0.0  ;;  %v3537_v32 = vmax.f32 %v4409_v35, 0.0  ;;  %v4347_v11 = vadd.f32 %v2818_v9, %v5928_v49  ;;  %v4411_v59 = vadd.f32 %v3397_v36, %v5931_v7 }
 0x315   :  { %v3684_v53 = vmul.f32 %v5935_v42, %v3534_v5  ;;  %v3538_v45 = vmax.f32 %v4346_v0, 0.0  ;;  %v3686_v56 = vmul.f32 %v5939_v21, %v3536_v13  ;;  %v3540_v40 = vmax.f32 %v4410_v63, 0.0 }
 0x316   :  { %v3685_v23 = vmul.f32 %v5943_v34, %v3535_v28  ;;  %v3539_v12 = vmax.f32 %v4347_v11, 0.0  ;;  %v3541_v2 = vmax.f32 %v4411_v59, 0.0  ;;  %v3840_v19 = vadd.f32 %v3839_v54, %v3682_v51 }
 0x317   :  { %v3688_v52 = vmul.f32 %v5935_v42, %v3538_v45  ;;  %v3687_v47 = vmul.f32 %v5949_v20, %v3537_v32  ;;  %v3836_v38 = vadd.f32 %v3835_v39, %v3834_v15  ;;  %v3841_v10 = vsel %vm3750_vm4, %v3683_v3, 0.0 }
 0x318   :  { %v3845_v57 = vadd.f32 %v3685_v23, %v3684_v53  ;;  %v3689_v16 = vmul.f32 %v5943_v34, %v3539_v12  ;;  %v2822_v8 = vpop.f32.mrb[132].mxu1  ;;  %v3401_v22 = vpop.f32.mrb[132].mxu0  ;;  %v3691_v29 = vmul.f32 %v5949_v20, %v3541_v2  ;;  %v3842_v55 = vadd.f32 %v3841_v10, %v3840_v19 }
 0x319   :  { %v4348_v24 = vadd.f32 %v2822_v8, %v5919_v17  ;;  %v4412_v4 = vadd.f32 %v3401_v22, %v5922_v1  ;;  %v2824_v43 = vpop.f32.mrb[133].mxu1  ;;  %v3403_v62 = vpop.f32.mrb[133].mxu0  ;;  %3837 = vadd.xlane.f32.xlu0 %v3836_v38  ;;  %v3690_v54 = vmul.f32 %v5939_v21, %v3540_v40  ;;  %v3847_v44 = vsel %vm3750_vm4, %v3687_v47, 0.0 }
 0x31a   :  { %v3851_v41 = vadd.f32 %v3689_v16, %v3688_v52  ;;  %v4349_v58 = vadd.f32 %v2824_v43, %v5928_v49  ;;  %v4413_v33 = vadd.f32 %v3403_v62, %v5931_v7  ;;  %v2826_v25 = vpop.f32.mrb[134].mxu1  ;;  %v3405_v30 = vpop.f32.mrb[134].mxu0  ;;  %3843 = vadd.xlane.f32.xlu1 %v3842_v55  ;;  %v3846_v9 = vadd.f32 %v3845_v57, %v3686_v56 }
 0x31b   :  { %v3542_v60 = vmax.f32 %v4348_v24, 0.0  ;;  %v3544_v48 = vmax.f32 %v4412_v4, 0.0  ;;  %v4350_v61 = vadd.f32 %v2826_v25, %v5919_v17  ;;  %v4414_v50 = vadd.f32 %v3405_v30, %v5922_v1  ;;  %v2828_v14 = vpop.f32.mrb[135].mxu1  ;;  %v3407_v27 = vpop.f32.mrb[135].mxu0 }
 0x31c   :  { %v3543_v37 = vmax.f32 %v4349_v58, 0.0  ;;  %v3545_v46 = vmax.f32 %v4413_v33, 0.0  ;;  %v4351_v6 = vadd.f32 %v2828_v14, %v5928_v49  ;;  %v4415_v18 = vadd.f32 %v3407_v27, %v5931_v7 }
 0x31d   :  { %v3692_v26 = vmul.f32 %v5935_v42, %v3542_v60  ;;  %v3546_v35 = vmax.f32 %v4350_v61, 0.0  ;;  %v3694_v31 = vmul.f32 %v5939_v21, %v3544_v48  ;;  %v3548_v5 = vmax.f32 %v4414_v50, 0.0 }
 0x31e   :  { %v3693_v15 = vmul.f32 %v5943_v34, %v3543_v37  ;;  %v3547_v13 = vmax.f32 %v4351_v6, 0.0  ;;  %v3695_v0 = vmul.f32 %v5949_v20, %v3545_v46  ;;  %v3852_v36 = vadd.f32 %v3851_v41, %v3690_v54 }
 0x31f   :  { %v3696_v63 = vmul.f32 %v5935_v42, %v3546_v35  ;;  %v3549_v11 = vmax.f32 %v4415_v18, 0.0  ;;  %v3853_v3 = vsel %vm3750_vm4, %v3691_v29, 0.0  ;;  %v3848_v53 = vadd.f32 %v3847_v44, %v3846_v9 }
 0x320   :  { %v3857_v28 = vadd.f32 %v3693_v15, %v3692_v26  ;;  %v3697_v32 = vmul.f32 %v5943_v34, %v3547_v13  ;;  %v2832_v59 = vpop.f32.mrb[136].mxu1  ;;  %v3411_v51 = vpop.f32.mrb[136].mxu0  ;;  %v3854_v12 = vadd.f32 %v3853_v3, %v3852_v36  ;;  %v3698_v41 = vmul.f32 %v5939_v21, %v3548_v5 }
 0x321   :  { %v4352_v45 = vadd.f32 %v2832_v59, %v5919_v17  ;;  %v4416_v23 = vadd.f32 %v3411_v51, %v5922_v1  ;;  %v2834_v2 = vpop.f32.mrb[137].mxu1  ;;  %v3413_v52 = vpop.f32.mrb[137].mxu0  ;;  %3849 = vadd.xlane.f32.xlu0 %v3848_v53  ;;  %v3699_v55 = vmul.f32 %v5949_v20, %v3549_v11  ;;  %v3859_v14 = vsel %vm3750_vm4, %v3695_v0, 0.0 }
 0x322   :  { %v3863_v40 = vadd.f32 %v3697_v32, %v3696_v63  ;;  %v4353_v56 = vadd.f32 %v2834_v2, %v5928_v49  ;;  %v4417_v39 = vadd.f32 %v3413_v52, %v5931_v7  ;;  %v2836_v19 = vpop.f32.mrb[138].mxu1  ;;  %v3415_v57 = vpop.f32.mrb[138].mxu0  ;;  %v3858_v47 = vadd.f32 %v3857_v28, %v3694_v31  ;;  %3855 = vadd.xlane.f32.xlu1 %v3854_v12 }
 0x323   :  { %v3550_v16 = vmax.f32 %v4352_v45, 0.0  ;;  %v3552_v38 = vmax.f32 %v4416_v23, 0.0  ;;  %v4354_v8 = vadd.f32 %v2836_v19, %v5919_v17  ;;  %v4418_v22 = vadd.f32 %v3415_v57, %v5922_v1  ;;  %v2838_v29 = vpop.f32.mrb[139].mxu1  ;;  %v3417_v24 = vpop.f32.mrb[139].mxu0 }
 0x324   :  { %v3551_v4 = vmax.f32 %v4353_v56, 0.0  ;;  %v3553_v10 = vmax.f32 %v4417_v39, 0.0  ;;  %v4355_v43 = vadd.f32 %v2838_v29, %v5928_v49  ;;  %v4419_v62 = vadd.f32 %v3417_v24, %v5931_v7 }
 0x325   :  { %v3700_v58 = vmul.f32 %v5935_v42, %v3550_v16  ;;  %v3554_v33 = vmax.f32 %v4354_v8, 0.0  ;;  %v3702_v25 = vmul.f32 %v5939_v21, %v3552_v38  ;;  %v3556_v50 = vmax.f32 %v4418_v22, 0.0 }
 0x326   :  { %v3701_v30 = vmul.f32 %v5943_v34, %v3551_v4  ;;  %v3555_v60 = vmax.f32 %v4355_v43, 0.0  ;;  %v3557_v48 = vmax.f32 %v4419_v62, 0.0  ;;  %v3864_v27 = vadd.f32 %v3863_v40, %v3698_v41 }
 0x327   :  { %v3704_v61 = vmul.f32 %v5935_v42, %v3554_v33  ;;  %v3703_v46 = vmul.f32 %v5949_v20, %v3553_v10  ;;  %v3860_v18 = vadd.f32 %v3859_v14, %v3858_v47  ;;  %v3865_v15 = vsel %vm3750_vm4, %v3699_v55, 0.0 }
 0x328   :  { %v3869_v37 = vadd.f32 %v3701_v30, %v3700_v58  ;;  %v3705_v6 = vmul.f32 %v5943_v34, %v3555_v60  ;;  %v2842_v54 = vpop.f32.mrb[140].mxu1  ;;  %v3421_v26 = vpop.f32.mrb[140].mxu0  ;;  %v3707_v35 = vmul.f32 %v5949_v20, %v3557_v48  ;;  %v3866_v63 = vadd.f32 %v3865_v15, %v3864_v27 }
 0x329   :  { %v4356_v44 = vadd.f32 %v2842_v54, %v5919_v17  ;;  %v4420_v31 = vadd.f32 %v3421_v26, %v5922_v1  ;;  %v2844_v5 = vpop.f32.mrb[141].mxu1  ;;  %v3423_v13 = vpop.f32.mrb[141].mxu0  ;;  %3861 = vadd.xlane.f32.xlu0 %v3860_v18  ;;  %v3706_v40 = vmul.f32 %v5939_v21, %v3556_v50  ;;  %v3871_v19 = vsel %vm3750_vm4, %v3703_v46, 0.0 }
 0x32a   :  { %v3875_v0 = vadd.f32 %v3705_v6, %v3704_v61  ;;  %v4357_v9 = vadd.f32 %v2844_v5, %v5928_v49  ;;  %v4421_v36 = vadd.f32 %v3423_v13, %v5931_v7  ;;  %v2846_v28 = vpop.f32.mrb[142].mxu1  ;;  %v3425_v32 = vpop.f32.mrb[142].mxu0  ;;  %3867 = vadd.xlane.f32.xlu1 %v3866_v63  ;;  %v3870_v29 = vadd.f32 %v3869_v37, %v3702_v25 }
 0x32b   :  { %v3558_v11 = vmax.f32 %v4356_v44, 0.0  ;;  %v3560_v59 = vmax.f32 %v4420_v31, 0.0  ;;  %v4358_v51 = vadd.f32 %v2846_v28, %v5919_v17  ;;  %v4422_v3 = vadd.f32 %v3425_v32, %v5922_v1  ;;  %v2848_v53 = vpop.f32.mrb[143].mxu1  ;;  %v3427_v45 = vpop.f32.mrb[143].mxu0 }
 0x32c   :  { %v3559_v23 = vmax.f32 %v4357_v9, 0.0  ;;  %v3561_v12 = vmax.f32 %v4421_v36, 0.0  ;;  %v4359_v2 = vadd.f32 %v2848_v53, %v5928_v49  ;;  %v4423_v52 = vadd.f32 %v3427_v45, %v5931_v7 }
 0x32d   :  { %v3708_v56 = vmul.f32 %v5935_v42, %v3558_v11  ;;  %v3562_v39 = vmax.f32 %v4358_v51, 0.0  ;;  %v3710_v57 = vmul.f32 %v5939_v21, %v3560_v59  ;;  %v3564_v16 = vmax.f32 %v4422_v3, 0.0 }
 0x32e   :  { %v3709_v47 = vmul.f32 %v5943_v34, %v3559_v23  ;;  %v3563_v38 = vmax.f32 %v4359_v2, 0.0  ;;  %v3711_v8 = vmul.f32 %v5949_v20, %v3561_v12  ;;  %v3876_v24 = vadd.f32 %v3875_v0, %v3706_v40 }
 0x32f   :  { %v3712_v22 = vmul.f32 %v5935_v42, %v3562_v39  ;;  %v3565_v43 = vmax.f32 %v4423_v52, 0.0  ;;  %v3877_v55 = vsel %vm3750_vm4, %v3707_v35, 0.0  ;;  %v3872_v58 = vadd.f32 %v3871_v19, %v3870_v29 }
 0x330   :  { %v3881_v4 = vadd.f32 %v3709_v47, %v3708_v56  ;;  %v3713_v10 = vmul.f32 %v5943_v34, %v3563_v38  ;;  %v2852_v62 = vpop.f32.mrb[144].mxu1  ;;  %v3431_v41 = vpop.f32.mrb[144].mxu0  ;;  %v3878_v60 = vadd.f32 %v3877_v55, %v3876_v24  ;;  %v3714_v0 = vmul.f32 %v5939_v21, %v3564_v16 }
 0x331   :  { %v4360_v33 = vadd.f32 %v2852_v62, %v5919_v17  ;;  %v4424_v30 = vadd.f32 %v3431_v41, %v5922_v1  ;;  %v2854_v48 = vpop.f32.mrb[145].mxu1  ;;  %v3433_v61 = vpop.f32.mrb[145].mxu0  ;;  %3873 = vadd.xlane.f32.xlu0 %v3872_v58  ;;  %v3715_v63 = vmul.f32 %v5949_v20, %v3565_v43  ;;  %v3883_v53 = vsel %vm3750_vm4, %v3711_v8, 0.0 }
 0x332   :  { %v3887_v50 = vadd.f32 %v3713_v10, %v3712_v22  ;;  %v4361_v25 = vadd.f32 %v2854_v48, %v5928_v49  ;;  %v4425_v14 = vadd.f32 %v3433_v61, %v5931_v7  ;;  %v2856_v27 = vpop.f32.mrb[146].mxu1  ;;  %v3435_v37 = vpop.f32.mrb[146].mxu0  ;;  %v3882_v46 = vadd.f32 %v3881_v4, %v3710_v57  ;;  %3879 = vadd.xlane.f32.xlu1 %v3878_v60 }
 0x333   :  { %v3566_v6 = vmax.f32 %v4360_v33, 0.0  ;;  %v3568_v18 = vmax.f32 %v4424_v30, 0.0  ;;  %v4362_v54 = vadd.f32 %v2856_v27, %v5919_v17  ;;  %v4426_v26 = vadd.f32 %v3435_v37, %v5922_v1  ;;  %v2858_v35 = vpop.f32.mrb[147].mxu1  ;;  %v3437_v44 = vpop.f32.mrb[147].mxu0 }
 0x334   :  { %v3567_v31 = vmax.f32 %v4361_v25, 0.0  ;;  %v3569_v15 = vmax.f32 %v4425_v14, 0.0  ;;  %v4363_v5 = vadd.f32 %v2858_v35, %v5928_v49  ;;  %v4427_v13 = vadd.f32 %v3437_v44, %v5931_v7 }
 0x335   :  { %v3716_v9 = vmul.f32 %v5935_v42, %v3566_v6  ;;  %v3570_v36 = vmax.f32 %v4362_v54, 0.0  ;;  %v3718_v28 = vmul.f32 %v5939_v21, %v3568_v18  ;;  %v3572_v3 = vmax.f32 %v4426_v26, 0.0 }
 0x336   :  { %v3717_v32 = vmul.f32 %v5943_v34, %v3567_v31  ;;  %v3571_v11 = vmax.f32 %v4363_v5, 0.0  ;;  %v3573_v59 = vmax.f32 %v4427_v13, 0.0  ;;  %v3888_v45 = vadd.f32 %v3887_v50, %v3714_v0 }
 0x337   :  { %v3720_v51 = vmul.f32 %v5935_v42, %v3570_v36  ;;  %v3719_v12 = vmul.f32 %v5949_v20, %v3569_v15  ;;  %v3884_v52 = vadd.f32 %v3883_v53, %v3882_v46  ;;  %v3889_v47 = vsel %vm3750_vm4, %v3715_v63, 0.0 }
 0x338   :  { %v3893_v23 = vadd.f32 %v3717_v32, %v3716_v9  ;;  %v3721_v2 = vmul.f32 %v5943_v34, %v3571_v11  ;;  %v2862_v40 = vpop.f32.mrb[148].mxu1  ;;  %v3441_v56 = vpop.f32.mrb[148].mxu0  ;;  %v3723_v39 = vmul.f32 %v5949_v20, %v3573_v59  ;;  %v3890_v22 = vadd.f32 %v3889_v47, %v3888_v45 }
 0x339   :  { %v4364_v19 = vadd.f32 %v2862_v40, %v5919_v17  ;;  %v4428_v57 = vadd.f32 %v3441_v56, %v5922_v1  ;;  %v2864_v16 = vpop.f32.mrb[149].mxu1  ;;  %v3443_v38 = vpop.f32.mrb[149].mxu0  ;;  %3885 = vadd.xlane.f32.xlu0 %v3884_v52  ;;  %v3722_v50 = vmul.f32 %v5939_v21, %v3572_v3  ;;  %v3895_v27 = vsel %vm3750_vm4, %v3719_v12, 0.0 }
 0x33a   :  { %v3899_v8 = vadd.f32 %v3721_v2, %v3720_v51  ;;  %v4365_v29 = vadd.f32 %v2864_v16, %v5928_v49  ;;  %v4429_v24 = vadd.f32 %v3443_v38, %v5931_v7  ;;  %v2866_v4 = vpop.f32.mrb[150].mxu1  ;;  %v3445_v10 = vpop.f32.mrb[150].mxu0  ;;  %3891 = vadd.xlane.f32.xlu1 %v3890_v22  ;;  %v3894_v35 = vadd.f32 %v3893_v23, %v3718_v28 }
 0x33b   :  { %v3574_v43 = vmax.f32 %v4364_v19, 0.0  ;;  %v3576_v62 = vmax.f32 %v4428_v57, 0.0  ;;  %v4366_v41 = vadd.f32 %v2866_v4, %v5919_v17  ;;  %v4430_v55 = vadd.f32 %v3445_v10, %v5922_v1  ;;  %v2868_v58 = vpop.f32.mrb[151].mxu1  ;;  %v3447_v33 = vpop.f32.mrb[151].mxu0 }
 0x33c   :  { %v3575_v30 = vmax.f32 %v4365_v29, 0.0  ;;  %v3577_v60 = vmax.f32 %v4429_v24, 0.0  ;;  %v4367_v48 = vadd.f32 %v2868_v58, %v5928_v49  ;;  %v4431_v61 = vadd.f32 %v3447_v33, %v5931_v7 }
 0x33d   :  { %v3724_v25 = vmul.f32 %v5935_v42, %v3574_v43  ;;  %v3578_v14 = vmax.f32 %v4366_v41, 0.0  ;;  %v3726_v37 = vmul.f32 %v5939_v21, %v3576_v62  ;;  %v3580_v6 = vmax.f32 %v4430_v55, 0.0 }
 0x33e   :  { %v3725_v46 = vmul.f32 %v5943_v34, %v3575_v30  ;;  %v3579_v18 = vmax.f32 %v4367_v48, 0.0  ;;  %v3727_v54 = vmul.f32 %v5949_v20, %v3577_v60  ;;  %v3900_v44 = vadd.f32 %v3899_v8, %v3722_v50 }
 0x33f   :  { %v3728_v26 = vmul.f32 %v5935_v42, %v3578_v14  ;;  %v3581_v5 = vmax.f32 %v4431_v61, 0.0  ;;  %v3901_v63 = vsel %vm3750_vm4, %v3723_v39, 0.0  ;;  %v3896_v9 = vadd.f32 %v3895_v27, %v3894_v35 }
 0x340   :  { %v3905_v31 = vadd.f32 %v3725_v46, %v3724_v25  ;;  %v3729_v15 = vmul.f32 %v5943_v34, %v3579_v18  ;;  %v2872_v13 = vpop.f32.mrb[152].mxu1  ;;  %v3451_v0 = vpop.f32.mrb[152].mxu0  ;;  %v3902_v11 = vadd.f32 %v3901_v63, %v3900_v44  ;;  %v3730_v8 = vmul.f32 %v5939_v21, %v3580_v6 }
 0x341   :  { %v4368_v36 = vadd.f32 %v2872_v13, %v5919_v17  ;;  %v4432_v32 = vadd.f32 %v3451_v0, %v5922_v1  ;;  %v2874_v59 = vpop.f32.mrb[153].mxu1  ;;  %v3453_v51 = vpop.f32.mrb[153].mxu0  ;;  %3897 = vadd.xlane.f32.xlu0 %v3896_v9  ;;  %v3731_v22 = vmul.f32 %v5949_v20, %v3581_v5  ;;  %v3907_v58 = vsel %vm3750_vm4, %v3727_v54, 0.0 }
 0x342   :  { %v3911_v3 = vadd.f32 %v3729_v15, %v3728_v26  ;;  %v4369_v28 = vadd.f32 %v2874_v59, %v5928_v49  ;;  %v4433_v53 = vadd.f32 %v3453_v51, %v5931_v7  ;;  %v2876_v45 = vpop.f32.mrb[154].mxu1  ;;  %v3455_v23 = vpop.f32.mrb[154].mxu0  ;;  %v3906_v12 = vadd.f32 %v3905_v31, %v3726_v37  ;;  %3903 = vadd.xlane.f32.xlu1 %v3902_v11 }
 0x343   :  { %v3582_v2 = vmax.f32 %v4368_v36, 0.0  ;;  %v3584_v52 = vmax.f32 %v4432_v32, 0.0  ;;  %v4370_v40 = vadd.f32 %v2876_v45, %v5919_v17  ;;  %v4434_v56 = vadd.f32 %v3455_v23, %v5922_v1  ;;  %v2878_v39 = vpop.f32.mrb[155].mxu1  ;;  %v3457_v19 = vpop.f32.mrb[155].mxu0 }
 0x344   :  { %v3583_v57 = vmax.f32 %v4369_v28, 0.0  ;;  %v3585_v47 = vmax.f32 %v4433_v53, 0.0  ;;  %v4371_v16 = vadd.f32 %v2878_v39, %v5928_v49  ;;  %v4435_v38 = vadd.f32 %v3457_v19, %v5931_v7 }
 0x345   :  { %v3732_v29 = vmul.f32 %v5935_v42, %v3582_v2  ;;  %v3586_v24 = vmax.f32 %v4370_v40, 0.0  ;;  %v3734_v4 = vmul.f32 %v5939_v21, %v3584_v52  ;;  %v3588_v55 = vmax.f32 %v4434_v56, 0.0 }
 0x346   :  { %v3733_v10 = vmul.f32 %v5943_v34, %v3583_v57  ;;  %v3587_v43 = vmax.f32 %v4371_v16, 0.0  ;;  %v3589_v62 = vmax.f32 %v4435_v38, 0.0  ;;  %v3912_v33 = vadd.f32 %v3911_v3, %v3730_v8 }
 0x347   :  { %v3736_v41 = vmul.f32 %v5935_v42, %v3586_v24  ;;  %v3735_v60 = vmul.f32 %v5949_v20, %v3585_v47  ;;  %v3908_v61 = vadd.f32 %v3907_v58, %v3906_v12  ;;  %v3913_v46 = vsel %vm3750_vm4, %v3731_v22, 0.0 }
 0x348   :  { %v3917_v30 = vadd.f32 %v3733_v10, %v3732_v29  ;;  %v3737_v48 = vmul.f32 %v5943_v34, %v3587_v43  ;;  %v2882_v50 = vpop.f32.mrb[156].mxu1  ;;  %v3461_v25 = vpop.f32.mrb[156].mxu0  ;;  %v3739_v14 = vmul.f32 %v5949_v20, %v3589_v62  ;;  %v3914_v26 = vadd.f32 %v3913_v46, %v3912_v33 }
 0x349   :  { %v4372_v27 = vadd.f32 %v2882_v50, %v5919_v17  ;;  %v4436_v37 = vadd.f32 %v3461_v25, %v5922_v1  ;;  %v2884_v6 = vpop.f32.mrb[157].mxu1  ;;  %v3463_v18 = vpop.f32.mrb[157].mxu0  ;;  %3909 = vadd.xlane.f32.xlu0 %v3908_v61  ;;  %v3738_v3 = vmul.f32 %v5939_v21, %v3588_v55  ;;  %v3919_v45 = vsel %vm3750_vm4, %v3735_v60, 0.0 }
 0x34a   :  { %v3923_v54 = vadd.f32 %v3737_v48, %v3736_v41  ;;  %v4373_v35 = vadd.f32 %v2884_v6, %v5928_v49  ;;  %v4437_v44 = vadd.f32 %v3463_v18, %v5931_v7  ;;  %v2886_v31 = vpop.f32.mrb[158].mxu1  ;;  %v3465_v15 = vpop.f32.mrb[158].mxu0  ;;  %3915 = vadd.xlane.f32.xlu1 %v3914_v26  ;;  %v3918_v40 = vadd.f32 %v3917_v30, %v3734_v4 }
 0x34b   :  { %v3590_v5 = vmax.f32 %v4372_v27, 0.0  ;;  %v3592_v13 = vmax.f32 %v4436_v37, 0.0  ;;  %v4374_v0 = vadd.f32 %v2886_v31, %v5919_v17  ;;  %v4438_v63 = vadd.f32 %v3465_v15, %v5922_v1  ;;  %v2888_v9 = vpop.f32.mrb[159].mxu1  ;;  %v3467_v36 = vpop.f32.mrb[159].mxu0 }
 0x34c   :  { %v3591_v32 = vmax.f32 %v4373_v35, 0.0  ;;  %v3593_v11 = vmax.f32 %v4437_v44, 0.0  ;;  %v4375_v59 = vadd.f32 %v2888_v9, %v5928_v49  ;;  %v4439_v51 = vadd.f32 %v3467_v36, %v5931_v7 }
 0x34d   :  { %v3740_v28 = vmul.f32 %v5935_v42, %v3590_v5  ;;  %v3594_v53 = vmax.f32 %v4374_v0, 0.0  ;;  %v3596_v23 = vmax.f32 %v4438_v63, 0.0  ;;  %v3924_v49 = vadd.f32 %v3923_v54, %v3738_v3 }
 0x34e   :  { %v3741_v17 = vmul.f32 %v5943_v34, %v3591_v32  ;;  %v3595_v1 = vmax.f32 %v4375_v59, 0.0  ;;  %v3597_v12 = vmax.f32 %v4439_v51, 0.0  ;;  %v3743_v2 = vmul.f32 %v5949_v20, %v3593_v11 }
 0x34f   :  { %v3744_v52 = vmul.f32 %v5935_v42, %v3594_v53  ;;  %v3742_v7 = vmul.f32 %v5939_v21, %v3592_v13  ;;  %v3925_v19 = vsel %vm3750_vm4, %v3739_v14, 0.0  ;;  %v3920_v47 = vadd.f32 %v3919_v45, %v3918_v40 }
 0x350   :  { %v3929_v56 = vadd.f32 %v3741_v17, %v3740_v28  ;;  %v3745_v39 = vmul.f32 %v5943_v34, %v3595_v1  ;;  %v3747_v57 = vmul.f32 %v5949_v20, %v3597_v12  ;;  %v3926_v16 = vadd.f32 %v3925_v19, %v3924_v49  ;;  %v6233_v34 = vld [vmem:[#allocation2] ss:$0 sm:$0xff] }
 0x351   :  { %v3746_v38 = vmul.f32 %v5939_v21, %v3596_v23  ;;  %3921 = vadd.xlane.f32.xlu0 %v3920_v47  ;;  %v3931_v42 = vsel %vm3750_vm4, %v3743_v2, 0.0 }
 0x352   :  { %v3935_v8 = vadd.f32 %v3745_v39, %v3744_v52  ;;  %v3930_v22 = vadd.f32 %v3929_v56, %v3742_v7  ;;  %3927 = vadd.xlane.f32.xlu1 %v3926_v16  ;;  %v3937_v4 = vsel %vm3750_vm4, %v3747_v57, 0.0 }
 0x354   :  { %v3932_v29 = vadd.f32 %v3931_v42, %v3930_v22  ;;  %v3936_v24 = vadd.f32 %v3935_v8, %v3746_v38 }
 0x356   :  { %v3938_v10 = vadd.f32 %v3937_v4, %v3936_v24  ;;  %3933 = vadd.xlane.f32.xlu0 %v3932_v29 }
 0x358   :  { %3939 = vadd.xlane.f32.xlu1 %v3938_v10 }
 0x36c   :  { %v3754_v20 = vpop.xlane.xlu0 %3753 }
 0x36d   :  { %v3948_v43 = vadd.f32 %v6233_v34, %v3754_v20 }
 0x36f   :  { %3981 = vst.msk [vmem:[%s6402_s7] sm:$0xff] %vm3980_vm5, %v3948_v43 }
 0x370   :  { %v3760_v21 = vpop.xlane.xlu0 %3759 }
 0x371   :  { %v3949_v62 = vadd.f32 %v6233_v34, %v3760_v21 }
 0x373   :  { %3982 = vst.msk [vmem:[%s6402_s7 + $0x8] sm:$0xff] %vm3980_vm5, %v3949_v62 }
 0x376   :  { %v3766_v41 = vpop.xlane.xlu1 %3765 }
 0x377   :  { %v3950_v55 = vadd.f32 %v6233_v34, %v3766_v41 }
 0x379   :  { %3983 = vst.msk [vmem:[%s6402_s7 + $0x10] sm:$0xff] %vm3980_vm5, %v3950_v55 }
 0x37a   :  { %v3772_v58 = vpop.xlane.xlu1 %3771 }
 0x37b   :  { %v3951_v33 = vadd.f32 %v6233_v34, %v3772_v58 }
 0x37d   :  { %3984 = vst.msk [vmem:[%s6402_s7 + $0x18] sm:$0xff] %vm3980_vm5, %v3951_v33 }
 0x37e   :  { %v3778_v30 = vpop.xlane.xlu0 %3777 }
 0x37f   :  { %v3784_v60 = vpop.xlane.xlu1 %3783  ;;  %v3952_v48 = vadd.f32 %v6233_v34, %v3778_v30 }
 0x380   :  { %v3953_v61 = vadd.f32 %v6233_v34, %v3784_v60 }
 0x381   :  { %3985 = vst.msk [vmem:[%s6402_s7 + $0x20] sm:$0xff] %vm3980_vm5, %v3952_v48 }
 0x382   :  { %3986 = vst.msk [vmem:[%s6402_s7 + $0x28] sm:$0xff] %vm3980_vm5, %v3953_v61 }
 0x386   :  { %v3790_v50 = vpop.xlane.xlu0 %3789 }
 0x387   :  { %v3954_v25 = vadd.f32 %v6233_v34, %v3790_v50  ;;  %v3796_v14 = vpop.xlane.xlu1 %3795 }
 0x388   :  { %v3955_v27 = vadd.f32 %v6233_v34, %v3796_v14 }
 0x389   :  { %3987 = vst.msk [vmem:[%s6402_s7 + $0x30] sm:$0xff] %vm3980_vm5, %v3954_v25 }
 0x38a   :  { %3988 = vst.msk [vmem:[%s6402_s7 + $0x38] sm:$0xff] %vm3980_vm5, %v3955_v27 }
 0x38e   :  { %v3802_v37 = vpop.xlane.xlu0 %3801 }
 0x38f   :  { %v3808_v46 = vpop.xlane.xlu1 %3807  ;;  %v3956_v6 = vadd.f32 %v6233_v34, %v3802_v37 }
 0x390   :  { %v3957_v18 = vadd.f32 %v6233_v34, %v3808_v46 }
 0x391   :  { %3989 = vst.msk [vmem:[%s6402_s7 + $0x40] sm:$0xff] %vm3980_vm5, %v3956_v6 }
 0x392   :  { %3990 = vst.msk [vmem:[%s6402_s7 + $0x48] sm:$0xff] %vm3980_vm5, %v3957_v18 }
 0x396   :  { %v3814_v54 = vpop.xlane.xlu0 %3813 }
 0x397   :  { %v3958_v26 = vadd.f32 %v6233_v34, %v3814_v54  ;;  %v3820_v35 = vpop.xlane.xlu1 %3819 }
 0x398   :  { %v3959_v44 = vadd.f32 %v6233_v34, %v3820_v35 }
 0x399   :  { %3991 = vst.msk [vmem:[%s6402_s7 + $0x50] sm:$0xff] %vm3980_vm5, %v3958_v26 }
 0x39a   :  { %3992 = vst.msk [vmem:[%s6402_s7 + $0x58] sm:$0xff] %vm3980_vm5, %v3959_v44 }
 0x39e   :  { %v3826_v31 = vpop.xlane.xlu0 %3825 }
 0x39f   :  { %v3832_v15 = vpop.xlane.xlu1 %3831  ;;  %v3960_v5 = vadd.f32 %v6233_v34, %v3826_v31 }
 0x3a0   :  { %v3961_v13 = vadd.f32 %v6233_v34, %v3832_v15 }
 0x3a1   :  { %3993 = vst.msk [vmem:[%s6402_s7 + $0x60] sm:$0xff] %vm3980_vm5, %v3960_v5 }
 0x3a2   :  { %3994 = vst.msk [vmem:[%s6402_s7 + $0x68] sm:$0xff] %vm3980_vm5, %v3961_v13 }
 0x3a6   :  { %v3838_v0 = vpop.xlane.xlu0 %3837 }
 0x3a7   :  { %v3962_v63 = vadd.f32 %v6233_v34, %v3838_v0  ;;  %v3844_v9 = vpop.xlane.xlu1 %3843 }
 0x3a8   :  { %v3963_v36 = vadd.f32 %v6233_v34, %v3844_v9 }
 0x3a9   :  { %3995 = vst.msk [vmem:[%s6402_s7 + $0x70] sm:$0xff] %vm3980_vm5, %v3962_v63 }
 0x3aa   :  { %3996 = vst.msk [vmem:[%s6402_s7 + $0x78] sm:$0xff] %vm3980_vm5, %v3963_v36 }
 0x3ae   :  { %v3850_v32 = vpop.xlane.xlu0 %3849 }
 0x3af   :  { %v3856_v11 = vpop.xlane.xlu1 %3855  ;;  %v3964_v59 = vadd.f32 %v6233_v34, %v3850_v32 }
 0x3b0   :  { %v3965_v51 = vadd.f32 %v6233_v34, %v3856_v11 }
 0x3b1   :  { %3997 = vst.msk [vmem:[%s6402_s7 + $0x80] sm:$0xff] %vm3980_vm5, %v3964_v59 }
 0x3b2   :  { %3998 = vst.msk [vmem:[%s6402_s7 + $0x88] sm:$0xff] %vm3980_vm5, %v3965_v51 }
 0x3b6   :  { %v3862_v3 = vpop.xlane.xlu0 %3861 }
 0x3b7   :  { %v3966_v28 = vadd.f32 %v6233_v34, %v3862_v3  ;;  %v3868_v53 = vpop.xlane.xlu1 %3867 }
 0x3b8   :  { %v3967_v45 = vadd.f32 %v6233_v34, %v3868_v53 }
 0x3b9   :  { %3999 = vst.msk [vmem:[%s6402_s7 + $0x90] sm:$0xff] %vm3980_vm5, %v3966_v28 }
 0x3ba   :  { %4000 = vst.msk [vmem:[%s6402_s7 + $0x98] sm:$0xff] %vm3980_vm5, %v3967_v45 }
 0x3be   :  { %v3874_v17 = vpop.xlane.xlu0 %3873 }
 0x3bf   :  { %v3880_v23 = vpop.xlane.xlu1 %3879  ;;  %v3968_v1 = vadd.f32 %v6233_v34, %v3874_v17 }
 0x3c0   :  { %v3969_v12 = vadd.f32 %v6233_v34, %v3880_v23 }
 0x3c1   :  { %4001 = vst.msk [vmem:[%s6402_s7 + $0xa0] sm:$0xff] %vm3980_vm5, %v3968_v1 }
 0x3c2   :  { %4002 = vst.msk [vmem:[%s6402_s7 + $0xa8] sm:$0xff] %vm3980_vm5, %v3969_v12 }
 0x3c6   :  { %v3886_v2 = vpop.xlane.xlu0 %3885 }
 0x3c7   :  { %v3970_v52 = vadd.f32 %v6233_v34, %v3886_v2  ;;  %v3892_v40 = vpop.xlane.xlu1 %3891 }
 0x3c8   :  { %v3971_v49 = vadd.f32 %v6233_v34, %v3892_v40 }
 0x3c9   :  { %4003 = vst.msk [vmem:[%s6402_s7 + $0xb0] sm:$0xff] %vm3980_vm5, %v3970_v52 }
 0x3ca   :  { %4004 = vst.msk [vmem:[%s6402_s7 + $0xb8] sm:$0xff] %vm3980_vm5, %v3971_v49 }
 0x3ce   :  { %v3898_v7 = vpop.xlane.xlu0 %3897 }
 0x3cf   :  { %v3904_v56 = vpop.xlane.xlu1 %3903  ;;  %v3972_v39 = vadd.f32 %v6233_v34, %v3898_v7 }
 0x3d0   :  { %v3973_v19 = vadd.f32 %v6233_v34, %v3904_v56 }
 0x3d1   :  { %4005 = vst.msk [vmem:[%s6402_s7 + $0xc0] sm:$0xff] %vm3980_vm5, %v3972_v39 }
 0x3d2   :  { %4006 = vst.msk [vmem:[%s6402_s7 + $0xc8] sm:$0xff] %vm3980_vm5, %v3973_v19 }
 0x3d6   :  { %v3910_v57 = vpop.xlane.xlu0 %3909 }
 0x3d7   :  { %v3974_v47 = vadd.f32 %v6233_v34, %v3910_v57  ;;  %v3916_v16 = vpop.xlane.xlu1 %3915 }
 0x3d8   :  { %v3975_v38 = vadd.f32 %v6233_v34, %v3916_v16 }
 0x3d9   :  { %4007 = vst.msk [vmem:[%s6402_s7 + $0xd0] sm:$0xff] %vm3980_vm5, %v3974_v47 }
 0x3da   :  { %4008 = vst.msk [vmem:[%s6402_s7 + $0xd8] sm:$0xff] %vm3980_vm5, %v3975_v38 }
 0x3de   :  { %v3922_v8 = vpop.xlane.xlu0 %3921 }
 0x3df   :  { %v3928_v22 = vpop.xlane.xlu1 %3927  ;;  %v3976_v42 = vadd.f32 %v6233_v34, %v3922_v8 }
 0x3e0   :  { %v3977_v29 = vadd.f32 %v6233_v34, %v3928_v22 }
 0x3e1   :  { %4009 = vst.msk [vmem:[%s6402_s7 + $0xe0] sm:$0xff] %vm3980_vm5, %v3976_v42 }
 0x3e2   :  { %4010 = vst.msk [vmem:[%s6402_s7 + $0xe8] sm:$0xff] %vm3980_vm5, %v3977_v29 }
 0x3e3   :  { %v3934_v24 = vpop.xlane.xlu0 %3933 }
 0x3e4   :  { %v3978_v4 = vadd.f32 %v6233_v34, %v3934_v24 }
 0x3e5   :  { %v3940_v10 = vpop.xlane.xlu1 %3939 }
 0x3e6   :  { %v3979_v20 = vadd.f32 %v6233_v34, %v3940_v10  ;;  %4011 = vst.msk [vmem:[%s6402_s7 + $0xf0] sm:$0xff] %vm3980_vm5, %v3978_v4 }
 0x3e8   :  { %4012 = vst.msk [vmem:[%s6402_s7 + $0xf8] sm:$0xff] %vm3980_vm5, %v3979_v20 }
 0x3e9   :  { %4017 = vsyncpa [#allocation4], 1 }

</bundles_post_ra>
